<compile_context>
chip_gen: v5e
topology: v5e:2x2
jax: 0.10.0
libtpu: 0.0.40
codegen_flags: <defaults>
</compile_context>

<pallas_src>
import math

import jax
import jax.numpy as jnp
from jax.experimental import pallas as pl
from jax.experimental.pallas import tpu as pltpu

PR_MAX = 76.96769714355469
PR_MIN = 0.0
MF = 16                                   # MonotonicNet hidden width
THRESH = 2.0 * ((0.01 - PR_MIN) / (PR_MAX - PR_MIN))


# ---------------------------------------------------------------------------
# Kernel factory: static shapes (W, UH, TNR, NR) are baked in via closure.
# ---------------------------------------------------------------------------
def _make_kernel(W, UH, TNR, NR):
    def kernel(norm_s,                                   # SMEM scalar prefetch (3,)
               xT_ref, nT_ref, lam_ref,                  # streamed per-pixel-row slabs
               mw2_ref, cmat_ref, mono_ref,              # MonotonicNet params (VMEM)
               uw1t_ref, uvec_ref, uw2t_ref, ub2c_ref,   # stand-in U-Net params
               loss_ref, logd_ref,                       # lane-dense partial sums
               z_scr, vt_scr):                           # (W, TNR) VMEM scratch
        y_min = norm_s[0]
        scale = norm_s[1]                  # 2 / (y_max - y_min)
        b3 = norm_s[2]

        xt = xT_ref[...]                   # (W, TNR)  x_scaled, pixel rows on lanes
        nt = nT_ref[...]                   # (W, TNR)  noise
        lam = lam_ref[...]                 # (1, TNR)  per-row log-SNR

        # per-row alpha / sigma recomputed in-kernel (removes 2 HBM row streams)
        alpha = jnp.sqrt(jax.nn.sigmoid(lam))
        sigma = jnp.sqrt(jax.nn.sigmoid(-lam))

        mono = mono_ref[...]               # (MF, 5) = [w1, b1, b2, w3, crow]
        w1c = mono[:, 0:1]
        b1c = mono[:, 1:2]
        b2c = mono[:, 2:3]
        w3c = mono[:, 3:4]
        crow = mono[:, 4:5]
        w2_b = mw2_ref[...].astype(jnp.bfloat16)   # (MF, MF) MXU operand
        c_b = cmat_ref[...].astype(jnp.bfloat16)   # (MF, MF) = W2 * w1 (derivative fold)

        logd_acc = jnp.zeros((1, TNR), jnp.float32)

        # MonotonicNet forward + analytic dy/dx, one W-row at a time: feature axis on
        # sublanes, pixel rows on lanes, 16x16 contractions on the MXU.
        for w in range(W):
            xw = xt[w:w + 1, :]                           # (1, TNR)
            nw = nt[w:w + 1, :]

            h1 = jnp.tanh(w1c * xw + b1c)                 # (MF, TNR)  layer 1
            h1sq = h1 * h1

            a2 = jnp.dot(w2_b, h1.astype(jnp.bfloat16),
                         preferred_element_type=jnp.float32)      # (MF, TNR)
            bsub = jnp.dot(c_b, h1sq.astype(jnp.bfloat16),
                           preferred_element_type=jnp.float32)    # (MF, TNR)

            h2 = jnp.tanh(a2 + b2c)                       # layer 2 value
            sd2 = crow - bsub                             # layer 2 derivative (>= ~0)
            d2 = (1.0 - h2 * h2) * sd2

            sh3 = jnp.sum(w3c * h2, axis=0, keepdims=True) + b3   # (1, TNR)
            sd3 = jnp.sum(w3c * d2, axis=0, keepdims=True)
            h3 = jnp.tanh(sh3)
            y = h3 + 0.1 * xw                             # Residual: fn(x) + 0.1*x
            dy = (1.0 - h3 * h3) * sd3 + 0.1              # d MonotonicNet / dx

            # q_sample inputs + v-target, assembled into (W, TNR) scratch for the U-Net
            ynorm = scale * (y - y_min) - 1.0             # MonotonicNet.normalise
            z_scr[pl.ds(w, 1), :] = alpha * ynorm + sigma * nw
            vt_scr[pl.ds(w, 1), :] = alpha * nw - sigma * ynorm

            # masked log|dy/dx| of the normalised map (safe log via double where)
            dyn = dy * scale
            mask = xw > THRESH
            logd_acc = logd_acc + jnp.where(
                mask, jnp.log(jnp.where(mask, dyn, 1.0)), 0.0)

        z = z_scr[...]                                    # (W, TNR)
        vt = vt_scr[...]                                  # (W, TNR)

        # stand-in U-Net: time embedding rebuilt in-kernel from lambda (no (UH,NR) stream)
        uvec = uvec_ref[...]                              # (UH, 3) = [ub1, utw, utb]
        ub1c = uvec[:, 0:1]
        utwc = uvec[:, 1:2]
        utbc = uvec[:, 2:3]
        temb = utwc * lam + utbc                          # (UH, TNR)

        h = jnp.tanh(jnp.dot(uw1t_ref[...], z, preferred_element_type=jnp.float32)
                     + ub1c + temb)                       # (UH, TNR)
        v = (jnp.dot(uw2t_ref[...], h, preferred_element_type=jnp.float32)
             + ub2c_ref[...])                             # (W, TNR)

        err = (v - vt) ** 2

        # mask padded pixel rows (NR padded up to a multiple of TNR on the host)
        row0 = pl.program_id(0) * TNR
        ridx = row0 + jax.lax.broadcasted_iota(jnp.int32, (1, TNR), 1)
        valid = (ridx < NR).astype(jnp.float32)

        # per-pixel-row partial sums: lane-dense (1, TNR) stores, reduced in JAX
        loss_ref[...] = jnp.sum(err, axis=0, keepdims=True) * valid
        logd_ref[...] = logd_acc * valid

    return kernel


# ---------------------------------------------------------------------------
# Host-side glue
# ---------------------------------------------------------------------------
def log_snr_schedule_cosine(t, log_snr_min=-30.0, log_snr_max=30.0):
    t_min = math.atan(math.exp(-0.5 * log_snr_max))
    t_max = math.atan(math.exp(-0.5 * log_snr_min))
    return -2.0 * jnp.log(jnp.tan(t_min + t * (t_max - t_min)))


def _xavier_uniform(key, out_f, in_f):
    bound = math.sqrt(6.0 / (in_f + out_f))
    return jax.random.uniform(key, (out_f, in_f), jnp.float32, -bound, bound)


def _pick_row_tile(nr):
    # Post-MXU-restructure vreg pressure is modest; cap at 512 and prefer >= 2 grid
    # steps so the "parallel" axis shards across v7x's two TensorCores and pipelines.
    for t in (512, 256, 128):
        if nr >= 2 * t:
            return t
    return 128


class GaussianDiffusion:
    def __init__(self, image_size, num_frames, num_timesteps=1000,
                 unet_hidden=32, seed=42):
        self.image_size = image_size
        self.num_frames = num_frames
        self.num_timesteps = num_timesteps
        self.unet_hidden = unet_hidden
        self.recon_weight = 1000000

        keys = jax.random.split(jax.random.PRNGKey(seed), 12)

        # --- MonotonicNet params (xavier_uniform then clamp(min=0) on weights) ---
        w1_t = jnp.maximum(_xavier_uniform(keys[0], MF, 1), 0.0)     # (16, 1)
        w2_t = jnp.maximum(_xavier_uniform(keys[1], MF, MF), 0.0)    # (16, 16) (out, in)
        w3_t = jnp.maximum(_xavier_uniform(keys[2], 1, MF), 0.0)     # (1, 16)
        self.mw1 = w1_t[:, 0]                                        # (16,)
        self.mw2 = w2_t                                              # (16, 16)
        self.mw3 = w3_t[0]                                           # (16,)
        self.mb1 = jax.random.uniform(keys[3], (1, MF), jnp.float32, -1.0, 1.0)[0]
        self.mb2 = jax.random.uniform(keys[4], (1, MF), jnp.float32, -0.25, 0.25)[0]
        self.mb3 = jax.random.uniform(keys[5], (1, 1), jnp.float32, -0.25, 0.25)[0, 0]

        # derivative fold (review item 2): C[g,f] = W2[g,f] * w1[f]; row sums taken on
        # the bf16-rounded C so the in-kernel SD = crow - dot(C_bf16, h1^2) stays >= ~0.
        self.cmat = self.mw2 * self.mw1[None, :]                     # (16, 16)
        crow = self.cmat.astype(jnp.bfloat16).astype(jnp.float32).sum(axis=1)
        # packed (MF, 5) column table: [w1, b1, b2, w3, crow]
        self.mono_vec = jnp.stack(
            [self.mw1, self.mb1, self.mb2, self.mw3, crow], axis=1)

        # --- stand-in U-Net params (dense over last spatial dim, width W) ---
        W = image_size
        H = unet_hidden
        uw1 = 0.1 * jax.random.normal(keys[6], (W, H), jnp.float32)
        ub1 = 0.1 * jax.random.normal(keys[7], (1, H), jnp.float32)
        utw = 0.1 * jax.random.normal(keys[8], (1, H), jnp.float32)
        utb = 0.1 * jax.random.normal(keys[9], (1, H), jnp.float32)
        uw2 = 0.1 * jax.random.normal(keys[10], (H, W), jnp.float32)
        ub2 = 0.1 * jax.random.normal(keys[11], (1, W), jnp.float32)
        # transposed copies: the kernel keeps pixel rows on the lane axis
        self.uw1t = uw1.T                                            # (H, W)
        self.uw2t = uw2.T                                            # (W, H)
        self.ub2c = ub2.T                                            # (W, 1)
        self.uvec = jnp.concatenate([ub1.T, utw.T, utb.T], axis=1)   # (H, 3)

    # exact JAX replica of the in-kernel MonotonicNet (for the 2 normalisation probes)
    def _monotonic_ref(self, xv):
        h1 = jnp.tanh(self.mw1 * xv + self.mb1)                      # (16,)
        h2 = jnp.tanh(self.mw2 @ h1 + self.mb2)                      # (16,)
        h3 = jnp.tanh(jnp.dot(self.mw3, h2) + self.mb3)              # ()
        return h3 + 0.1 * xv

    def forward(self, x, key):
        b, C, Fr, Hh, W = x.shape
        assert W == self.image_size
        ntot = b * C * Fr * Hh * W
        R = C * Fr * Hh
        NR = b * R                                                   # pixel rows
        UH = self.unet_hidden

        # x = 2 * ((x - PR_MIN) / (PR_MAX - PR_MIN))
        x_scaled = (2.0 * (x - PR_MIN) / (PR_MAX - PR_MIN)).astype(jnp.float32)

        # normalisation probes MonotonicNet(0.0), MonotonicNet(2.0) in plain JAX
        y_min = self._monotonic_ref(jnp.float32(0.0))
        y_max = self._monotonic_ref(jnp.float32(2.0))
        scale = 2.0 / (y_max - y_min)
        norm = jnp.stack([y_min, scale, self.mb3]).astype(jnp.float32)

        # diffusion timestep / noise setup (tiny, plain JAX glue)
        k_t, k_n = jax.random.split(key)
        times = jax.random.uniform(k_t, (b,), jnp.float32)
        lam = log_snr_schedule_cosine(times).astype(jnp.float32)     # (b,)
        noise = jax.random.normal(k_n, x.shape, jnp.float32)

        # tiling: lane tile of pixel rows, padded to a multiple of TNR, masked in-kernel
        TNR = _pick_row_tile(NR)
        G = pl.cdiv(NR, TNR)
        NRp = G * TNR
        pad = NRp - NR

        x2 = x_scaled.reshape(NR, W)
        n2 = noise.reshape(NR, W)
        lam_r = jnp.repeat(lam, R)                                   # (NR,)
        if pad:
            x2 = jnp.pad(x2, ((0, pad), (0, 0)))
            n2 = jnp.pad(n2, ((0, pad), (0, 0)))
            lam_r = jnp.pad(lam_r, (0, pad))
        xT = x2.T                                                    # (W, NRp)
        nT = n2.T                                                    # (W, NRp)
        lam_r = lam_r[None, :]                                       # (1, NRp)

        kernel = _make_kernel(W, UH, TNR, NR)

        def row_spec(s):
            return pl.BlockSpec((s, TNR), lambda i, *_: (0, i))

        def full_spec(shp):
            return pl.BlockSpec(shp, lambda i, *_: (0,) * len(shp))

        grid_spec = pltpu.PrefetchScalarGridSpec(
            num_scalar_prefetch=1,
            grid=(G,),
            in_specs=[row_spec(W), row_spec(W), row_spec(1),
                      full_spec(self.mw2.shape), full_spec(self.cmat.shape),
                      full_spec(self.mono_vec.shape),
                      full_spec(self.uw1t.shape), full_spec(self.uvec.shape),
                      full_spec(self.uw2t.shape), full_spec(self.ub2c.shape)],
            out_specs=[row_spec(1), row_spec(1)],
            scratch_shapes=[pltpu.VMEM((W, TNR), jnp.float32),
                            pltpu.VMEM((W, TNR), jnp.float32)])

        loss_rows, logd_rows = pl.pallas_call(
            kernel,
            out_shape=(jax.ShapeDtypeStruct((1, NRp), jnp.float32),
                       jax.ShapeDtypeStruct((1, NRp), jnp.float32)),
            grid_spec=grid_spec,
            compiler_params=pltpu.CompilerParams(
                dimension_semantics=("parallel",),
                vmem_limit_bytes=32 * 1024 * 1024),
        )(norm, xT, nT, lam_r,
          self.mw2, self.cmat, self.mono_vec,
          self.uw1t, self.uvec, self.uw2t, self.ub2c)

        diffusion_loss = jnp.sum(loss_rows) / ntot        # F.mse_loss (mean)
        log_dy_dx = jnp.sum(logd_rows) / ntot             # masked mean of log dy/dx
        return diffusion_loss - log_dy_dx


if __name__ == "__main__":
    # NR = b*C*Fr*Hh = 256 -> TNR = 128, grid = (2,) "parallel" steps (v7x megacore)
    b, C, Fr, Hh, W = 2, 1, 8, 16, 16
    model = GaussianDiffusion(image_size=W, num_frames=Fr)

    key = jax.random.PRNGKey(0)
    k_x, k_fwd = jax.random.split(key)
    # raw input in the original (un-normalised) precipitation range [PR_MIN, PR_MAX]
    x = jax.random.uniform(k_x, (b, C, Fr, Hh, W), jnp.float32, PR_MIN, PR_MAX)

    loss = model.forward(x, k_fwd)
    jax.block_until_ready(loss)
    assert jnp.isfinite(loss), "loss is not finite"
    print("KERNEL_OK")
</pallas_src>

<mosaic_0001>
module attributes {stable_mosaic.version = 11 : i64} {
  func.func @kernel(%arg0: i32, %arg1: memref<3xf32, #tpu.memory_space<smem>>, %arg2: memref<16x128xf32, #tpu.memory_space<vmem>>, %arg3: memref<16x128xf32, #tpu.memory_space<vmem>>, %arg4: memref<1x128xf32, #tpu.memory_space<vmem>>, %arg5: memref<16x16xf32, #tpu.memory_space<vmem>>, %arg6: memref<16x16xf32, #tpu.memory_space<vmem>>, %arg7: memref<16x5xf32, #tpu.memory_space<vmem>>, %arg8: memref<32x16xf32, #tpu.memory_space<vmem>>, %arg9: memref<32x3xf32, #tpu.memory_space<vmem>>, %arg10: memref<16x32xf32, #tpu.memory_space<vmem>>, %arg11: memref<16x1xf32, #tpu.memory_space<vmem>>, %arg12: memref<1x128xf32, #tpu.memory_space<vmem>>, %arg13: memref<1x128xf32, #tpu.memory_space<vmem>>, %arg14: memref<16x128xf32, #tpu.memory_space<vmem>>, %arg15: memref<16x128xf32, #tpu.memory_space<vmem>>) attributes {dimension_semantics = [#tpu.dimension_semantics<parallel>], iteration_bounds = array<i64: 2>, scalar_prefetch = 1 : i64, scratch_operands = 2 : i64, tpu.core_type = #tpu.core_type<tc>, window_params = [{transform_indices = @transform_0, window_bounds = array<i64: 16, 128>}, {transform_indices = @transform_1, window_bounds = array<i64: 16, 128>}, {transform_indices = @transform_2, window_bounds = array<i64: 1, 128>}, {pipeline_mode = #tpu.pipeline_mode<synchronous>, transform_indices = @transform_3, window_bounds = array<i64: 16, 16>}, {pipeline_mode = #tpu.pipeline_mode<synchronous>, transform_indices = @transform_4, window_bounds = array<i64: 16, 16>}, {pipeline_mode = #tpu.pipeline_mode<synchronous>, transform_indices = @transform_5, window_bounds = array<i64: 16, 5>}, {pipeline_mode = #tpu.pipeline_mode<synchronous>, transform_indices = @transform_6, window_bounds = array<i64: 32, 16>}, {pipeline_mode = #tpu.pipeline_mode<synchronous>, transform_indices = @transform_7, window_bounds = array<i64: 32, 3>}, {pipeline_mode = #tpu.pipeline_mode<synchronous>, transform_indices = @transform_8, window_bounds = array<i64: 16, 32>}, {pipeline_mode = #tpu.pipeline_mode<synchronous>, transform_indices = @transform_9, window_bounds = array<i64: 16, 1>}, {transform_indices = @transform_10, window_bounds = array<i64: 1, 128>}, {transform_indices = @transform_11, window_bounds = array<i64: 1, 128>}]} {
    %c0 = arith.constant 0 : index
    %0 = memref.load %arg1[%c0] : memref<3xf32, #tpu.memory_space<smem>>
    %c1 = arith.constant 1 : index
    %1 = memref.load %arg1[%c1] : memref<3xf32, #tpu.memory_space<smem>>
    %c2 = arith.constant 2 : index
    %2 = memref.load %arg1[%c2] : memref<3xf32, #tpu.memory_space<smem>>
    %c0_0 = arith.constant 0 : index
    %c0_1 = arith.constant 0 : index
    %3 = vector.load %arg2[%c0_0, %c0_1] : memref<16x128xf32, #tpu.memory_space<vmem>>, vector<16x128xf32>
    %c0_2 = arith.constant 0 : index
    %c0_3 = arith.constant 0 : index
    %4 = vector.load %arg3[%c0_2, %c0_3] : memref<16x128xf32, #tpu.memory_space<vmem>>, vector<16x128xf32>
    %c0_4 = arith.constant 0 : index
    %c0_5 = arith.constant 0 : index
    %5 = vector.load %arg4[%c0_4, %c0_5] : memref<1x128xf32, #tpu.memory_space<vmem>>, vector<1x128xf32>
    %6 = arith.negf %5 : vector<1x128xf32>
    %7 = math.exp %6 : vector<1x128xf32>
    %cst = arith.constant 1.000000e+00 : f32
    %8 = vector.broadcast %cst : f32 to vector<1x128xf32>
    %9 = arith.addf %8, %7 : vector<1x128xf32>
    %10 = arith.divf %8, %9 : vector<1x128xf32>
    %11 = math.sqrt %10 : vector<1x128xf32>
    %cst_6 = arith.constant 0.000000e+00 : f32
    %12 = vector.broadcast %cst_6 : f32 to vector<1x128xf32>
    %13 = arith.subf %12, %5 : vector<1x128xf32>
    %14 = arith.negf %13 : vector<1x128xf32>
    %15 = math.exp %14 : vector<1x128xf32>
    %cst_7 = arith.constant 1.000000e+00 : f32
    %16 = vector.broadcast %cst_7 : f32 to vector<1x128xf32>
    %17 = arith.addf %16, %15 : vector<1x128xf32>
    %18 = arith.divf %16, %17 : vector<1x128xf32>
    %19 = math.sqrt %18 : vector<1x128xf32>
    %c0_8 = arith.constant 0 : index
    %c0_9 = arith.constant 0 : index
    %20 = vector.load %arg7[%c0_8, %c0_9] : memref<16x5xf32, #tpu.memory_space<vmem>>, vector<16x5xf32>
    %21 = vector.extract_strided_slice %20 {offsets = [0, 0], sizes = [16, 1], strides = [1, 1]} : vector<16x5xf32> to vector<16x1xf32>
    %22 = vector.extract_strided_slice %20 {offsets = [0, 1], sizes = [16, 1], strides = [1, 1]} : vector<16x5xf32> to vector<16x1xf32>
    %23 = vector.extract_strided_slice %20 {offsets = [0, 2], sizes = [16, 1], strides = [1, 1]} : vector<16x5xf32> to vector<16x1xf32>
    %24 = vector.extract_strided_slice %20 {offsets = [0, 3], sizes = [16, 1], strides = [1, 1]} : vector<16x5xf32> to vector<16x1xf32>
    %25 = vector.extract_strided_slice %20 {offsets = [0, 4], sizes = [16, 1], strides = [1, 1]} : vector<16x5xf32> to vector<16x1xf32>
    %c0_10 = arith.constant 0 : index
    %c0_11 = arith.constant 0 : index
    %26 = vector.load %arg5[%c0_10, %c0_11] : memref<16x16xf32, #tpu.memory_space<vmem>>, vector<16x16xf32>
    %27 = arith.truncf %26 : vector<16x16xf32> to vector<16x16xbf16>
    %c0_12 = arith.constant 0 : index
    %c0_13 = arith.constant 0 : index
    %28 = vector.load %arg6[%c0_12, %c0_13] : memref<16x16xf32, #tpu.memory_space<vmem>>, vector<16x16xf32>
    %29 = arith.truncf %28 : vector<16x16xf32> to vector<16x16xbf16>
    %cst_14 = arith.constant 0.000000e+00 : f32
    %30 = vector.broadcast %cst_14 : f32 to vector<1x128xf32>
    %31 = vector.extract_strided_slice %3 {offsets = [0, 0], sizes = [1, 128], strides = [1, 1]} : vector<16x128xf32> to vector<1x128xf32>
    %32 = vector.extract_strided_slice %4 {offsets = [0, 0], sizes = [1, 128], strides = [1, 1]} : vector<16x128xf32> to vector<1x128xf32>
    %33 = vector.broadcast %21 : vector<16x1xf32> to vector<16x128xf32>
    %34 = vector.broadcast %31 : vector<1x128xf32> to vector<16x128xf32>
    %35 = arith.mulf %33, %34 : vector<16x128xf32>
    %36 = vector.broadcast %22 : vector<16x1xf32> to vector<16x128xf32>
    %37 = arith.addf %35, %36 : vector<16x128xf32>
    %38 = math.tanh %37 : vector<16x128xf32>
    %39 = arith.mulf %38, %38 : vector<16x128xf32>
    %40 = arith.truncf %38 : vector<16x128xf32> to vector<16x128xbf16>
    %cst_15 = arith.constant dense<0.000000e+00> : vector<16x128xf32>
    %41 = tpu.matmul %27, %40, %cst_15 {dimension_numbers = #tpu.dot_dimension_numbers<[1], [0], [0], [1], [0, 0, 1, 1], [], []>} : vector<16x16xbf16>, vector<16x128xbf16>, vector<16x128xf32> -> vector<16x128xf32>
    %42 = arith.truncf %39 : vector<16x128xf32> to vector<16x128xbf16>
    %cst_16 = arith.constant dense<0.000000e+00> : vector<16x128xf32>
    %43 = tpu.matmul %29, %42, %cst_16 {dimension_numbers = #tpu.dot_dimension_numbers<[1], [0], [0], [1], [0, 0, 1, 1], [], []>} : vector<16x16xbf16>, vector<16x128xbf16>, vector<16x128xf32> -> vector<16x128xf32>
    %44 = vector.broadcast %23 : vector<16x1xf32> to vector<16x128xf32>
    %45 = arith.addf %41, %44 : vector<16x128xf32>
    %46 = math.tanh %45 : vector<16x128xf32>
    %47 = vector.broadcast %25 : vector<16x1xf32> to vector<16x128xf32>
    %48 = arith.subf %47, %43 : vector<16x128xf32>
    %49 = arith.mulf %46, %46 : vector<16x128xf32>
    %cst_17 = arith.constant 1.000000e+00 : f32
    %50 = vector.broadcast %cst_17 : f32 to vector<16x128xf32>
    %51 = arith.subf %50, %49 : vector<16x128xf32>
    %52 = arith.mulf %51, %48 : vector<16x128xf32>
    %53 = vector.broadcast %24 : vector<16x1xf32> to vector<16x128xf32>
    %54 = arith.mulf %53, %46 : vector<16x128xf32>
    %cst_18 = arith.constant dense<0.000000e+00> : vector<128xf32>
    %55 = vector.multi_reduction <add>, %54, %cst_18 [0] : vector<16x128xf32> to vector<128xf32>
    %56 = vector.shape_cast %55 : vector<128xf32> to vector<1x128xf32>
    %57 = vector.broadcast %2 : f32 to vector<1x128xf32>
    %58 = arith.addf %56, %57 : vector<1x128xf32>
    %59 = vector.broadcast %24 : vector<16x1xf32> to vector<16x128xf32>
    %60 = arith.mulf %59, %52 : vector<16x128xf32>
    %cst_19 = arith.constant dense<0.000000e+00> : vector<128xf32>
    %61 = vector.multi_reduction <add>, %60, %cst_19 [0] : vector<16x128xf32> to vector<128xf32>
    %62 = vector.shape_cast %61 : vector<128xf32> to vector<1x128xf32>
    %63 = math.tanh %58 : vector<1x128xf32>
    %cst_20 = arith.constant 1.000000e-01 : f32
    %64 = vector.broadcast %cst_20 : f32 to vector<1x128xf32>
    %65 = arith.mulf %64, %31 : vector<1x128xf32>
    %66 = arith.addf %63, %65 : vector<1x128xf32>
    %67 = arith.mulf %63, %63 : vector<1x128xf32>
    %cst_21 = arith.constant 1.000000e+00 : f32
    %68 = vector.broadcast %cst_21 : f32 to vector<1x128xf32>
    %69 = arith.subf %68, %67 : vector<1x128xf32>
    %70 = arith.mulf %69, %62 : vector<1x128xf32>
    %cst_22 = arith.constant 1.000000e-01 : f32
    %71 = vector.broadcast %cst_22 : f32 to vector<1x128xf32>
    %72 = arith.addf %70, %71 : vector<1x128xf32>
    %73 = vector.broadcast %0 : f32 to vector<1x128xf32>
    %74 = arith.subf %66, %73 : vector<1x128xf32>
    %75 = vector.broadcast %1 : f32 to vector<1x128xf32>
    %76 = arith.mulf %75, %74 : vector<1x128xf32>
    %cst_23 = arith.constant 1.000000e+00 : f32
    %77 = vector.broadcast %cst_23 : f32 to vector<1x128xf32>
    %78 = arith.subf %76, %77 : vector<1x128xf32>
    %79 = arith.mulf %11, %78 : vector<1x128xf32>
    %80 = arith.mulf %19, %32 : vector<1x128xf32>
    %81 = arith.addf %79, %80 : vector<1x128xf32>
    %c0_24 = arith.constant 0 : index
    %c0_25 = arith.constant 0 : index
    %82 = vector.load %arg14[%c0_24, %c0_25] : memref<16x128xf32, #tpu.memory_space<vmem>>, vector<1x128xf32>
    tpu.vector_store %arg14[%c0_24, %c0_25], %81 {strides = array<i32>} : memref<16x128xf32, #tpu.memory_space<vmem>>, vector<1x128xf32>,
    %83 = arith.mulf %11, %32 : vector<1x128xf32>
    %84 = arith.mulf %19, %78 : vector<1x128xf32>
    %85 = arith.subf %83, %84 : vector<1x128xf32>
    %c0_26 = arith.constant 0 : index
    %c0_27 = arith.constant 0 : index
    %86 = vector.load %arg15[%c0_26, %c0_27] : memref<16x128xf32, #tpu.memory_space<vmem>>, vector<1x128xf32>
    tpu.vector_store %arg15[%c0_26, %c0_27], %85 {strides = array<i32>} : memref<16x128xf32, #tpu.memory_space<vmem>>, vector<1x128xf32>,
    %87 = vector.broadcast %1 : f32 to vector<1x128xf32>
    %88 = arith.mulf %72, %87 : vector<1x128xf32>
    %cst_28 = arith.constant 2.59849272E-4 : f32
    %89 = vector.broadcast %cst_28 : f32 to vector<1x128xf32>
    %90 = arith.cmpf ogt, %31, %89 : vector<1x128xf32>
    %cst_29 = arith.constant 1.000000e+00 : f32
    %91 = vector.broadcast %cst_29 : f32 to vector<1x128xf32>
    %92 = arith.select %90, %88, %91 : vector<1x128xi1>, vector<1x128xf32>
    %93 = math.log %92 : vector<1x128xf32>
    %cst_30 = arith.constant 0.000000e+00 : f32
    %94 = vector.broadcast %cst_30 : f32 to vector<1x128xf32>
    %95 = arith.select %90, %93, %94 : vector<1x128xi1>, vector<1x128xf32>
    %96 = arith.addf %30, %95 : vector<1x128xf32>
    %97 = vector.extract_strided_slice %3 {offsets = [1, 0], sizes = [1, 128], strides = [1, 1]} : vector<16x128xf32> to vector<1x128xf32>
    %98 = vector.extract_strided_slice %4 {offsets = [1, 0], sizes = [1, 128], strides = [1, 1]} : vector<16x128xf32> to vector<1x128xf32>
    %99 = vector.broadcast %21 : vector<16x1xf32> to vector<16x128xf32>
    %100 = vector.broadcast %97 : vector<1x128xf32> to vector<16x128xf32>
    %101 = arith.mulf %99, %100 : vector<16x128xf32>
    %102 = vector.broadcast %22 : vector<16x1xf32> to vector<16x128xf32>
    %103 = arith.addf %101, %102 : vector<16x128xf32>
    %104 = math.tanh %103 : vector<16x128xf32>
    %105 = arith.mulf %104, %104 : vector<16x128xf32>
    %106 = arith.truncf %104 : vector<16x128xf32> to vector<16x128xbf16>
    %cst_31 = arith.constant dense<0.000000e+00> : vector<16x128xf32>
    %107 = tpu.matmul %27, %106, %cst_31 {dimension_numbers = #tpu.dot_dimension_numbers<[1], [0], [0], [1], [0, 0, 1, 1], [], []>} : vector<16x16xbf16>, vector<16x128xbf16>, vector<16x128xf32> -> vector<16x128xf32>
    %108 = arith.truncf %105 : vector<16x128xf32> to vector<16x128xbf16>
    %cst_32 = arith.constant dense<0.000000e+00> : vector<16x128xf32>
    %109 = tpu.matmul %29, %108, %cst_32 {dimension_numbers = #tpu.dot_dimension_numbers<[1], [0], [0], [1], [0, 0, 1, 1], [], []>} : vector<16x16xbf16>, vector<16x128xbf16>, vector<16x128xf32> -> vector<16x128xf32>
    %110 = vector.broadcast %23 : vector<16x1xf32> to vector<16x128xf32>
    %111 = arith.addf %107, %110 : vector<16x128xf32>
    %112 = math.tanh %111 : vector<16x128xf32>
    %113 = vector.broadcast %25 : vector<16x1xf32> to vector<16x128xf32>
    %114 = arith.subf %113, %109 : vector<16x128xf32>
    %115 = arith.mulf %112, %112 : vector<16x128xf32>
    %cst_33 = arith.constant 1.000000e+00 : f32
    %116 = vector.broadcast %cst_33 : f32 to vector<16x128xf32>
    %117 = arith.subf %116, %115 : vector<16x128xf32>
    %118 = arith.mulf %117, %114 : vector<16x128xf32>
    %119 = vector.broadcast %24 : vector<16x1xf32> to vector<16x128xf32>
    %120 = arith.mulf %119, %112 : vector<16x128xf32>
    %cst_34 = arith.constant dense<0.000000e+00> : vector<128xf32>
    %121 = vector.multi_reduction <add>, %120, %cst_34 [0] : vector<16x128xf32> to vector<128xf32>
    %122 = vector.shape_cast %121 : vector<128xf32> to vector<1x128xf32>
    %123 = vector.broadcast %2 : f32 to vector<1x128xf32>
    %124 = arith.addf %122, %123 : vector<1x128xf32>
    %125 = vector.broadcast %24 : vector<16x1xf32> to vector<16x128xf32>
    %126 = arith.mulf %125, %118 : vector<16x128xf32>
    %cst_35 = arith.constant dense<0.000000e+00> : vector<128xf32>
    %127 = vector.multi_reduction <add>, %126, %cst_35 [0] : vector<16x128xf32> to vector<128xf32>
    %128 = vector.shape_cast %127 : vector<128xf32> to vector<1x128xf32>
    %129 = math.tanh %124 : vector<1x128xf32>
    %cst_36 = arith.constant 1.000000e-01 : f32
    %130 = vector.broadcast %cst_36 : f32 to vector<1x128xf32>
    %131 = arith.mulf %130, %97 : vector<1x128xf32>
    %132 = arith.addf %129, %131 : vector<1x128xf32>
    %133 = arith.mulf %129, %129 : vector<1x128xf32>
    %cst_37 = arith.constant 1.000000e+00 : f32
    %134 = vector.broadcast %cst_37 : f32 to vector<1x128xf32>
    %135 = arith.subf %134, %133 : vector<1x128xf32>
    %136 = arith.mulf %135, %128 : vector<1x128xf32>
    %cst_38 = arith.constant 1.000000e-01 : f32
    %137 = vector.broadcast %cst_38 : f32 to vector<1x128xf32>
    %138 = arith.addf %136, %137 : vector<1x128xf32>
    %139 = vector.broadcast %0 : f32 to vector<1x128xf32>
    %140 = arith.subf %132, %139 : vector<1x128xf32>
    %141 = vector.broadcast %1 : f32 to vector<1x128xf32>
    %142 = arith.mulf %141, %140 : vector<1x128xf32>
    %cst_39 = arith.constant 1.000000e+00 : f32
    %143 = vector.broadcast %cst_39 : f32 to vector<1x128xf32>
    %144 = arith.subf %142, %143 : vector<1x128xf32>
    %145 = arith.mulf %11, %144 : vector<1x128xf32>
    %146 = arith.mulf %19, %98 : vector<1x128xf32>
    %147 = arith.addf %145, %146 : vector<1x128xf32>
    %c1_40 = arith.constant 1 : index
    %c0_41 = arith.constant 0 : index
    %148 = vector.load %arg14[%c1_40, %c0_41] : memref<16x128xf32, #tpu.memory_space<vmem>>, vector<1x128xf32>
    tpu.vector_store %arg14[%c1_40, %c0_41], %147 {strides = array<i32>} : memref<16x128xf32, #tpu.memory_space<vmem>>, vector<1x128xf32>,
    %149 = arith.mulf %11, %98 : vector<1x128xf32>
    %150 = arith.mulf %19, %144 : vector<1x128xf32>
    %151 = arith.subf %149, %150 : vector<1x128xf32>
    %c1_42 = arith.constant 1 : index
    %c0_43 = arith.constant 0 : index
    %152 = vector.load %arg15[%c1_42, %c0_43] : memref<16x128xf32, #tpu.memory_space<vmem>>, vector<1x128xf32>
    tpu.vector_store %arg15[%c1_42, %c0_43], %151 {strides = array<i32>} : memref<16x128xf32, #tpu.memory_space<vmem>>, vector<1x128xf32>,
    %153 = vector.broadcast %1 : f32 to vector<1x128xf32>
    %154 = arith.mulf %138, %153 : vector<1x128xf32>
    %cst_44 = arith.constant 2.59849272E-4 : f32
    %155 = vector.broadcast %cst_44 : f32 to vector<1x128xf32>
    %156 = arith.cmpf ogt, %97, %155 : vector<1x128xf32>
    %cst_45 = arith.constant 1.000000e+00 : f32
    %157 = vector.broadcast %cst_45 : f32 to vector<1x128xf32>
    %158 = arith.select %156, %154, %157 : vector<1x128xi1>, vector<1x128xf32>
    %159 = math.log %158 : vector<1x128xf32>
    %cst_46 = arith.constant 0.000000e+00 : f32
    %160 = vector.broadcast %cst_46 : f32 to vector<1x128xf32>
    %161 = arith.select %156, %159, %160 : vector<1x128xi1>, vector<1x128xf32>
    %162 = arith.addf %96, %161 : vector<1x128xf32>
    %163 = vector.extract_strided_slice %3 {offsets = [2, 0], sizes = [1, 128], strides = [1, 1]} : vector<16x128xf32> to vector<1x128xf32>
    %164 = vector.extract_strided_slice %4 {offsets = [2, 0], sizes = [1, 128], strides = [1, 1]} : vector<16x128xf32> to vector<1x128xf32>
    %165 = vector.broadcast %21 : vector<16x1xf32> to vector<16x128xf32>
    %166 = vector.broadcast %163 : vector<1x128xf32> to vector<16x128xf32>
    %167 = arith.mulf %165, %166 : vector<16x128xf32>
    %168 = vector.broadcast %22 : vector<16x1xf32> to vector<16x128xf32>
    %169 = arith.addf %167, %168 : vector<16x128xf32>
    %170 = math.tanh %169 : vector<16x128xf32>
    %171 = arith.mulf %170, %170 : vector<16x128xf32>
    %172 = arith.truncf %170 : vector<16x128xf32> to vector<16x128xbf16>
    %cst_47 = arith.constant dense<0.000000e+00> : vector<16x128xf32>
    %173 = tpu.matmul %27, %172, %cst_47 {dimension_numbers = #tpu.dot_dimension_numbers<[1], [0], [0], [1], [0, 0, 1, 1], [], []>} : vector<16x16xbf16>, vector<16x128xbf16>, vector<16x128xf32> -> vector<16x128xf32>
    %174 = arith.truncf %171 : vector<16x128xf32> to vector<16x128xbf16>
    %cst_48 = arith.constant dense<0.000000e+00> : vector<16x128xf32>
    %175 = tpu.matmul %29, %174, %cst_48 {dimension_numbers = #tpu.dot_dimension_numbers<[1], [0], [0], [1], [0, 0, 1, 1], [], []>} : vector<16x16xbf16>, vector<16x128xbf16>, vector<16x128xf32> -> vector<16x128xf32>
    %176 = vector.broadcast %23 : vector<16x1xf32> to vector<16x128xf32>
    %177 = arith.addf %173, %176 : vector<16x128xf32>
    %178 = math.tanh %177 : vector<16x128xf32>
    %179 = vector.broadcast %25 : vector<16x1xf32> to vector<16x128xf32>
    %180 = arith.subf %179, %175 : vector<16x128xf32>
    %181 = arith.mulf %178, %178 : vector<16x128xf32>
    %cst_49 = arith.constant 1.000000e+00 : f32
    %182 = vector.broadcast %cst_49 : f32 to vector<16x128xf32>
    %183 = arith.subf %182, %181 : vector<16x128xf32>
    %184 = arith.mulf %183, %180 : vector<16x128xf32>
    %185 = vector.broadcast %24 : vector<16x1xf32> to vector<16x128xf32>
    %186 = arith.mulf %185, %178 : vector<16x128xf32>
    %cst_50 = arith.constant dense<0.000000e+00> : vector<128xf32>
    %187 = vector.multi_reduction <add>, %186, %cst_50 [0] : vector<16x128xf32> to vector<128xf32>
    %188 = vector.shape_cast %187 : vector<128xf32> to vector<1x128xf32>
    %189 = vector.broadcast %2 : f32 to vector<1x128xf32>
    %190 = arith.addf %188, %189 : vector<1x128xf32>
    %191 = vector.broadcast %24 : vector<16x1xf32> to vector<16x128xf32>
    %192 = arith.mulf %191, %184 : vector<16x128xf32>
    %cst_51 = arith.constant dense<0.000000e+00> : vector<128xf32>
    %193 = vector.multi_reduction <add>, %192, %cst_51 [0] : vector<16x128xf32> to vector<128xf32>
    %194 = vector.shape_cast %193 : vector<128xf32> to vector<1x128xf32>
    %195 = math.tanh %190 : vector<1x128xf32>
    %cst_52 = arith.constant 1.000000e-01 : f32
    %196 = vector.broadcast %cst_52 : f32 to vector<1x128xf32>
    %197 = arith.mulf %196, %163 : vector<1x128xf32>
    %198 = arith.addf %195, %197 : vector<1x128xf32>
    %199 = arith.mulf %195, %195 : vector<1x128xf32>
    %cst_53 = arith.constant 1.000000e+00 : f32
    %200 = vector.broadcast %cst_53 : f32 to vector<1x128xf32>
    %201 = arith.subf %200, %199 : vector<1x128xf32>
    %202 = arith.mulf %201, %194 : vector<1x128xf32>
    %cst_54 = arith.constant 1.000000e-01 : f32
    %203 = vector.broadcast %cst_54 : f32 to vector<1x128xf32>
    %204 = arith.addf %202, %203 : vector<1x128xf32>
    %205 = vector.broadcast %0 : f32 to vector<1x128xf32>
    %206 = arith.subf %198, %205 : vector<1x128xf32>
    %207 = vector.broadcast %1 : f32 to vector<1x128xf32>
    %208 = arith.mulf %207, %206 : vector<1x128xf32>
    %cst_55 = arith.constant 1.000000e+00 : f32
    %209 = vector.broadcast %cst_55 : f32 to vector<1x128xf32>
    %210 = arith.subf %208, %209 : vector<1x128xf32>
    %211 = arith.mulf %11, %210 : vector<1x128xf32>
    %212 = arith.mulf %19, %164 : vector<1x128xf32>
    %213 = arith.addf %211, %212 : vector<1x128xf32>
    %c2_56 = arith.constant 2 : index
    %c0_57 = arith.constant 0 : index
    %214 = vector.load %arg14[%c2_56, %c0_57] : memref<16x128xf32, #tpu.memory_space<vmem>>, vector<1x128xf32>
    tpu.vector_store %arg14[%c2_56, %c0_57], %213 {strides = array<i32>} : memref<16x128xf32, #tpu.memory_space<vmem>>, vector<1x128xf32>,
    %215 = arith.mulf %11, %164 : vector<1x128xf32>
    %216 = arith.mulf %19, %210 : vector<1x128xf32>
    %217 = arith.subf %215, %216 : vector<1x128xf32>
    %c2_58 = arith.constant 2 : index
    %c0_59 = arith.constant 0 : index
    %218 = vector.load %arg15[%c2_58, %c0_59] : memref<16x128xf32, #tpu.memory_space<vmem>>, vector<1x128xf32>
    tpu.vector_store %arg15[%c2_58, %c0_59], %217 {strides = array<i32>} : memref<16x128xf32, #tpu.memory_space<vmem>>, vector<1x128xf32>,
    %219 = vector.broadcast %1 : f32 to vector<1x128xf32>
    %220 = arith.mulf %204, %219 : vector<1x128xf32>
    %cst_60 = arith.constant 2.59849272E-4 : f32
    %221 = vector.broadcast %cst_60 : f32 to vector<1x128xf32>
    %222 = arith.cmpf ogt, %163, %221 : vector<1x128xf32>
    %cst_61 = arith.constant 1.000000e+00 : f32
    %223 = vector.broadcast %cst_61 : f32 to vector<1x128xf32>
    %224 = arith.select %222, %220, %223 : vector<1x128xi1>, vector<1x128xf32>
    %225 = math.log %224 : vector<1x128xf32>
    %cst_62 = arith.constant 0.000000e+00 : f32
    %226 = vector.broadcast %cst_62 : f32 to vector<1x128xf32>
    %227 = arith.select %222, %225, %226 : vector<1x128xi1>, vector<1x128xf32>
    %228 = arith.addf %162, %227 : vector<1x128xf32>
    %229 = vector.extract_strided_slice %3 {offsets = [3, 0], sizes = [1, 128], strides = [1, 1]} : vector<16x128xf32> to vector<1x128xf32>
    %230 = vector.extract_strided_slice %4 {offsets = [3, 0], sizes = [1, 128], strides = [1, 1]} : vector<16x128xf32> to vector<1x128xf32>
    %231 = vector.broadcast %21 : vector<16x1xf32> to vector<16x128xf32>
    %232 = vector.broadcast %229 : vector<1x128xf32> to vector<16x128xf32>
    %233 = arith.mulf %231, %232 : vector<16x128xf32>
    %234 = vector.broadcast %22 : vector<16x1xf32> to vector<16x128xf32>
    %235 = arith.addf %233, %234 : vector<16x128xf32>
    %236 = math.tanh %235 : vector<16x128xf32>
    %237 = arith.mulf %236, %236 : vector<16x128xf32>
    %238 = arith.truncf %236 : vector<16x128xf32> to vector<16x128xbf16>
    %cst_63 = arith.constant dense<0.000000e+00> : vector<16x128xf32>
    %239 = tpu.matmul %27, %238, %cst_63 {dimension_numbers = #tpu.dot_dimension_numbers<[1], [0], [0], [1], [0, 0, 1, 1], [], []>} : vector<16x16xbf16>, vector<16x128xbf16>, vector<16x128xf32> -> vector<16x128xf32>
    %240 = arith.truncf %237 : vector<16x128xf32> to vector<16x128xbf16>
    %cst_64 = arith.constant dense<0.000000e+00> : vector<16x128xf32>
    %241 = tpu.matmul %29, %240, %cst_64 {dimension_numbers = #tpu.dot_dimension_numbers<[1], [0], [0], [1], [0, 0, 1, 1], [], []>} : vector<16x16xbf16>, vector<16x128xbf16>, vector<16x128xf32> -> vector<16x128xf32>
    %242 = vector.broadcast %23 : vector<16x1xf32> to vector<16x128xf32>
    %243 = arith.addf %239, %242 : vector<16x128xf32>
    %244 = math.tanh %243 : vector<16x128xf32>
    %245 = vector.broadcast %25 : vector<16x1xf32> to vector<16x128xf32>
    %246 = arith.subf %245, %241 : vector<16x128xf32>
    %247 = arith.mulf %244, %244 : vector<16x128xf32>
    %cst_65 = arith.constant 1.000000e+00 : f32
    %248 = vector.broadcast %cst_65 : f32 to vector<16x128xf32>
    %249 = arith.subf %248, %247 : vector<16x128xf32>
    %250 = arith.mulf %249, %246 : vector<16x128xf32>
    %251 = vector.broadcast %24 : vector<16x1xf32> to vector<16x128xf32>
    %252 = arith.mulf %251, %244 : vector<16x128xf32>
    %cst_66 = arith.constant dense<0.000000e+00> : vector<128xf32>
    %253 = vector.multi_reduction <add>, %252, %cst_66 [0] : vector<16x128xf32> to vector<128xf32>
    %254 = vector.shape_cast %253 : vector<128xf32> to vector<1x128xf32>
    %255 = vector.broadcast %2 : f32 to vector<1x128xf32>
    %256 = arith.addf %254, %255 : vector<1x128xf32>
    %257 = vector.broadcast %24 : vector<16x1xf32> to vector<16x128xf32>
    %258 = arith.mulf %257, %250 : vector<16x128xf32>
    %cst_67 = arith.constant dense<0.000000e+00> : vector<128xf32>
    %259 = vector.multi_reduction <add>, %258, %cst_67 [0] : vector<16x128xf32> to vector<128xf32>
    %260 = vector.shape_cast %259 : vector<128xf32> to vector<1x128xf32>
    %261 = math.tanh %256 : vector<1x128xf32>
    %cst_68 = arith.constant 1.000000e-01 : f32
    %262 = vector.broadcast %cst_68 : f32 to vector<1x128xf32>
    %263 = arith.mulf %262, %229 : vector<1x128xf32>
    %264 = arith.addf %261, %263 : vector<1x128xf32>
    %265 = arith.mulf %261, %261 : vector<1x128xf32>
    %cst_69 = arith.constant 1.000000e+00 : f32
    %266 = vector.broadcast %cst_69 : f32 to vector<1x128xf32>
    %267 = arith.subf %266, %265 : vector<1x128xf32>
    %268 = arith.mulf %267, %260 : vector<1x128xf32>
    %cst_70 = arith.constant 1.000000e-01 : f32
    %269 = vector.broadcast %cst_70 : f32 to vector<1x128xf32>
    %270 = arith.addf %268, %269 : vector<1x128xf32>
    %271 = vector.broadcast %0 : f32 to vector<1x128xf32>
    %272 = arith.subf %264, %271 : vector<1x128xf32>
    %273 = vector.broadcast %1 : f32 to vector<1x128xf32>
    %274 = arith.mulf %273, %272 : vector<1x128xf32>
    %cst_71 = arith.constant 1.000000e+00 : f32
    %275 = vector.broadcast %cst_71 : f32 to vector<1x128xf32>
    %276 = arith.subf %274, %275 : vector<1x128xf32>
    %277 = arith.mulf %11, %276 : vector<1x128xf32>
    %278 = arith.mulf %19, %230 : vector<1x128xf32>
    %279 = arith.addf %277, %278 : vector<1x128xf32>
    %c3 = arith.constant 3 : index
    %c0_72 = arith.constant 0 : index
    %280 = vector.load %arg14[%c3, %c0_72] : memref<16x128xf32, #tpu.memory_space<vmem>>, vector<1x128xf32>
    tpu.vector_store %arg14[%c3, %c0_72], %279 {strides = array<i32>} : memref<16x128xf32, #tpu.memory_space<vmem>>, vector<1x128xf32>,
    %281 = arith.mulf %11, %230 : vector<1x128xf32>
    %282 = arith.mulf %19, %276 : vector<1x128xf32>
    %283 = arith.subf %281, %282 : vector<1x128xf32>
    %c3_73 = arith.constant 3 : index
    %c0_74 = arith.constant 0 : index
    %284 = vector.load %arg15[%c3_73, %c0_74] : memref<16x128xf32, #tpu.memory_space<vmem>>, vector<1x128xf32>
    tpu.vector_store %arg15[%c3_73, %c0_74], %283 {strides = array<i32>} : memref<16x128xf32, #tpu.memory_space<vmem>>, vector<1x128xf32>,
    %285 = vector.broadcast %1 : f32 to vector<1x128xf32>
    %286 = arith.mulf %270, %285 : vector<1x128xf32>
    %cst_75 = arith.constant 2.59849272E-4 : f32
    %287 = vector.broadcast %cst_75 : f32 to vector<1x128xf32>
    %288 = arith.cmpf ogt, %229, %287 : vector<1x128xf32>
    %cst_76 = arith.constant 1.000000e+00 : f32
    %289 = vector.broadcast %cst_76 : f32 to vector<1x128xf32>
    %290 = arith.select %288, %286, %289 : vector<1x128xi1>, vector<1x128xf32>
    %291 = math.log %290 : vector<1x128xf32>
    %cst_77 = arith.constant 0.000000e+00 : f32
    %292 = vector.broadcast %cst_77 : f32 to vector<1x128xf32>
    %293 = arith.select %288, %291, %292 : vector<1x128xi1>, vector<1x128xf32>
    %294 = arith.addf %228, %293 : vector<1x128xf32>
    %295 = vector.extract_strided_slice %3 {offsets = [4, 0], sizes = [1, 128], strides = [1, 1]} : vector<16x128xf32> to vector<1x128xf32>
    %296 = vector.extract_strided_slice %4 {offsets = [4, 0], sizes = [1, 128], strides = [1, 1]} : vector<16x128xf32> to vector<1x128xf32>
    %297 = vector.broadcast %21 : vector<16x1xf32> to vector<16x128xf32>
    %298 = vector.broadcast %295 : vector<1x128xf32> to vector<16x128xf32>
    %299 = arith.mulf %297, %298 : vector<16x128xf32>
    %300 = vector.broadcast %22 : vector<16x1xf32> to vector<16x128xf32>
    %301 = arith.addf %299, %300 : vector<16x128xf32>
    %302 = math.tanh %301 : vector<16x128xf32>
    %303 = arith.mulf %302, %302 : vector<16x128xf32>
    %304 = arith.truncf %302 : vector<16x128xf32> to vector<16x128xbf16>
    %cst_78 = arith.constant dense<0.000000e+00> : vector<16x128xf32>
    %305 = tpu.matmul %27, %304, %cst_78 {dimension_numbers = #tpu.dot_dimension_numbers<[1], [0], [0], [1], [0, 0, 1, 1], [], []>} : vector<16x16xbf16>, vector<16x128xbf16>, vector<16x128xf32> -> vector<16x128xf32>
    %306 = arith.truncf %303 : vector<16x128xf32> to vector<16x128xbf16>
    %cst_79 = arith.constant dense<0.000000e+00> : vector<16x128xf32>
    %307 = tpu.matmul %29, %306, %cst_79 {dimension_numbers = #tpu.dot_dimension_numbers<[1], [0], [0], [1], [0, 0, 1, 1], [], []>} : vector<16x16xbf16>, vector<16x128xbf16>, vector<16x128xf32> -> vector<16x128xf32>
    %308 = vector.broadcast %23 : vector<16x1xf32> to vector<16x128xf32>
    %309 = arith.addf %305, %308 : vector<16x128xf32>
    %310 = math.tanh %309 : vector<16x128xf32>
    %311 = vector.broadcast %25 : vector<16x1xf32> to vector<16x128xf32>
    %312 = arith.subf %311, %307 : vector<16x128xf32>
    %313 = arith.mulf %310, %310 : vector<16x128xf32>
    %cst_80 = arith.constant 1.000000e+00 : f32
    %314 = vector.broadcast %cst_80 : f32 to vector<16x128xf32>
    %315 = arith.subf %314, %313 : vector<16x128xf32>
    %316 = arith.mulf %315, %312 : vector<16x128xf32>
    %317 = vector.broadcast %24 : vector<16x1xf32> to vector<16x128xf32>
    %318 = arith.mulf %317, %310 : vector<16x128xf32>
    %cst_81 = arith.constant dense<0.000000e+00> : vector<128xf32>
    %319 = vector.multi_reduction <add>, %318, %cst_81 [0] : vector<16x128xf32> to vector<128xf32>
    %320 = vector.shape_cast %319 : vector<128xf32> to vector<1x128xf32>
    %321 = vector.broadcast %2 : f32 to vector<1x128xf32>
    %322 = arith.addf %320, %321 : vector<1x128xf32>
    %323 = vector.broadcast %24 : vector<16x1xf32> to vector<16x128xf32>
    %324 = arith.mulf %323, %316 : vector<16x128xf32>
    %cst_82 = arith.constant dense<0.000000e+00> : vector<128xf32>
    %325 = vector.multi_reduction <add>, %324, %cst_82 [0] : vector<16x128xf32> to vector<128xf32>
    %326 = vector.shape_cast %325 : vector<128xf32> to vector<1x128xf32>
    %327 = math.tanh %322 : vector<1x128xf32>
    %cst_83 = arith.constant 1.000000e-01 : f32
    %328 = vector.broadcast %cst_83 : f32 to vector<1x128xf32>
    %329 = arith.mulf %328, %295 : vector<1x128xf32>
    %330 = arith.addf %327, %329 : vector<1x128xf32>
    %331 = arith.mulf %327, %327 : vector<1x128xf32>
    %cst_84 = arith.constant 1.000000e+00 : f32
    %332 = vector.broadcast %cst_84 : f32 to vector<1x128xf32>
    %333 = arith.subf %332, %331 : vector<1x128xf32>
    %334 = arith.mulf %333, %326 : vector<1x128xf32>
    %cst_85 = arith.constant 1.000000e-01 : f32
    %335 = vector.broadcast %cst_85 : f32 to vector<1x128xf32>
    %336 = arith.addf %334, %335 : vector<1x128xf32>
    %337 = vector.broadcast %0 : f32 to vector<1x128xf32>
    %338 = arith.subf %330, %337 : vector<1x128xf32>
    %339 = vector.broadcast %1 : f32 to vector<1x128xf32>
    %340 = arith.mulf %339, %338 : vector<1x128xf32>
    %cst_86 = arith.constant 1.000000e+00 : f32
    %341 = vector.broadcast %cst_86 : f32 to vector<1x128xf32>
    %342 = arith.subf %340, %341 : vector<1x128xf32>
    %343 = arith.mulf %11, %342 : vector<1x128xf32>
    %344 = arith.mulf %19, %296 : vector<1x128xf32>
    %345 = arith.addf %343, %344 : vector<1x128xf32>
    %c4 = arith.constant 4 : index
    %c0_87 = arith.constant 0 : index
    %346 = vector.load %arg14[%c4, %c0_87] : memref<16x128xf32, #tpu.memory_space<vmem>>, vector<1x128xf32>
    tpu.vector_store %arg14[%c4, %c0_87], %345 {strides = array<i32>} : memref<16x128xf32, #tpu.memory_space<vmem>>, vector<1x128xf32>,
    %347 = arith.mulf %11, %296 : vector<1x128xf32>
    %348 = arith.mulf %19, %342 : vector<1x128xf32>
    %349 = arith.subf %347, %348 : vector<1x128xf32>
    %c4_88 = arith.constant 4 : index
    %c0_89 = arith.constant 0 : index
    %350 = vector.load %arg15[%c4_88, %c0_89] : memref<16x128xf32, #tpu.memory_space<vmem>>, vector<1x128xf32>
    tpu.vector_store %arg15[%c4_88, %c0_89], %349 {strides = array<i32>} : memref<16x128xf32, #tpu.memory_space<vmem>>, vector<1x128xf32>,
    %351 = vector.broadcast %1 : f32 to vector<1x128xf32>
    %352 = arith.mulf %336, %351 : vector<1x128xf32>
    %cst_90 = arith.constant 2.59849272E-4 : f32
    %353 = vector.broadcast %cst_90 : f32 to vector<1x128xf32>
    %354 = arith.cmpf ogt, %295, %353 : vector<1x128xf32>
    %cst_91 = arith.constant 1.000000e+00 : f32
    %355 = vector.broadcast %cst_91 : f32 to vector<1x128xf32>
    %356 = arith.select %354, %352, %355 : vector<1x128xi1>, vector<1x128xf32>
    %357 = math.log %356 : vector<1x128xf32>
    %cst_92 = arith.constant 0.000000e+00 : f32
    %358 = vector.broadcast %cst_92 : f32 to vector<1x128xf32>
    %359 = arith.select %354, %357, %358 : vector<1x128xi1>, vector<1x128xf32>
    %360 = arith.addf %294, %359 : vector<1x128xf32>
    %361 = vector.extract_strided_slice %3 {offsets = [5, 0], sizes = [1, 128], strides = [1, 1]} : vector<16x128xf32> to vector<1x128xf32>
    %362 = vector.extract_strided_slice %4 {offsets = [5, 0], sizes = [1, 128], strides = [1, 1]} : vector<16x128xf32> to vector<1x128xf32>
    %363 = vector.broadcast %21 : vector<16x1xf32> to vector<16x128xf32>
    %364 = vector.broadcast %361 : vector<1x128xf32> to vector<16x128xf32>
    %365 = arith.mulf %363, %364 : vector<16x128xf32>
    %366 = vector.broadcast %22 : vector<16x1xf32> to vector<16x128xf32>
    %367 = arith.addf %365, %366 : vector<16x128xf32>
    %368 = math.tanh %367 : vector<16x128xf32>
    %369 = arith.mulf %368, %368 : vector<16x128xf32>
    %370 = arith.truncf %368 : vector<16x128xf32> to vector<16x128xbf16>
    %cst_93 = arith.constant dense<0.000000e+00> : vector<16x128xf32>
    %371 = tpu.matmul %27, %370, %cst_93 {dimension_numbers = #tpu.dot_dimension_numbers<[1], [0], [0], [1], [0, 0, 1, 1], [], []>} : vector<16x16xbf16>, vector<16x128xbf16>, vector<16x128xf32> -> vector<16x128xf32>
    %372 = arith.truncf %369 : vector<16x128xf32> to vector<16x128xbf16>
    %cst_94 = arith.constant dense<0.000000e+00> : vector<16x128xf32>
    %373 = tpu.matmul %29, %372, %cst_94 {dimension_numbers = #tpu.dot_dimension_numbers<[1], [0], [0], [1], [0, 0, 1, 1], [], []>} : vector<16x16xbf16>, vector<16x128xbf16>, vector<16x128xf32> -> vector<16x128xf32>
    %374 = vector.broadcast %23 : vector<16x1xf32> to vector<16x128xf32>
    %375 = arith.addf %371, %374 : vector<16x128xf32>
    %376 = math.tanh %375 : vector<16x128xf32>
    %377 = vector.broadcast %25 : vector<16x1xf32> to vector<16x128xf32>
    %378 = arith.subf %377, %373 : vector<16x128xf32>
    %379 = arith.mulf %376, %376 : vector<16x128xf32>
    %cst_95 = arith.constant 1.000000e+00 : f32
    %380 = vector.broadcast %cst_95 : f32 to vector<16x128xf32>
    %381 = arith.subf %380, %379 : vector<16x128xf32>
    %382 = arith.mulf %381, %378 : vector<16x128xf32>
    %383 = vector.broadcast %24 : vector<16x1xf32> to vector<16x128xf32>
    %384 = arith.mulf %383, %376 : vector<16x128xf32>
    %cst_96 = arith.constant dense<0.000000e+00> : vector<128xf32>
    %385 = vector.multi_reduction <add>, %384, %cst_96 [0] : vector<16x128xf32> to vector<128xf32>
    %386 = vector.shape_cast %385 : vector<128xf32> to vector<1x128xf32>
    %387 = vector.broadcast %2 : f32 to vector<1x128xf32>
    %388 = arith.addf %386, %387 : vector<1x128xf32>
    %389 = vector.broadcast %24 : vector<16x1xf32> to vector<16x128xf32>
    %390 = arith.mulf %389, %382 : vector<16x128xf32>
    %cst_97 = arith.constant dense<0.000000e+00> : vector<128xf32>
    %391 = vector.multi_reduction <add>, %390, %cst_97 [0] : vector<16x128xf32> to vector<128xf32>
    %392 = vector.shape_cast %391 : vector<128xf32> to vector<1x128xf32>
    %393 = math.tanh %388 : vector<1x128xf32>
    %cst_98 = arith.constant 1.000000e-01 : f32
    %394 = vector.broadcast %cst_98 : f32 to vector<1x128xf32>
    %395 = arith.mulf %394, %361 : vector<1x128xf32>
    %396 = arith.addf %393, %395 : vector<1x128xf32>
    %397 = arith.mulf %393, %393 : vector<1x128xf32>
    %cst_99 = arith.constant 1.000000e+00 : f32
    %398 = vector.broadcast %cst_99 : f32 to vector<1x128xf32>
    %399 = arith.subf %398, %397 : vector<1x128xf32>
    %400 = arith.mulf %399, %392 : vector<1x128xf32>
    %cst_100 = arith.constant 1.000000e-01 : f32
    %401 = vector.broadcast %cst_100 : f32 to vector<1x128xf32>
    %402 = arith.addf %400, %401 : vector<1x128xf32>
    %403 = vector.broadcast %0 : f32 to vector<1x128xf32>
    %404 = arith.subf %396, %403 : vector<1x128xf32>
    %405 = vector.broadcast %1 : f32 to vector<1x128xf32>
    %406 = arith.mulf %405, %404 : vector<1x128xf32>
    %cst_101 = arith.constant 1.000000e+00 : f32
    %407 = vector.broadcast %cst_101 : f32 to vector<1x128xf32>
    %408 = arith.subf %406, %407 : vector<1x128xf32>
    %409 = arith.mulf %11, %408 : vector<1x128xf32>
    %410 = arith.mulf %19, %362 : vector<1x128xf32>
    %411 = arith.addf %409, %410 : vector<1x128xf32>
    %c5 = arith.constant 5 : index
    %c0_102 = arith.constant 0 : index
    %412 = vector.load %arg14[%c5, %c0_102] : memref<16x128xf32, #tpu.memory_space<vmem>>, vector<1x128xf32>
    tpu.vector_store %arg14[%c5, %c0_102], %411 {strides = array<i32>} : memref<16x128xf32, #tpu.memory_space<vmem>>, vector<1x128xf32>,
    %413 = arith.mulf %11, %362 : vector<1x128xf32>
    %414 = arith.mulf %19, %408 : vector<1x128xf32>
    %415 = arith.subf %413, %414 : vector<1x128xf32>
    %c5_103 = arith.constant 5 : index
    %c0_104 = arith.constant 0 : index
    %416 = vector.load %arg15[%c5_103, %c0_104] : memref<16x128xf32, #tpu.memory_space<vmem>>, vector<1x128xf32>
    tpu.vector_store %arg15[%c5_103, %c0_104], %415 {strides = array<i32>} : memref<16x128xf32, #tpu.memory_space<vmem>>, vector<1x128xf32>,
    %417 = vector.broadcast %1 : f32 to vector<1x128xf32>
    %418 = arith.mulf %402, %417 : vector<1x128xf32>
    %cst_105 = arith.constant 2.59849272E-4 : f32
    %419 = vector.broadcast %cst_105 : f32 to vector<1x128xf32>
    %420 = arith.cmpf ogt, %361, %419 : vector<1x128xf32>
    %cst_106 = arith.constant 1.000000e+00 : f32
    %421 = vector.broadcast %cst_106 : f32 to vector<1x128xf32>
    %422 = arith.select %420, %418, %421 : vector<1x128xi1>, vector<1x128xf32>
    %423 = math.log %422 : vector<1x128xf32>
    %cst_107 = arith.constant 0.000000e+00 : f32
    %424 = vector.broadcast %cst_107 : f32 to vector<1x128xf32>
    %425 = arith.select %420, %423, %424 : vector<1x128xi1>, vector<1x128xf32>
    %426 = arith.addf %360, %425 : vector<1x128xf32>
    %427 = vector.extract_strided_slice %3 {offsets = [6, 0], sizes = [1, 128], strides = [1, 1]} : vector<16x128xf32> to vector<1x128xf32>
    %428 = vector.extract_strided_slice %4 {offsets = [6, 0], sizes = [1, 128], strides = [1, 1]} : vector<16x128xf32> to vector<1x128xf32>
    %429 = vector.broadcast %21 : vector<16x1xf32> to vector<16x128xf32>
    %430 = vector.broadcast %427 : vector<1x128xf32> to vector<16x128xf32>
    %431 = arith.mulf %429, %430 : vector<16x128xf32>
    %432 = vector.broadcast %22 : vector<16x1xf32> to vector<16x128xf32>
    %433 = arith.addf %431, %432 : vector<16x128xf32>
    %434 = math.tanh %433 : vector<16x128xf32>
    %435 = arith.mulf %434, %434 : vector<16x128xf32>
    %436 = arith.truncf %434 : vector<16x128xf32> to vector<16x128xbf16>
    %cst_108 = arith.constant dense<0.000000e+00> : vector<16x128xf32>
    %437 = tpu.matmul %27, %436, %cst_108 {dimension_numbers = #tpu.dot_dimension_numbers<[1], [0], [0], [1], [0, 0, 1, 1], [], []>} : vector<16x16xbf16>, vector<16x128xbf16>, vector<16x128xf32> -> vector<16x128xf32>
    %438 = arith.truncf %435 : vector<16x128xf32> to vector<16x128xbf16>
    %cst_109 = arith.constant dense<0.000000e+00> : vector<16x128xf32>
    %439 = tpu.matmul %29, %438, %cst_109 {dimension_numbers = #tpu.dot_dimension_numbers<[1], [0], [0], [1], [0, 0, 1, 1], [], []>} : vector<16x16xbf16>, vector<16x128xbf16>, vector<16x128xf32> -> vector<16x128xf32>
    %440 = vector.broadcast %23 : vector<16x1xf32> to vector<16x128xf32>
    %441 = arith.addf %437, %440 : vector<16x128xf32>
    %442 = math.tanh %441 : vector<16x128xf32>
    %443 = vector.broadcast %25 : vector<16x1xf32> to vector<16x128xf32>
    %444 = arith.subf %443, %439 : vector<16x128xf32>
    %445 = arith.mulf %442, %442 : vector<16x128xf32>
    %cst_110 = arith.constant 1.000000e+00 : f32
    %446 = vector.broadcast %cst_110 : f32 to vector<16x128xf32>
    %447 = arith.subf %446, %445 : vector<16x128xf32>
    %448 = arith.mulf %447, %444 : vector<16x128xf32>
    %449 = vector.broadcast %24 : vector<16x1xf32> to vector<16x128xf32>
    %450 = arith.mulf %449, %442 : vector<16x128xf32>
    %cst_111 = arith.constant dense<0.000000e+00> : vector<128xf32>
    %451 = vector.multi_reduction <add>, %450, %cst_111 [0] : vector<16x128xf32> to vector<128xf32>
    %452 = vector.shape_cast %451 : vector<128xf32> to vector<1x128xf32>
    %453 = vector.broadcast %2 : f32 to vector<1x128xf32>
    %454 = arith.addf %452, %453 : vector<1x128xf32>
    %455 = vector.broadcast %24 : vector<16x1xf32> to vector<16x128xf32>
    %456 = arith.mulf %455, %448 : vector<16x128xf32>
    %cst_112 = arith.constant dense<0.000000e+00> : vector<128xf32>
    %457 = vector.multi_reduction <add>, %456, %cst_112 [0] : vector<16x128xf32> to vector<128xf32>
    %458 = vector.shape_cast %457 : vector<128xf32> to vector<1x128xf32>
    %459 = math.tanh %454 : vector<1x128xf32>
    %cst_113 = arith.constant 1.000000e-01 : f32
    %460 = vector.broadcast %cst_113 : f32 to vector<1x128xf32>
    %461 = arith.mulf %460, %427 : vector<1x128xf32>
    %462 = arith.addf %459, %461 : vector<1x128xf32>
    %463 = arith.mulf %459, %459 : vector<1x128xf32>
    %cst_114 = arith.constant 1.000000e+00 : f32
    %464 = vector.broadcast %cst_114 : f32 to vector<1x128xf32>
    %465 = arith.subf %464, %463 : vector<1x128xf32>
    %466 = arith.mulf %465, %458 : vector<1x128xf32>
    %cst_115 = arith.constant 1.000000e-01 : f32
    %467 = vector.broadcast %cst_115 : f32 to vector<1x128xf32>
    %468 = arith.addf %466, %467 : vector<1x128xf32>
    %469 = vector.broadcast %0 : f32 to vector<1x128xf32>
    %470 = arith.subf %462, %469 : vector<1x128xf32>
    %471 = vector.broadcast %1 : f32 to vector<1x128xf32>
    %472 = arith.mulf %471, %470 : vector<1x128xf32>
    %cst_116 = arith.constant 1.000000e+00 : f32
    %473 = vector.broadcast %cst_116 : f32 to vector<1x128xf32>
    %474 = arith.subf %472, %473 : vector<1x128xf32>
    %475 = arith.mulf %11, %474 : vector<1x128xf32>
    %476 = arith.mulf %19, %428 : vector<1x128xf32>
    %477 = arith.addf %475, %476 : vector<1x128xf32>
    %c6 = arith.constant 6 : index
    %c0_117 = arith.constant 0 : index
    %478 = vector.load %arg14[%c6, %c0_117] : memref<16x128xf32, #tpu.memory_space<vmem>>, vector<1x128xf32>
    tpu.vector_store %arg14[%c6, %c0_117], %477 {strides = array<i32>} : memref<16x128xf32, #tpu.memory_space<vmem>>, vector<1x128xf32>,
    %479 = arith.mulf %11, %428 : vector<1x128xf32>
    %480 = arith.mulf %19, %474 : vector<1x128xf32>
    %481 = arith.subf %479, %480 : vector<1x128xf32>
    %c6_118 = arith.constant 6 : index
    %c0_119 = arith.constant 0 : index
    %482 = vector.load %arg15[%c6_118, %c0_119] : memref<16x128xf32, #tpu.memory_space<vmem>>, vector<1x128xf32>
    tpu.vector_store %arg15[%c6_118, %c0_119], %481 {strides = array<i32>} : memref<16x128xf32, #tpu.memory_space<vmem>>, vector<1x128xf32>,
    %483 = vector.broadcast %1 : f32 to vector<1x128xf32>
    %484 = arith.mulf %468, %483 : vector<1x128xf32>
    %cst_120 = arith.constant 2.59849272E-4 : f32
    %485 = vector.broadcast %cst_120 : f32 to vector<1x128xf32>
    %486 = arith.cmpf ogt, %427, %485 : vector<1x128xf32>
    %cst_121 = arith.constant 1.000000e+00 : f32
    %487 = vector.broadcast %cst_121 : f32 to vector<1x128xf32>
    %488 = arith.select %486, %484, %487 : vector<1x128xi1>, vector<1x128xf32>
    %489 = math.log %488 : vector<1x128xf32>
    %cst_122 = arith.constant 0.000000e+00 : f32
    %490 = vector.broadcast %cst_122 : f32 to vector<1x128xf32>
    %491 = arith.select %486, %489, %490 : vector<1x128xi1>, vector<1x128xf32>
    %492 = arith.addf %426, %491 : vector<1x128xf32>
    %493 = vector.extract_strided_slice %3 {offsets = [7, 0], sizes = [1, 128], strides = [1, 1]} : vector<16x128xf32> to vector<1x128xf32>
    %494 = vector.extract_strided_slice %4 {offsets = [7, 0], sizes = [1, 128], strides = [1, 1]} : vector<16x128xf32> to vector<1x128xf32>
    %495 = vector.broadcast %21 : vector<16x1xf32> to vector<16x128xf32>
    %496 = vector.broadcast %493 : vector<1x128xf32> to vector<16x128xf32>
    %497 = arith.mulf %495, %496 : vector<16x128xf32>
    %498 = vector.broadcast %22 : vector<16x1xf32> to vector<16x128xf32>
    %499 = arith.addf %497, %498 : vector<16x128xf32>
    %500 = math.tanh %499 : vector<16x128xf32>
    %501 = arith.mulf %500, %500 : vector<16x128xf32>
    %502 = arith.truncf %500 : vector<16x128xf32> to vector<16x128xbf16>
    %cst_123 = arith.constant dense<0.000000e+00> : vector<16x128xf32>
    %503 = tpu.matmul %27, %502, %cst_123 {dimension_numbers = #tpu.dot_dimension_numbers<[1], [0], [0], [1], [0, 0, 1, 1], [], []>} : vector<16x16xbf16>, vector<16x128xbf16>, vector<16x128xf32> -> vector<16x128xf32>
    %504 = arith.truncf %501 : vector<16x128xf32> to vector<16x128xbf16>
    %cst_124 = arith.constant dense<0.000000e+00> : vector<16x128xf32>
    %505 = tpu.matmul %29, %504, %cst_124 {dimension_numbers = #tpu.dot_dimension_numbers<[1], [0], [0], [1], [0, 0, 1, 1], [], []>} : vector<16x16xbf16>, vector<16x128xbf16>, vector<16x128xf32> -> vector<16x128xf32>
    %506 = vector.broadcast %23 : vector<16x1xf32> to vector<16x128xf32>
    %507 = arith.addf %503, %506 : vector<16x128xf32>
    %508 = math.tanh %507 : vector<16x128xf32>
    %509 = vector.broadcast %25 : vector<16x1xf32> to vector<16x128xf32>
    %510 = arith.subf %509, %505 : vector<16x128xf32>
    %511 = arith.mulf %508, %508 : vector<16x128xf32>
    %cst_125 = arith.constant 1.000000e+00 : f32
    %512 = vector.broadcast %cst_125 : f32 to vector<16x128xf32>
    %513 = arith.subf %512, %511 : vector<16x128xf32>
    %514 = arith.mulf %513, %510 : vector<16x128xf32>
    %515 = vector.broadcast %24 : vector<16x1xf32> to vector<16x128xf32>
    %516 = arith.mulf %515, %508 : vector<16x128xf32>
    %cst_126 = arith.constant dense<0.000000e+00> : vector<128xf32>
    %517 = vector.multi_reduction <add>, %516, %cst_126 [0] : vector<16x128xf32> to vector<128xf32>
    %518 = vector.shape_cast %517 : vector<128xf32> to vector<1x128xf32>
    %519 = vector.broadcast %2 : f32 to vector<1x128xf32>
    %520 = arith.addf %518, %519 : vector<1x128xf32>
    %521 = vector.broadcast %24 : vector<16x1xf32> to vector<16x128xf32>
    %522 = arith.mulf %521, %514 : vector<16x128xf32>
    %cst_127 = arith.constant dense<0.000000e+00> : vector<128xf32>
    %523 = vector.multi_reduction <add>, %522, %cst_127 [0] : vector<16x128xf32> to vector<128xf32>
    %524 = vector.shape_cast %523 : vector<128xf32> to vector<1x128xf32>
    %525 = math.tanh %520 : vector<1x128xf32>
    %cst_128 = arith.constant 1.000000e-01 : f32
    %526 = vector.broadcast %cst_128 : f32 to vector<1x128xf32>
    %527 = arith.mulf %526, %493 : vector<1x128xf32>
    %528 = arith.addf %525, %527 : vector<1x128xf32>
    %529 = arith.mulf %525, %525 : vector<1x128xf32>
    %cst_129 = arith.constant 1.000000e+00 : f32
    %530 = vector.broadcast %cst_129 : f32 to vector<1x128xf32>
    %531 = arith.subf %530, %529 : vector<1x128xf32>
    %532 = arith.mulf %531, %524 : vector<1x128xf32>
    %cst_130 = arith.constant 1.000000e-01 : f32
    %533 = vector.broadcast %cst_130 : f32 to vector<1x128xf32>
    %534 = arith.addf %532, %533 : vector<1x128xf32>
    %535 = vector.broadcast %0 : f32 to vector<1x128xf32>
    %536 = arith.subf %528, %535 : vector<1x128xf32>
    %537 = vector.broadcast %1 : f32 to vector<1x128xf32>
    %538 = arith.mulf %537, %536 : vector<1x128xf32>
    %cst_131 = arith.constant 1.000000e+00 : f32
    %539 = vector.broadcast %cst_131 : f32 to vector<1x128xf32>
    %540 = arith.subf %538, %539 : vector<1x128xf32>
    %541 = arith.mulf %11, %540 : vector<1x128xf32>
    %542 = arith.mulf %19, %494 : vector<1x128xf32>
    %543 = arith.addf %541, %542 : vector<1x128xf32>
    %c7 = arith.constant 7 : index
    %c0_132 = arith.constant 0 : index
    %544 = vector.load %arg14[%c7, %c0_132] : memref<16x128xf32, #tpu.memory_space<vmem>>, vector<1x128xf32>
    tpu.vector_store %arg14[%c7, %c0_132], %543 {strides = array<i32>} : memref<16x128xf32, #tpu.memory_space<vmem>>, vector<1x128xf32>,
    %545 = arith.mulf %11, %494 : vector<1x128xf32>
    %546 = arith.mulf %19, %540 : vector<1x128xf32>
    %547 = arith.subf %545, %546 : vector<1x128xf32>
    %c7_133 = arith.constant 7 : index
    %c0_134 = arith.constant 0 : index
    %548 = vector.load %arg15[%c7_133, %c0_134] : memref<16x128xf32, #tpu.memory_space<vmem>>, vector<1x128xf32>
    tpu.vector_store %arg15[%c7_133, %c0_134], %547 {strides = array<i32>} : memref<16x128xf32, #tpu.memory_space<vmem>>, vector<1x128xf32>,
    %549 = vector.broadcast %1 : f32 to vector<1x128xf32>
    %550 = arith.mulf %534, %549 : vector<1x128xf32>
    %cst_135 = arith.constant 2.59849272E-4 : f32
    %551 = vector.broadcast %cst_135 : f32 to vector<1x128xf32>
    %552 = arith.cmpf ogt, %493, %551 : vector<1x128xf32>
    %cst_136 = arith.constant 1.000000e+00 : f32
    %553 = vector.broadcast %cst_136 : f32 to vector<1x128xf32>
    %554 = arith.select %552, %550, %553 : vector<1x128xi1>, vector<1x128xf32>
    %555 = math.log %554 : vector<1x128xf32>
    %cst_137 = arith.constant 0.000000e+00 : f32
    %556 = vector.broadcast %cst_137 : f32 to vector<1x128xf32>
    %557 = arith.select %552, %555, %556 : vector<1x128xi1>, vector<1x128xf32>
    %558 = arith.addf %492, %557 : vector<1x128xf32>
    %559 = vector.extract_strided_slice %3 {offsets = [8, 0], sizes = [1, 128], strides = [1, 1]} : vector<16x128xf32> to vector<1x128xf32>
    %560 = vector.extract_strided_slice %4 {offsets = [8, 0], sizes = [1, 128], strides = [1, 1]} : vector<16x128xf32> to vector<1x128xf32>
    %561 = vector.broadcast %21 : vector<16x1xf32> to vector<16x128xf32>
    %562 = vector.broadcast %559 : vector<1x128xf32> to vector<16x128xf32>
    %563 = arith.mulf %561, %562 : vector<16x128xf32>
    %564 = vector.broadcast %22 : vector<16x1xf32> to vector<16x128xf32>
    %565 = arith.addf %563, %564 : vector<16x128xf32>
    %566 = math.tanh %565 : vector<16x128xf32>
    %567 = arith.mulf %566, %566 : vector<16x128xf32>
    %568 = arith.truncf %566 : vector<16x128xf32> to vector<16x128xbf16>
    %cst_138 = arith.constant dense<0.000000e+00> : vector<16x128xf32>
    %569 = tpu.matmul %27, %568, %cst_138 {dimension_numbers = #tpu.dot_dimension_numbers<[1], [0], [0], [1], [0, 0, 1, 1], [], []>} : vector<16x16xbf16>, vector<16x128xbf16>, vector<16x128xf32> -> vector<16x128xf32>
    %570 = arith.truncf %567 : vector<16x128xf32> to vector<16x128xbf16>
    %cst_139 = arith.constant dense<0.000000e+00> : vector<16x128xf32>
    %571 = tpu.matmul %29, %570, %cst_139 {dimension_numbers = #tpu.dot_dimension_numbers<[1], [0], [0], [1], [0, 0, 1, 1], [], []>} : vector<16x16xbf16>, vector<16x128xbf16>, vector<16x128xf32> -> vector<16x128xf32>
    %572 = vector.broadcast %23 : vector<16x1xf32> to vector<16x128xf32>
    %573 = arith.addf %569, %572 : vector<16x128xf32>
    %574 = math.tanh %573 : vector<16x128xf32>
    %575 = vector.broadcast %25 : vector<16x1xf32> to vector<16x128xf32>
    %576 = arith.subf %575, %571 : vector<16x128xf32>
    %577 = arith.mulf %574, %574 : vector<16x128xf32>
    %cst_140 = arith.constant 1.000000e+00 : f32
    %578 = vector.broadcast %cst_140 : f32 to vector<16x128xf32>
    %579 = arith.subf %578, %577 : vector<16x128xf32>
    %580 = arith.mulf %579, %576 : vector<16x128xf32>
    %581 = vector.broadcast %24 : vector<16x1xf32> to vector<16x128xf32>
    %582 = arith.mulf %581, %574 : vector<16x128xf32>
    %cst_141 = arith.constant dense<0.000000e+00> : vector<128xf32>
    %583 = vector.multi_reduction <add>, %582, %cst_141 [0] : vector<16x128xf32> to vector<128xf32>
    %584 = vector.shape_cast %583 : vector<128xf32> to vector<1x128xf32>
    %585 = vector.broadcast %2 : f32 to vector<1x128xf32>
    %586 = arith.addf %584, %585 : vector<1x128xf32>
    %587 = vector.broadcast %24 : vector<16x1xf32> to vector<16x128xf32>
    %588 = arith.mulf %587, %580 : vector<16x128xf32>
    %cst_142 = arith.constant dense<0.000000e+00> : vector<128xf32>
    %589 = vector.multi_reduction <add>, %588, %cst_142 [0] : vector<16x128xf32> to vector<128xf32>
    %590 = vector.shape_cast %589 : vector<128xf32> to vector<1x128xf32>
    %591 = math.tanh %586 : vector<1x128xf32>
    %cst_143 = arith.constant 1.000000e-01 : f32
    %592 = vector.broadcast %cst_143 : f32 to vector<1x128xf32>
    %593 = arith.mulf %592, %559 : vector<1x128xf32>
    %594 = arith.addf %591, %593 : vector<1x128xf32>
    %595 = arith.mulf %591, %591 : vector<1x128xf32>
    %cst_144 = arith.constant 1.000000e+00 : f32
    %596 = vector.broadcast %cst_144 : f32 to vector<1x128xf32>
    %597 = arith.subf %596, %595 : vector<1x128xf32>
    %598 = arith.mulf %597, %590 : vector<1x128xf32>
    %cst_145 = arith.constant 1.000000e-01 : f32
    %599 = vector.broadcast %cst_145 : f32 to vector<1x128xf32>
    %600 = arith.addf %598, %599 : vector<1x128xf32>
    %601 = vector.broadcast %0 : f32 to vector<1x128xf32>
    %602 = arith.subf %594, %601 : vector<1x128xf32>
    %603 = vector.broadcast %1 : f32 to vector<1x128xf32>
    %604 = arith.mulf %603, %602 : vector<1x128xf32>
    %cst_146 = arith.constant 1.000000e+00 : f32
    %605 = vector.broadcast %cst_146 : f32 to vector<1x128xf32>
    %606 = arith.subf %604, %605 : vector<1x128xf32>
    %607 = arith.mulf %11, %606 : vector<1x128xf32>
    %608 = arith.mulf %19, %560 : vector<1x128xf32>
    %609 = arith.addf %607, %608 : vector<1x128xf32>
    %c8 = arith.constant 8 : index
    %c0_147 = arith.constant 0 : index
    %610 = vector.load %arg14[%c8, %c0_147] : memref<16x128xf32, #tpu.memory_space<vmem>>, vector<1x128xf32>
    tpu.vector_store %arg14[%c8, %c0_147], %609 {strides = array<i32>} : memref<16x128xf32, #tpu.memory_space<vmem>>, vector<1x128xf32>,
    %611 = arith.mulf %11, %560 : vector<1x128xf32>
    %612 = arith.mulf %19, %606 : vector<1x128xf32>
    %613 = arith.subf %611, %612 : vector<1x128xf32>
    %c8_148 = arith.constant 8 : index
    %c0_149 = arith.constant 0 : index
    %614 = vector.load %arg15[%c8_148, %c0_149] : memref<16x128xf32, #tpu.memory_space<vmem>>, vector<1x128xf32>
    tpu.vector_store %arg15[%c8_148, %c0_149], %613 {strides = array<i32>} : memref<16x128xf32, #tpu.memory_space<vmem>>, vector<1x128xf32>,
    %615 = vector.broadcast %1 : f32 to vector<1x128xf32>
    %616 = arith.mulf %600, %615 : vector<1x128xf32>
    %cst_150 = arith.constant 2.59849272E-4 : f32
    %617 = vector.broadcast %cst_150 : f32 to vector<1x128xf32>
    %618 = arith.cmpf ogt, %559, %617 : vector<1x128xf32>
    %cst_151 = arith.constant 1.000000e+00 : f32
    %619 = vector.broadcast %cst_151 : f32 to vector<1x128xf32>
    %620 = arith.select %618, %616, %619 : vector<1x128xi1>, vector<1x128xf32>
    %621 = math.log %620 : vector<1x128xf32>
    %cst_152 = arith.constant 0.000000e+00 : f32
    %622 = vector.broadcast %cst_152 : f32 to vector<1x128xf32>
    %623 = arith.select %618, %621, %622 : vector<1x128xi1>, vector<1x128xf32>
    %624 = arith.addf %558, %623 : vector<1x128xf32>
    %625 = vector.extract_strided_slice %3 {offsets = [9, 0], sizes = [1, 128], strides = [1, 1]} : vector<16x128xf32> to vector<1x128xf32>
    %626 = vector.extract_strided_slice %4 {offsets = [9, 0], sizes = [1, 128], strides = [1, 1]} : vector<16x128xf32> to vector<1x128xf32>
    %627 = vector.broadcast %21 : vector<16x1xf32> to vector<16x128xf32>
    %628 = vector.broadcast %625 : vector<1x128xf32> to vector<16x128xf32>
    %629 = arith.mulf %627, %628 : vector<16x128xf32>
    %630 = vector.broadcast %22 : vector<16x1xf32> to vector<16x128xf32>
    %631 = arith.addf %629, %630 : vector<16x128xf32>
    %632 = math.tanh %631 : vector<16x128xf32>
    %633 = arith.mulf %632, %632 : vector<16x128xf32>
    %634 = arith.truncf %632 : vector<16x128xf32> to vector<16x128xbf16>
    %cst_153 = arith.constant dense<0.000000e+00> : vector<16x128xf32>
    %635 = tpu.matmul %27, %634, %cst_153 {dimension_numbers = #tpu.dot_dimension_numbers<[1], [0], [0], [1], [0, 0, 1, 1], [], []>} : vector<16x16xbf16>, vector<16x128xbf16>, vector<16x128xf32> -> vector<16x128xf32>
    %636 = arith.truncf %633 : vector<16x128xf32> to vector<16x128xbf16>
    %cst_154 = arith.constant dense<0.000000e+00> : vector<16x128xf32>
    %637 = tpu.matmul %29, %636, %cst_154 {dimension_numbers = #tpu.dot_dimension_numbers<[1], [0], [0], [1], [0, 0, 1, 1], [], []>} : vector<16x16xbf16>, vector<16x128xbf16>, vector<16x128xf32> -> vector<16x128xf32>
    %638 = vector.broadcast %23 : vector<16x1xf32> to vector<16x128xf32>
    %639 = arith.addf %635, %638 : vector<16x128xf32>
    %640 = math.tanh %639 : vector<16x128xf32>
    %641 = vector.broadcast %25 : vector<16x1xf32> to vector<16x128xf32>
    %642 = arith.subf %641, %637 : vector<16x128xf32>
    %643 = arith.mulf %640, %640 : vector<16x128xf32>
    %cst_155 = arith.constant 1.000000e+00 : f32
    %644 = vector.broadcast %cst_155 : f32 to vector<16x128xf32>
    %645 = arith.subf %644, %643 : vector<16x128xf32>
    %646 = arith.mulf %645, %642 : vector<16x128xf32>
    %647 = vector.broadcast %24 : vector<16x1xf32> to vector<16x128xf32>
    %648 = arith.mulf %647, %640 : vector<16x128xf32>
    %cst_156 = arith.constant dense<0.000000e+00> : vector<128xf32>
    %649 = vector.multi_reduction <add>, %648, %cst_156 [0] : vector<16x128xf32> to vector<128xf32>
    %650 = vector.shape_cast %649 : vector<128xf32> to vector<1x128xf32>
    %651 = vector.broadcast %2 : f32 to vector<1x128xf32>
    %652 = arith.addf %650, %651 : vector<1x128xf32>
    %653 = vector.broadcast %24 : vector<16x1xf32> to vector<16x128xf32>
    %654 = arith.mulf %653, %646 : vector<16x128xf32>
    %cst_157 = arith.constant dense<0.000000e+00> : vector<128xf32>
    %655 = vector.multi_reduction <add>, %654, %cst_157 [0] : vector<16x128xf32> to vector<128xf32>
    %656 = vector.shape_cast %655 : vector<128xf32> to vector<1x128xf32>
    %657 = math.tanh %652 : vector<1x128xf32>
    %cst_158 = arith.constant 1.000000e-01 : f32
    %658 = vector.broadcast %cst_158 : f32 to vector<1x128xf32>
    %659 = arith.mulf %658, %625 : vector<1x128xf32>
    %660 = arith.addf %657, %659 : vector<1x128xf32>
    %661 = arith.mulf %657, %657 : vector<1x128xf32>
    %cst_159 = arith.constant 1.000000e+00 : f32
    %662 = vector.broadcast %cst_159 : f32 to vector<1x128xf32>
    %663 = arith.subf %662, %661 : vector<1x128xf32>
    %664 = arith.mulf %663, %656 : vector<1x128xf32>
    %cst_160 = arith.constant 1.000000e-01 : f32
    %665 = vector.broadcast %cst_160 : f32 to vector<1x128xf32>
    %666 = arith.addf %664, %665 : vector<1x128xf32>
    %667 = vector.broadcast %0 : f32 to vector<1x128xf32>
    %668 = arith.subf %660, %667 : vector<1x128xf32>
    %669 = vector.broadcast %1 : f32 to vector<1x128xf32>
    %670 = arith.mulf %669, %668 : vector<1x128xf32>
    %cst_161 = arith.constant 1.000000e+00 : f32
    %671 = vector.broadcast %cst_161 : f32 to vector<1x128xf32>
    %672 = arith.subf %670, %671 : vector<1x128xf32>
    %673 = arith.mulf %11, %672 : vector<1x128xf32>
    %674 = arith.mulf %19, %626 : vector<1x128xf32>
    %675 = arith.addf %673, %674 : vector<1x128xf32>
    %c9 = arith.constant 9 : index
    %c0_162 = arith.constant 0 : index
    %676 = vector.load %arg14[%c9, %c0_162] : memref<16x128xf32, #tpu.memory_space<vmem>>, vector<1x128xf32>
    tpu.vector_store %arg14[%c9, %c0_162], %675 {strides = array<i32>} : memref<16x128xf32, #tpu.memory_space<vmem>>, vector<1x128xf32>,
    %677 = arith.mulf %11, %626 : vector<1x128xf32>
    %678 = arith.mulf %19, %672 : vector<1x128xf32>
    %679 = arith.subf %677, %678 : vector<1x128xf32>
    %c9_163 = arith.constant 9 : index
    %c0_164 = arith.constant 0 : index
    %680 = vector.load %arg15[%c9_163, %c0_164] : memref<16x128xf32, #tpu.memory_space<vmem>>, vector<1x128xf32>
    tpu.vector_store %arg15[%c9_163, %c0_164], %679 {strides = array<i32>} : memref<16x128xf32, #tpu.memory_space<vmem>>, vector<1x128xf32>,
    %681 = vector.broadcast %1 : f32 to vector<1x128xf32>
    %682 = arith.mulf %666, %681 : vector<1x128xf32>
    %cst_165 = arith.constant 2.59849272E-4 : f32
    %683 = vector.broadcast %cst_165 : f32 to vector<1x128xf32>
    %684 = arith.cmpf ogt, %625, %683 : vector<1x128xf32>
    %cst_166 = arith.constant 1.000000e+00 : f32
    %685 = vector.broadcast %cst_166 : f32 to vector<1x128xf32>
    %686 = arith.select %684, %682, %685 : vector<1x128xi1>, vector<1x128xf32>
    %687 = math.log %686 : vector<1x128xf32>
    %cst_167 = arith.constant 0.000000e+00 : f32
    %688 = vector.broadcast %cst_167 : f32 to vector<1x128xf32>
    %689 = arith.select %684, %687, %688 : vector<1x128xi1>, vector<1x128xf32>
    %690 = arith.addf %624, %689 : vector<1x128xf32>
    %691 = vector.extract_strided_slice %3 {offsets = [10, 0], sizes = [1, 128], strides = [1, 1]} : vector<16x128xf32> to vector<1x128xf32>
    %692 = vector.extract_strided_slice %4 {offsets = [10, 0], sizes = [1, 128], strides = [1, 1]} : vector<16x128xf32> to vector<1x128xf32>
    %693 = vector.broadcast %21 : vector<16x1xf32> to vector<16x128xf32>
    %694 = vector.broadcast %691 : vector<1x128xf32> to vector<16x128xf32>
    %695 = arith.mulf %693, %694 : vector<16x128xf32>
    %696 = vector.broadcast %22 : vector<16x1xf32> to vector<16x128xf32>
    %697 = arith.addf %695, %696 : vector<16x128xf32>
    %698 = math.tanh %697 : vector<16x128xf32>
    %699 = arith.mulf %698, %698 : vector<16x128xf32>
    %700 = arith.truncf %698 : vector<16x128xf32> to vector<16x128xbf16>
    %cst_168 = arith.constant dense<0.000000e+00> : vector<16x128xf32>
    %701 = tpu.matmul %27, %700, %cst_168 {dimension_numbers = #tpu.dot_dimension_numbers<[1], [0], [0], [1], [0, 0, 1, 1], [], []>} : vector<16x16xbf16>, vector<16x128xbf16>, vector<16x128xf32> -> vector<16x128xf32>
    %702 = arith.truncf %699 : vector<16x128xf32> to vector<16x128xbf16>
    %cst_169 = arith.constant dense<0.000000e+00> : vector<16x128xf32>
    %703 = tpu.matmul %29, %702, %cst_169 {dimension_numbers = #tpu.dot_dimension_numbers<[1], [0], [0], [1], [0, 0, 1, 1], [], []>} : vector<16x16xbf16>, vector<16x128xbf16>, vector<16x128xf32> -> vector<16x128xf32>
    %704 = vector.broadcast %23 : vector<16x1xf32> to vector<16x128xf32>
    %705 = arith.addf %701, %704 : vector<16x128xf32>
    %706 = math.tanh %705 : vector<16x128xf32>
    %707 = vector.broadcast %25 : vector<16x1xf32> to vector<16x128xf32>
    %708 = arith.subf %707, %703 : vector<16x128xf32>
    %709 = arith.mulf %706, %706 : vector<16x128xf32>
    %cst_170 = arith.constant 1.000000e+00 : f32
    %710 = vector.broadcast %cst_170 : f32 to vector<16x128xf32>
    %711 = arith.subf %710, %709 : vector<16x128xf32>
    %712 = arith.mulf %711, %708 : vector<16x128xf32>
    %713 = vector.broadcast %24 : vector<16x1xf32> to vector<16x128xf32>
    %714 = arith.mulf %713, %706 : vector<16x128xf32>
    %cst_171 = arith.constant dense<0.000000e+00> : vector<128xf32>
    %715 = vector.multi_reduction <add>, %714, %cst_171 [0] : vector<16x128xf32> to vector<128xf32>
    %716 = vector.shape_cast %715 : vector<128xf32> to vector<1x128xf32>
    %717 = vector.broadcast %2 : f32 to vector<1x128xf32>
    %718 = arith.addf %716, %717 : vector<1x128xf32>
    %719 = vector.broadcast %24 : vector<16x1xf32> to vector<16x128xf32>
    %720 = arith.mulf %719, %712 : vector<16x128xf32>
    %cst_172 = arith.constant dense<0.000000e+00> : vector<128xf32>
    %721 = vector.multi_reduction <add>, %720, %cst_172 [0] : vector<16x128xf32> to vector<128xf32>
    %722 = vector.shape_cast %721 : vector<128xf32> to vector<1x128xf32>
    %723 = math.tanh %718 : vector<1x128xf32>
    %cst_173 = arith.constant 1.000000e-01 : f32
    %724 = vector.broadcast %cst_173 : f32 to vector<1x128xf32>
    %725 = arith.mulf %724, %691 : vector<1x128xf32>
    %726 = arith.addf %723, %725 : vector<1x128xf32>
    %727 = arith.mulf %723, %723 : vector<1x128xf32>
    %cst_174 = arith.constant 1.000000e+00 : f32
    %728 = vector.broadcast %cst_174 : f32 to vector<1x128xf32>
    %729 = arith.subf %728, %727 : vector<1x128xf32>
    %730 = arith.mulf %729, %722 : vector<1x128xf32>
    %cst_175 = arith.constant 1.000000e-01 : f32
    %731 = vector.broadcast %cst_175 : f32 to vector<1x128xf32>
    %732 = arith.addf %730, %731 : vector<1x128xf32>
    %733 = vector.broadcast %0 : f32 to vector<1x128xf32>
    %734 = arith.subf %726, %733 : vector<1x128xf32>
    %735 = vector.broadcast %1 : f32 to vector<1x128xf32>
    %736 = arith.mulf %735, %734 : vector<1x128xf32>
    %cst_176 = arith.constant 1.000000e+00 : f32
    %737 = vector.broadcast %cst_176 : f32 to vector<1x128xf32>
    %738 = arith.subf %736, %737 : vector<1x128xf32>
    %739 = arith.mulf %11, %738 : vector<1x128xf32>
    %740 = arith.mulf %19, %692 : vector<1x128xf32>
    %741 = arith.addf %739, %740 : vector<1x128xf32>
    %c10 = arith.constant 10 : index
    %c0_177 = arith.constant 0 : index
    %742 = vector.load %arg14[%c10, %c0_177] : memref<16x128xf32, #tpu.memory_space<vmem>>, vector<1x128xf32>
    tpu.vector_store %arg14[%c10, %c0_177], %741 {strides = array<i32>} : memref<16x128xf32, #tpu.memory_space<vmem>>, vector<1x128xf32>,
    %743 = arith.mulf %11, %692 : vector<1x128xf32>
    %744 = arith.mulf %19, %738 : vector<1x128xf32>
    %745 = arith.subf %743, %744 : vector<1x128xf32>
    %c10_178 = arith.constant 10 : index
    %c0_179 = arith.constant 0 : index
    %746 = vector.load %arg15[%c10_178, %c0_179] : memref<16x128xf32, #tpu.memory_space<vmem>>, vector<1x128xf32>
    tpu.vector_store %arg15[%c10_178, %c0_179], %745 {strides = array<i32>} : memref<16x128xf32, #tpu.memory_space<vmem>>, vector<1x128xf32>,
    %747 = vector.broadcast %1 : f32 to vector<1x128xf32>
    %748 = arith.mulf %732, %747 : vector<1x128xf32>
    %cst_180 = arith.constant 2.59849272E-4 : f32
    %749 = vector.broadcast %cst_180 : f32 to vector<1x128xf32>
    %750 = arith.cmpf ogt, %691, %749 : vector<1x128xf32>
    %cst_181 = arith.constant 1.000000e+00 : f32
    %751 = vector.broadcast %cst_181 : f32 to vector<1x128xf32>
    %752 = arith.select %750, %748, %751 : vector<1x128xi1>, vector<1x128xf32>
    %753 = math.log %752 : vector<1x128xf32>
    %cst_182 = arith.constant 0.000000e+00 : f32
    %754 = vector.broadcast %cst_182 : f32 to vector<1x128xf32>
    %755 = arith.select %750, %753, %754 : vector<1x128xi1>, vector<1x128xf32>
    %756 = arith.addf %690, %755 : vector<1x128xf32>
    %757 = vector.extract_strided_slice %3 {offsets = [11, 0], sizes = [1, 128], strides = [1, 1]} : vector<16x128xf32> to vector<1x128xf32>
    %758 = vector.extract_strided_slice %4 {offsets = [11, 0], sizes = [1, 128], strides = [1, 1]} : vector<16x128xf32> to vector<1x128xf32>
    %759 = vector.broadcast %21 : vector<16x1xf32> to vector<16x128xf32>
    %760 = vector.broadcast %757 : vector<1x128xf32> to vector<16x128xf32>
    %761 = arith.mulf %759, %760 : vector<16x128xf32>
    %762 = vector.broadcast %22 : vector<16x1xf32> to vector<16x128xf32>
    %763 = arith.addf %761, %762 : vector<16x128xf32>
    %764 = math.tanh %763 : vector<16x128xf32>
    %765 = arith.mulf %764, %764 : vector<16x128xf32>
    %766 = arith.truncf %764 : vector<16x128xf32> to vector<16x128xbf16>
    %cst_183 = arith.constant dense<0.000000e+00> : vector<16x128xf32>
    %767 = tpu.matmul %27, %766, %cst_183 {dimension_numbers = #tpu.dot_dimension_numbers<[1], [0], [0], [1], [0, 0, 1, 1], [], []>} : vector<16x16xbf16>, vector<16x128xbf16>, vector<16x128xf32> -> vector<16x128xf32>
    %768 = arith.truncf %765 : vector<16x128xf32> to vector<16x128xbf16>
    %cst_184 = arith.constant dense<0.000000e+00> : vector<16x128xf32>
    %769 = tpu.matmul %29, %768, %cst_184 {dimension_numbers = #tpu.dot_dimension_numbers<[1], [0], [0], [1], [0, 0, 1, 1], [], []>} : vector<16x16xbf16>, vector<16x128xbf16>, vector<16x128xf32> -> vector<16x128xf32>
    %770 = vector.broadcast %23 : vector<16x1xf32> to vector<16x128xf32>
    %771 = arith.addf %767, %770 : vector<16x128xf32>
    %772 = math.tanh %771 : vector<16x128xf32>
    %773 = vector.broadcast %25 : vector<16x1xf32> to vector<16x128xf32>
    %774 = arith.subf %773, %769 : vector<16x128xf32>
    %775 = arith.mulf %772, %772 : vector<16x128xf32>
    %cst_185 = arith.constant 1.000000e+00 : f32
    %776 = vector.broadcast %cst_185 : f32 to vector<16x128xf32>
    %777 = arith.subf %776, %775 : vector<16x128xf32>
    %778 = arith.mulf %777, %774 : vector<16x128xf32>
    %779 = vector.broadcast %24 : vector<16x1xf32> to vector<16x128xf32>
    %780 = arith.mulf %779, %772 : vector<16x128xf32>
    %cst_186 = arith.constant dense<0.000000e+00> : vector<128xf32>
    %781 = vector.multi_reduction <add>, %780, %cst_186 [0] : vector<16x128xf32> to vector<128xf32>
    %782 = vector.shape_cast %781 : vector<128xf32> to vector<1x128xf32>
    %783 = vector.broadcast %2 : f32 to vector<1x128xf32>
    %784 = arith.addf %782, %783 : vector<1x128xf32>
    %785 = vector.broadcast %24 : vector<16x1xf32> to vector<16x128xf32>
    %786 = arith.mulf %785, %778 : vector<16x128xf32>
    %cst_187 = arith.constant dense<0.000000e+00> : vector<128xf32>
    %787 = vector.multi_reduction <add>, %786, %cst_187 [0] : vector<16x128xf32> to vector<128xf32>
    %788 = vector.shape_cast %787 : vector<128xf32> to vector<1x128xf32>
    %789 = math.tanh %784 : vector<1x128xf32>
    %cst_188 = arith.constant 1.000000e-01 : f32
    %790 = vector.broadcast %cst_188 : f32 to vector<1x128xf32>
    %791 = arith.mulf %790, %757 : vector<1x128xf32>
    %792 = arith.addf %789, %791 : vector<1x128xf32>
    %793 = arith.mulf %789, %789 : vector<1x128xf32>
    %cst_189 = arith.constant 1.000000e+00 : f32
    %794 = vector.broadcast %cst_189 : f32 to vector<1x128xf32>
    %795 = arith.subf %794, %793 : vector<1x128xf32>
    %796 = arith.mulf %795, %788 : vector<1x128xf32>
    %cst_190 = arith.constant 1.000000e-01 : f32
    %797 = vector.broadcast %cst_190 : f32 to vector<1x128xf32>
    %798 = arith.addf %796, %797 : vector<1x128xf32>
    %799 = vector.broadcast %0 : f32 to vector<1x128xf32>
    %800 = arith.subf %792, %799 : vector<1x128xf32>
    %801 = vector.broadcast %1 : f32 to vector<1x128xf32>
    %802 = arith.mulf %801, %800 : vector<1x128xf32>
    %cst_191 = arith.constant 1.000000e+00 : f32
    %803 = vector.broadcast %cst_191 : f32 to vector<1x128xf32>
    %804 = arith.subf %802, %803 : vector<1x128xf32>
    %805 = arith.mulf %11, %804 : vector<1x128xf32>
    %806 = arith.mulf %19, %758 : vector<1x128xf32>
    %807 = arith.addf %805, %806 : vector<1x128xf32>
    %c11 = arith.constant 11 : index
    %c0_192 = arith.constant 0 : index
    %808 = vector.load %arg14[%c11, %c0_192] : memref<16x128xf32, #tpu.memory_space<vmem>>, vector<1x128xf32>
    tpu.vector_store %arg14[%c11, %c0_192], %807 {strides = array<i32>} : memref<16x128xf32, #tpu.memory_space<vmem>>, vector<1x128xf32>,
    %809 = arith.mulf %11, %758 : vector<1x128xf32>
    %810 = arith.mulf %19, %804 : vector<1x128xf32>
    %811 = arith.subf %809, %810 : vector<1x128xf32>
    %c11_193 = arith.constant 11 : index
    %c0_194 = arith.constant 0 : index
    %812 = vector.load %arg15[%c11_193, %c0_194] : memref<16x128xf32, #tpu.memory_space<vmem>>, vector<1x128xf32>
    tpu.vector_store %arg15[%c11_193, %c0_194], %811 {strides = array<i32>} : memref<16x128xf32, #tpu.memory_space<vmem>>, vector<1x128xf32>,
    %813 = vector.broadcast %1 : f32 to vector<1x128xf32>
    %814 = arith.mulf %798, %813 : vector<1x128xf32>
    %cst_195 = arith.constant 2.59849272E-4 : f32
    %815 = vector.broadcast %cst_195 : f32 to vector<1x128xf32>
    %816 = arith.cmpf ogt, %757, %815 : vector<1x128xf32>
    %cst_196 = arith.constant 1.000000e+00 : f32
    %817 = vector.broadcast %cst_196 : f32 to vector<1x128xf32>
    %818 = arith.select %816, %814, %817 : vector<1x128xi1>, vector<1x128xf32>
    %819 = math.log %818 : vector<1x128xf32>
    %cst_197 = arith.constant 0.000000e+00 : f32
    %820 = vector.broadcast %cst_197 : f32 to vector<1x128xf32>
    %821 = arith.select %816, %819, %820 : vector<1x128xi1>, vector<1x128xf32>
    %822 = arith.addf %756, %821 : vector<1x128xf32>
    %823 = vector.extract_strided_slice %3 {offsets = [12, 0], sizes = [1, 128], strides = [1, 1]} : vector<16x128xf32> to vector<1x128xf32>
    %824 = vector.extract_strided_slice %4 {offsets = [12, 0], sizes = [1, 128], strides = [1, 1]} : vector<16x128xf32> to vector<1x128xf32>
    %825 = vector.broadcast %21 : vector<16x1xf32> to vector<16x128xf32>
    %826 = vector.broadcast %823 : vector<1x128xf32> to vector<16x128xf32>
    %827 = arith.mulf %825, %826 : vector<16x128xf32>
    %828 = vector.broadcast %22 : vector<16x1xf32> to vector<16x128xf32>
    %829 = arith.addf %827, %828 : vector<16x128xf32>
    %830 = math.tanh %829 : vector<16x128xf32>
    %831 = arith.mulf %830, %830 : vector<16x128xf32>
    %832 = arith.truncf %830 : vector<16x128xf32> to vector<16x128xbf16>
    %cst_198 = arith.constant dense<0.000000e+00> : vector<16x128xf32>
    %833 = tpu.matmul %27, %832, %cst_198 {dimension_numbers = #tpu.dot_dimension_numbers<[1], [0], [0], [1], [0, 0, 1, 1], [], []>} : vector<16x16xbf16>, vector<16x128xbf16>, vector<16x128xf32> -> vector<16x128xf32>
    %834 = arith.truncf %831 : vector<16x128xf32> to vector<16x128xbf16>
    %cst_199 = arith.constant dense<0.000000e+00> : vector<16x128xf32>
    %835 = tpu.matmul %29, %834, %cst_199 {dimension_numbers = #tpu.dot_dimension_numbers<[1], [0], [0], [1], [0, 0, 1, 1], [], []>} : vector<16x16xbf16>, vector<16x128xbf16>, vector<16x128xf32> -> vector<16x128xf32>
    %836 = vector.broadcast %23 : vector<16x1xf32> to vector<16x128xf32>
    %837 = arith.addf %833, %836 : vector<16x128xf32>
    %838 = math.tanh %837 : vector<16x128xf32>
    %839 = vector.broadcast %25 : vector<16x1xf32> to vector<16x128xf32>
    %840 = arith.subf %839, %835 : vector<16x128xf32>
    %841 = arith.mulf %838, %838 : vector<16x128xf32>
    %cst_200 = arith.constant 1.000000e+00 : f32
    %842 = vector.broadcast %cst_200 : f32 to vector<16x128xf32>
    %843 = arith.subf %842, %841 : vector<16x128xf32>
    %844 = arith.mulf %843, %840 : vector<16x128xf32>
    %845 = vector.broadcast %24 : vector<16x1xf32> to vector<16x128xf32>
    %846 = arith.mulf %845, %838 : vector<16x128xf32>
    %cst_201 = arith.constant dense<0.000000e+00> : vector<128xf32>
    %847 = vector.multi_reduction <add>, %846, %cst_201 [0] : vector<16x128xf32> to vector<128xf32>
    %848 = vector.shape_cast %847 : vector<128xf32> to vector<1x128xf32>
    %849 = vector.broadcast %2 : f32 to vector<1x128xf32>
    %850 = arith.addf %848, %849 : vector<1x128xf32>
    %851 = vector.broadcast %24 : vector<16x1xf32> to vector<16x128xf32>
    %852 = arith.mulf %851, %844 : vector<16x128xf32>
    %cst_202 = arith.constant dense<0.000000e+00> : vector<128xf32>
    %853 = vector.multi_reduction <add>, %852, %cst_202 [0] : vector<16x128xf32> to vector<128xf32>
    %854 = vector.shape_cast %853 : vector<128xf32> to vector<1x128xf32>
    %855 = math.tanh %850 : vector<1x128xf32>
    %cst_203 = arith.constant 1.000000e-01 : f32
    %856 = vector.broadcast %cst_203 : f32 to vector<1x128xf32>
    %857 = arith.mulf %856, %823 : vector<1x128xf32>
    %858 = arith.addf %855, %857 : vector<1x128xf32>
    %859 = arith.mulf %855, %855 : vector<1x128xf32>
    %cst_204 = arith.constant 1.000000e+00 : f32
    %860 = vector.broadcast %cst_204 : f32 to vector<1x128xf32>
    %861 = arith.subf %860, %859 : vector<1x128xf32>
    %862 = arith.mulf %861, %854 : vector<1x128xf32>
    %cst_205 = arith.constant 1.000000e-01 : f32
    %863 = vector.broadcast %cst_205 : f32 to vector<1x128xf32>
    %864 = arith.addf %862, %863 : vector<1x128xf32>
    %865 = vector.broadcast %0 : f32 to vector<1x128xf32>
    %866 = arith.subf %858, %865 : vector<1x128xf32>
    %867 = vector.broadcast %1 : f32 to vector<1x128xf32>
    %868 = arith.mulf %867, %866 : vector<1x128xf32>
    %cst_206 = arith.constant 1.000000e+00 : f32
    %869 = vector.broadcast %cst_206 : f32 to vector<1x128xf32>
    %870 = arith.subf %868, %869 : vector<1x128xf32>
    %871 = arith.mulf %11, %870 : vector<1x128xf32>
    %872 = arith.mulf %19, %824 : vector<1x128xf32>
    %873 = arith.addf %871, %872 : vector<1x128xf32>
    %c12 = arith.constant 12 : index
    %c0_207 = arith.constant 0 : index
    %874 = vector.load %arg14[%c12, %c0_207] : memref<16x128xf32, #tpu.memory_space<vmem>>, vector<1x128xf32>
    tpu.vector_store %arg14[%c12, %c0_207], %873 {strides = array<i32>} : memref<16x128xf32, #tpu.memory_space<vmem>>, vector<1x128xf32>,
    %875 = arith.mulf %11, %824 : vector<1x128xf32>
    %876 = arith.mulf %19, %870 : vector<1x128xf32>
    %877 = arith.subf %875, %876 : vector<1x128xf32>
    %c12_208 = arith.constant 12 : index
    %c0_209 = arith.constant 0 : index
    %878 = vector.load %arg15[%c12_208, %c0_209] : memref<16x128xf32, #tpu.memory_space<vmem>>, vector<1x128xf32>
    tpu.vector_store %arg15[%c12_208, %c0_209], %877 {strides = array<i32>} : memref<16x128xf32, #tpu.memory_space<vmem>>, vector<1x128xf32>,
    %879 = vector.broadcast %1 : f32 to vector<1x128xf32>
    %880 = arith.mulf %864, %879 : vector<1x128xf32>
    %cst_210 = arith.constant 2.59849272E-4 : f32
    %881 = vector.broadcast %cst_210 : f32 to vector<1x128xf32>
    %882 = arith.cmpf ogt, %823, %881 : vector<1x128xf32>
    %cst_211 = arith.constant 1.000000e+00 : f32
    %883 = vector.broadcast %cst_211 : f32 to vector<1x128xf32>
    %884 = arith.select %882, %880, %883 : vector<1x128xi1>, vector<1x128xf32>
    %885 = math.log %884 : vector<1x128xf32>
    %cst_212 = arith.constant 0.000000e+00 : f32
    %886 = vector.broadcast %cst_212 : f32 to vector<1x128xf32>
    %887 = arith.select %882, %885, %886 : vector<1x128xi1>, vector<1x128xf32>
    %888 = arith.addf %822, %887 : vector<1x128xf32>
    %889 = vector.extract_strided_slice %3 {offsets = [13, 0], sizes = [1, 128], strides = [1, 1]} : vector<16x128xf32> to vector<1x128xf32>
    %890 = vector.extract_strided_slice %4 {offsets = [13, 0], sizes = [1, 128], strides = [1, 1]} : vector<16x128xf32> to vector<1x128xf32>
    %891 = vector.broadcast %21 : vector<16x1xf32> to vector<16x128xf32>
    %892 = vector.broadcast %889 : vector<1x128xf32> to vector<16x128xf32>
    %893 = arith.mulf %891, %892 : vector<16x128xf32>
    %894 = vector.broadcast %22 : vector<16x1xf32> to vector<16x128xf32>
    %895 = arith.addf %893, %894 : vector<16x128xf32>
    %896 = math.tanh %895 : vector<16x128xf32>
    %897 = arith.mulf %896, %896 : vector<16x128xf32>
    %898 = arith.truncf %896 : vector<16x128xf32> to vector<16x128xbf16>
    %cst_213 = arith.constant dense<0.000000e+00> : vector<16x128xf32>
    %899 = tpu.matmul %27, %898, %cst_213 {dimension_numbers = #tpu.dot_dimension_numbers<[1], [0], [0], [1], [0, 0, 1, 1], [], []>} : vector<16x16xbf16>, vector<16x128xbf16>, vector<16x128xf32> -> vector<16x128xf32>
    %900 = arith.truncf %897 : vector<16x128xf32> to vector<16x128xbf16>
    %cst_214 = arith.constant dense<0.000000e+00> : vector<16x128xf32>
    %901 = tpu.matmul %29, %900, %cst_214 {dimension_numbers = #tpu.dot_dimension_numbers<[1], [0], [0], [1], [0, 0, 1, 1], [], []>} : vector<16x16xbf16>, vector<16x128xbf16>, vector<16x128xf32> -> vector<16x128xf32>
    %902 = vector.broadcast %23 : vector<16x1xf32> to vector<16x128xf32>
    %903 = arith.addf %899, %902 : vector<16x128xf32>
    %904 = math.tanh %903 : vector<16x128xf32>
    %905 = vector.broadcast %25 : vector<16x1xf32> to vector<16x128xf32>
    %906 = arith.subf %905, %901 : vector<16x128xf32>
    %907 = arith.mulf %904, %904 : vector<16x128xf32>
    %cst_215 = arith.constant 1.000000e+00 : f32
    %908 = vector.broadcast %cst_215 : f32 to vector<16x128xf32>
    %909 = arith.subf %908, %907 : vector<16x128xf32>
    %910 = arith.mulf %909, %906 : vector<16x128xf32>
    %911 = vector.broadcast %24 : vector<16x1xf32> to vector<16x128xf32>
    %912 = arith.mulf %911, %904 : vector<16x128xf32>
    %cst_216 = arith.constant dense<0.000000e+00> : vector<128xf32>
    %913 = vector.multi_reduction <add>, %912, %cst_216 [0] : vector<16x128xf32> to vector<128xf32>
    %914 = vector.shape_cast %913 : vector<128xf32> to vector<1x128xf32>
    %915 = vector.broadcast %2 : f32 to vector<1x128xf32>
    %916 = arith.addf %914, %915 : vector<1x128xf32>
    %917 = vector.broadcast %24 : vector<16x1xf32> to vector<16x128xf32>
    %918 = arith.mulf %917, %910 : vector<16x128xf32>
    %cst_217 = arith.constant dense<0.000000e+00> : vector<128xf32>
    %919 = vector.multi_reduction <add>, %918, %cst_217 [0] : vector<16x128xf32> to vector<128xf32>
    %920 = vector.shape_cast %919 : vector<128xf32> to vector<1x128xf32>
    %921 = math.tanh %916 : vector<1x128xf32>
    %cst_218 = arith.constant 1.000000e-01 : f32
    %922 = vector.broadcast %cst_218 : f32 to vector<1x128xf32>
    %923 = arith.mulf %922, %889 : vector<1x128xf32>
    %924 = arith.addf %921, %923 : vector<1x128xf32>
    %925 = arith.mulf %921, %921 : vector<1x128xf32>
    %cst_219 = arith.constant 1.000000e+00 : f32
    %926 = vector.broadcast %cst_219 : f32 to vector<1x128xf32>
    %927 = arith.subf %926, %925 : vector<1x128xf32>
    %928 = arith.mulf %927, %920 : vector<1x128xf32>
    %cst_220 = arith.constant 1.000000e-01 : f32
    %929 = vector.broadcast %cst_220 : f32 to vector<1x128xf32>
    %930 = arith.addf %928, %929 : vector<1x128xf32>
    %931 = vector.broadcast %0 : f32 to vector<1x128xf32>
    %932 = arith.subf %924, %931 : vector<1x128xf32>
    %933 = vector.broadcast %1 : f32 to vector<1x128xf32>
    %934 = arith.mulf %933, %932 : vector<1x128xf32>
    %cst_221 = arith.constant 1.000000e+00 : f32
    %935 = vector.broadcast %cst_221 : f32 to vector<1x128xf32>
    %936 = arith.subf %934, %935 : vector<1x128xf32>
    %937 = arith.mulf %11, %936 : vector<1x128xf32>
    %938 = arith.mulf %19, %890 : vector<1x128xf32>
    %939 = arith.addf %937, %938 : vector<1x128xf32>
    %c13 = arith.constant 13 : index
    %c0_222 = arith.constant 0 : index
    %940 = vector.load %arg14[%c13, %c0_222] : memref<16x128xf32, #tpu.memory_space<vmem>>, vector<1x128xf32>
    tpu.vector_store %arg14[%c13, %c0_222], %939 {strides = array<i32>} : memref<16x128xf32, #tpu.memory_space<vmem>>, vector<1x128xf32>,
    %941 = arith.mulf %11, %890 : vector<1x128xf32>
    %942 = arith.mulf %19, %936 : vector<1x128xf32>
    %943 = arith.subf %941, %942 : vector<1x128xf32>
    %c13_223 = arith.constant 13 : index
    %c0_224 = arith.constant 0 : index
    %944 = vector.load %arg15[%c13_223, %c0_224] : memref<16x128xf32, #tpu.memory_space<vmem>>, vector<1x128xf32>
    tpu.vector_store %arg15[%c13_223, %c0_224], %943 {strides = array<i32>} : memref<16x128xf32, #tpu.memory_space<vmem>>, vector<1x128xf32>,
    %945 = vector.broadcast %1 : f32 to vector<1x128xf32>
    %946 = arith.mulf %930, %945 : vector<1x128xf32>
    %cst_225 = arith.constant 2.59849272E-4 : f32
    %947 = vector.broadcast %cst_225 : f32 to vector<1x128xf32>
    %948 = arith.cmpf ogt, %889, %947 : vector<1x128xf32>
    %cst_226 = arith.constant 1.000000e+00 : f32
    %949 = vector.broadcast %cst_226 : f32 to vector<1x128xf32>
    %950 = arith.select %948, %946, %949 : vector<1x128xi1>, vector<1x128xf32>
    %951 = math.log %950 : vector<1x128xf32>
    %cst_227 = arith.constant 0.000000e+00 : f32
    %952 = vector.broadcast %cst_227 : f32 to vector<1x128xf32>
    %953 = arith.select %948, %951, %952 : vector<1x128xi1>, vector<1x128xf32>
    %954 = arith.addf %888, %953 : vector<1x128xf32>
    %955 = vector.extract_strided_slice %3 {offsets = [14, 0], sizes = [1, 128], strides = [1, 1]} : vector<16x128xf32> to vector<1x128xf32>
    %956 = vector.extract_strided_slice %4 {offsets = [14, 0], sizes = [1, 128], strides = [1, 1]} : vector<16x128xf32> to vector<1x128xf32>
    %957 = vector.broadcast %21 : vector<16x1xf32> to vector<16x128xf32>
    %958 = vector.broadcast %955 : vector<1x128xf32> to vector<16x128xf32>
    %959 = arith.mulf %957, %958 : vector<16x128xf32>
    %960 = vector.broadcast %22 : vector<16x1xf32> to vector<16x128xf32>
    %961 = arith.addf %959, %960 : vector<16x128xf32>
    %962 = math.tanh %961 : vector<16x128xf32>
    %963 = arith.mulf %962, %962 : vector<16x128xf32>
    %964 = arith.truncf %962 : vector<16x128xf32> to vector<16x128xbf16>
    %cst_228 = arith.constant dense<0.000000e+00> : vector<16x128xf32>
    %965 = tpu.matmul %27, %964, %cst_228 {dimension_numbers = #tpu.dot_dimension_numbers<[1], [0], [0], [1], [0, 0, 1, 1], [], []>} : vector<16x16xbf16>, vector<16x128xbf16>, vector<16x128xf32> -> vector<16x128xf32>
    %966 = arith.truncf %963 : vector<16x128xf32> to vector<16x128xbf16>
    %cst_229 = arith.constant dense<0.000000e+00> : vector<16x128xf32>
    %967 = tpu.matmul %29, %966, %cst_229 {dimension_numbers = #tpu.dot_dimension_numbers<[1], [0], [0], [1], [0, 0, 1, 1], [], []>} : vector<16x16xbf16>, vector<16x128xbf16>, vector<16x128xf32> -> vector<16x128xf32>
    %968 = vector.broadcast %23 : vector<16x1xf32> to vector<16x128xf32>
    %969 = arith.addf %965, %968 : vector<16x128xf32>
    %970 = math.tanh %969 : vector<16x128xf32>
    %971 = vector.broadcast %25 : vector<16x1xf32> to vector<16x128xf32>
    %972 = arith.subf %971, %967 : vector<16x128xf32>
    %973 = arith.mulf %970, %970 : vector<16x128xf32>
    %cst_230 = arith.constant 1.000000e+00 : f32
    %974 = vector.broadcast %cst_230 : f32 to vector<16x128xf32>
    %975 = arith.subf %974, %973 : vector<16x128xf32>
    %976 = arith.mulf %975, %972 : vector<16x128xf32>
    %977 = vector.broadcast %24 : vector<16x1xf32> to vector<16x128xf32>
    %978 = arith.mulf %977, %970 : vector<16x128xf32>
    %cst_231 = arith.constant dense<0.000000e+00> : vector<128xf32>
    %979 = vector.multi_reduction <add>, %978, %cst_231 [0] : vector<16x128xf32> to vector<128xf32>
    %980 = vector.shape_cast %979 : vector<128xf32> to vector<1x128xf32>
    %981 = vector.broadcast %2 : f32 to vector<1x128xf32>
    %982 = arith.addf %980, %981 : vector<1x128xf32>
    %983 = vector.broadcast %24 : vector<16x1xf32> to vector<16x128xf32>
    %984 = arith.mulf %983, %976 : vector<16x128xf32>
    %cst_232 = arith.constant dense<0.000000e+00> : vector<128xf32>
    %985 = vector.multi_reduction <add>, %984, %cst_232 [0] : vector<16x128xf32> to vector<128xf32>
    %986 = vector.shape_cast %985 : vector<128xf32> to vector<1x128xf32>
    %987 = math.tanh %982 : vector<1x128xf32>
    %cst_233 = arith.constant 1.000000e-01 : f32
    %988 = vector.broadcast %cst_233 : f32 to vector<1x128xf32>
    %989 = arith.mulf %988, %955 : vector<1x128xf32>
    %990 = arith.addf %987, %989 : vector<1x128xf32>
    %991 = arith.mulf %987, %987 : vector<1x128xf32>
    %cst_234 = arith.constant 1.000000e+00 : f32
    %992 = vector.broadcast %cst_234 : f32 to vector<1x128xf32>
    %993 = arith.subf %992, %991 : vector<1x128xf32>
    %994 = arith.mulf %993, %986 : vector<1x128xf32>
    %cst_235 = arith.constant 1.000000e-01 : f32
    %995 = vector.broadcast %cst_235 : f32 to vector<1x128xf32>
    %996 = arith.addf %994, %995 : vector<1x128xf32>
    %997 = vector.broadcast %0 : f32 to vector<1x128xf32>
    %998 = arith.subf %990, %997 : vector<1x128xf32>
    %999 = vector.broadcast %1 : f32 to vector<1x128xf32>
    %1000 = arith.mulf %999, %998 : vector<1x128xf32>
    %cst_236 = arith.constant 1.000000e+00 : f32
    %1001 = vector.broadcast %cst_236 : f32 to vector<1x128xf32>
    %1002 = arith.subf %1000, %1001 : vector<1x128xf32>
    %1003 = arith.mulf %11, %1002 : vector<1x128xf32>
    %1004 = arith.mulf %19, %956 : vector<1x128xf32>
    %1005 = arith.addf %1003, %1004 : vector<1x128xf32>
    %c14 = arith.constant 14 : index
    %c0_237 = arith.constant 0 : index
    %1006 = vector.load %arg14[%c14, %c0_237] : memref<16x128xf32, #tpu.memory_space<vmem>>, vector<1x128xf32>
    tpu.vector_store %arg14[%c14, %c0_237], %1005 {strides = array<i32>} : memref<16x128xf32, #tpu.memory_space<vmem>>, vector<1x128xf32>,
    %1007 = arith.mulf %11, %956 : vector<1x128xf32>
    %1008 = arith.mulf %19, %1002 : vector<1x128xf32>
    %1009 = arith.subf %1007, %1008 : vector<1x128xf32>
    %c14_238 = arith.constant 14 : index
    %c0_239 = arith.constant 0 : index
    %1010 = vector.load %arg15[%c14_238, %c0_239] : memref<16x128xf32, #tpu.memory_space<vmem>>, vector<1x128xf32>
    tpu.vector_store %arg15[%c14_238, %c0_239], %1009 {strides = array<i32>} : memref<16x128xf32, #tpu.memory_space<vmem>>, vector<1x128xf32>,
    %1011 = vector.broadcast %1 : f32 to vector<1x128xf32>
    %1012 = arith.mulf %996, %1011 : vector<1x128xf32>
    %cst_240 = arith.constant 2.59849272E-4 : f32
    %1013 = vector.broadcast %cst_240 : f32 to vector<1x128xf32>
    %1014 = arith.cmpf ogt, %955, %1013 : vector<1x128xf32>
    %cst_241 = arith.constant 1.000000e+00 : f32
    %1015 = vector.broadcast %cst_241 : f32 to vector<1x128xf32>
    %1016 = arith.select %1014, %1012, %1015 : vector<1x128xi1>, vector<1x128xf32>
    %1017 = math.log %1016 : vector<1x128xf32>
    %cst_242 = arith.constant 0.000000e+00 : f32
    %1018 = vector.broadcast %cst_242 : f32 to vector<1x128xf32>
    %1019 = arith.select %1014, %1017, %1018 : vector<1x128xi1>, vector<1x128xf32>
    %1020 = arith.addf %954, %1019 : vector<1x128xf32>
    %1021 = vector.extract_strided_slice %3 {offsets = [15, 0], sizes = [1, 128], strides = [1, 1]} : vector<16x128xf32> to vector<1x128xf32>
    %1022 = vector.extract_strided_slice %4 {offsets = [15, 0], sizes = [1, 128], strides = [1, 1]} : vector<16x128xf32> to vector<1x128xf32>
    %1023 = vector.broadcast %21 : vector<16x1xf32> to vector<16x128xf32>
    %1024 = vector.broadcast %1021 : vector<1x128xf32> to vector<16x128xf32>
    %1025 = arith.mulf %1023, %1024 : vector<16x128xf32>
    %1026 = vector.broadcast %22 : vector<16x1xf32> to vector<16x128xf32>
    %1027 = arith.addf %1025, %1026 : vector<16x128xf32>
    %1028 = math.tanh %1027 : vector<16x128xf32>
    %1029 = arith.mulf %1028, %1028 : vector<16x128xf32>
    %1030 = arith.truncf %1028 : vector<16x128xf32> to vector<16x128xbf16>
    %cst_243 = arith.constant dense<0.000000e+00> : vector<16x128xf32>
    %1031 = tpu.matmul %27, %1030, %cst_243 {dimension_numbers = #tpu.dot_dimension_numbers<[1], [0], [0], [1], [0, 0, 1, 1], [], []>} : vector<16x16xbf16>, vector<16x128xbf16>, vector<16x128xf32> -> vector<16x128xf32>
    %1032 = arith.truncf %1029 : vector<16x128xf32> to vector<16x128xbf16>
    %cst_244 = arith.constant dense<0.000000e+00> : vector<16x128xf32>
    %1033 = tpu.matmul %29, %1032, %cst_244 {dimension_numbers = #tpu.dot_dimension_numbers<[1], [0], [0], [1], [0, 0, 1, 1], [], []>} : vector<16x16xbf16>, vector<16x128xbf16>, vector<16x128xf32> -> vector<16x128xf32>
    %1034 = vector.broadcast %23 : vector<16x1xf32> to vector<16x128xf32>
    %1035 = arith.addf %1031, %1034 : vector<16x128xf32>
    %1036 = math.tanh %1035 : vector<16x128xf32>
    %1037 = vector.broadcast %25 : vector<16x1xf32> to vector<16x128xf32>
    %1038 = arith.subf %1037, %1033 : vector<16x128xf32>
    %1039 = arith.mulf %1036, %1036 : vector<16x128xf32>
    %cst_245 = arith.constant 1.000000e+00 : f32
    %1040 = vector.broadcast %cst_245 : f32 to vector<16x128xf32>
    %1041 = arith.subf %1040, %1039 : vector<16x128xf32>
    %1042 = arith.mulf %1041, %1038 : vector<16x128xf32>
    %1043 = vector.broadcast %24 : vector<16x1xf32> to vector<16x128xf32>
    %1044 = arith.mulf %1043, %1036 : vector<16x128xf32>
    %cst_246 = arith.constant dense<0.000000e+00> : vector<128xf32>
    %1045 = vector.multi_reduction <add>, %1044, %cst_246 [0] : vector<16x128xf32> to vector<128xf32>
    %1046 = vector.shape_cast %1045 : vector<128xf32> to vector<1x128xf32>
    %1047 = vector.broadcast %2 : f32 to vector<1x128xf32>
    %1048 = arith.addf %1046, %1047 : vector<1x128xf32>
    %1049 = vector.broadcast %24 : vector<16x1xf32> to vector<16x128xf32>
    %1050 = arith.mulf %1049, %1042 : vector<16x128xf32>
    %cst_247 = arith.constant dense<0.000000e+00> : vector<128xf32>
    %1051 = vector.multi_reduction <add>, %1050, %cst_247 [0] : vector<16x128xf32> to vector<128xf32>
    %1052 = vector.shape_cast %1051 : vector<128xf32> to vector<1x128xf32>
    %1053 = math.tanh %1048 : vector<1x128xf32>
    %cst_248 = arith.constant 1.000000e-01 : f32
    %1054 = vector.broadcast %cst_248 : f32 to vector<1x128xf32>
    %1055 = arith.mulf %1054, %1021 : vector<1x128xf32>
    %1056 = arith.addf %1053, %1055 : vector<1x128xf32>
    %1057 = arith.mulf %1053, %1053 : vector<1x128xf32>
    %cst_249 = arith.constant 1.000000e+00 : f32
    %1058 = vector.broadcast %cst_249 : f32 to vector<1x128xf32>
    %1059 = arith.subf %1058, %1057 : vector<1x128xf32>
    %1060 = arith.mulf %1059, %1052 : vector<1x128xf32>
    %cst_250 = arith.constant 1.000000e-01 : f32
    %1061 = vector.broadcast %cst_250 : f32 to vector<1x128xf32>
    %1062 = arith.addf %1060, %1061 : vector<1x128xf32>
    %1063 = vector.broadcast %0 : f32 to vector<1x128xf32>
    %1064 = arith.subf %1056, %1063 : vector<1x128xf32>
    %1065 = vector.broadcast %1 : f32 to vector<1x128xf32>
    %1066 = arith.mulf %1065, %1064 : vector<1x128xf32>
    %cst_251 = arith.constant 1.000000e+00 : f32
    %1067 = vector.broadcast %cst_251 : f32 to vector<1x128xf32>
    %1068 = arith.subf %1066, %1067 : vector<1x128xf32>
    %1069 = arith.mulf %11, %1068 : vector<1x128xf32>
    %1070 = arith.mulf %19, %1022 : vector<1x128xf32>
    %1071 = arith.addf %1069, %1070 : vector<1x128xf32>
    %c15 = arith.constant 15 : index
    %c0_252 = arith.constant 0 : index
    %1072 = vector.load %arg14[%c15, %c0_252] : memref<16x128xf32, #tpu.memory_space<vmem>>, vector<1x128xf32>
    tpu.vector_store %arg14[%c15, %c0_252], %1071 {strides = array<i32>} : memref<16x128xf32, #tpu.memory_space<vmem>>, vector<1x128xf32>,
    %1073 = arith.mulf %11, %1022 : vector<1x128xf32>
    %1074 = arith.mulf %19, %1068 : vector<1x128xf32>
    %1075 = arith.subf %1073, %1074 : vector<1x128xf32>
    %c15_253 = arith.constant 15 : index
    %c0_254 = arith.constant 0 : index
    %1076 = vector.load %arg15[%c15_253, %c0_254] : memref<16x128xf32, #tpu.memory_space<vmem>>, vector<1x128xf32>
    tpu.vector_store %arg15[%c15_253, %c0_254], %1075 {strides = array<i32>} : memref<16x128xf32, #tpu.memory_space<vmem>>, vector<1x128xf32>,
    %1077 = vector.broadcast %1 : f32 to vector<1x128xf32>
    %1078 = arith.mulf %1062, %1077 : vector<1x128xf32>
    %cst_255 = arith.constant 2.59849272E-4 : f32
    %1079 = vector.broadcast %cst_255 : f32 to vector<1x128xf32>
    %1080 = arith.cmpf ogt, %1021, %1079 : vector<1x128xf32>
    %cst_256 = arith.constant 1.000000e+00 : f32
    %1081 = vector.broadcast %cst_256 : f32 to vector<1x128xf32>
    %1082 = arith.select %1080, %1078, %1081 : vector<1x128xi1>, vector<1x128xf32>
    %1083 = math.log %1082 : vector<1x128xf32>
    %cst_257 = arith.constant 0.000000e+00 : f32
    %1084 = vector.broadcast %cst_257 : f32 to vector<1x128xf32>
    %1085 = arith.select %1080, %1083, %1084 : vector<1x128xi1>, vector<1x128xf32>
    %1086 = arith.addf %1020, %1085 : vector<1x128xf32>
    %c0_258 = arith.constant 0 : index
    %c0_259 = arith.constant 0 : index
    %1087 = vector.load %arg14[%c0_258, %c0_259] : memref<16x128xf32, #tpu.memory_space<vmem>>, vector<16x128xf32>
    %c0_260 = arith.constant 0 : index
    %c0_261 = arith.constant 0 : index
    %1088 = vector.load %arg15[%c0_260, %c0_261] : memref<16x128xf32, #tpu.memory_space<vmem>>, vector<16x128xf32>
    %c0_262 = arith.constant 0 : index
    %c0_263 = arith.constant 0 : index
    %1089 = vector.load %arg9[%c0_262, %c0_263] : memref<32x3xf32, #tpu.memory_space<vmem>>, vector<32x3xf32>
    %1090 = vector.extract_strided_slice %1089 {offsets = [0, 0], sizes = [32, 1], strides = [1, 1]} : vector<32x3xf32> to vector<32x1xf32>
    %1091 = vector.extract_strided_slice %1089 {offsets = [0, 1], sizes = [32, 1], strides = [1, 1]} : vector<32x3xf32> to vector<32x1xf32>
    %1092 = vector.extract_strided_slice %1089 {offsets = [0, 2], sizes = [32, 1], strides = [1, 1]} : vector<32x3xf32> to vector<32x1xf32>
    %1093 = vector.broadcast %1091 : vector<32x1xf32> to vector<32x128xf32>
    %1094 = vector.broadcast %5 : vector<1x128xf32> to vector<32x128xf32>
    %1095 = arith.mulf %1093, %1094 : vector<32x128xf32>
    %1096 = vector.broadcast %1092 : vector<32x1xf32> to vector<32x128xf32>
    %1097 = arith.addf %1095, %1096 : vector<32x128xf32>
    %c0_264 = arith.constant 0 : index
    %c0_265 = arith.constant 0 : index
    %1098 = vector.load %arg8[%c0_264, %c0_265] : memref<32x16xf32, #tpu.memory_space<vmem>>, vector<32x16xf32>
    %cst_266 = arith.constant dense<0.000000e+00> : vector<32x128xf32>
    %1099 = tpu.matmul %1098, %1087, %cst_266 {dimension_numbers = #tpu.dot_dimension_numbers<[1], [0], [0], [1], [0, 0, 1, 1], [], []>} : vector<32x16xf32>, vector<16x128xf32>, vector<32x128xf32> -> vector<32x128xf32>
    %1100 = vector.broadcast %1090 : vector<32x1xf32> to vector<32x128xf32>
    %1101 = arith.addf %1099, %1100 : vector<32x128xf32>
    %1102 = arith.addf %1101, %1097 : vector<32x128xf32>
    %1103 = math.tanh %1102 : vector<32x128xf32>
    %c0_267 = arith.constant 0 : index
    %c0_268 = arith.constant 0 : index
    %1104 = vector.load %arg10[%c0_267, %c0_268] : memref<16x32xf32, #tpu.memory_space<vmem>>, vector<16x32xf32>
    %cst_269 = arith.constant dense<0.000000e+00> : vector<16x128xf32>
    %1105 = tpu.matmul %1104, %1103, %cst_269 {dimension_numbers = #tpu.dot_dimension_numbers<[1], [0], [0], [1], [0, 0, 1, 1], [], []>} : vector<16x32xf32>, vector<32x128xf32>, vector<16x128xf32> -> vector<16x128xf32>
    %c0_270 = arith.constant 0 : index
    %c0_271 = arith.constant 0 : index
    %1106 = vector.load %arg11[%c0_270, %c0_271] : memref<16x1xf32, #tpu.memory_space<vmem>>, vector<16x1xf32>
    %1107 = vector.broadcast %1106 : vector<16x1xf32> to vector<16x128xf32>
    %1108 = arith.addf %1105, %1107 : vector<16x128xf32>
    %1109 = arith.subf %1108, %1088 : vector<16x128xf32>
    %1110 = arith.mulf %1109, %1109 : vector<16x128xf32>
    %c128_i32 = arith.constant 128 : i32
    %1111 = arith.muli %arg0, %c128_i32 : i32
    %1112 = tpu.iota {dimensions = array<i32: 1>} : vector<1x128xi32>
    %1113 = vector.broadcast %1111 : i32 to vector<1x128xi32>
    %1114 = arith.addi %1113, %1112 : vector<1x128xi32>
    %c256_i32 = arith.constant 256 : i32
    %1115 = vector.broadcast %c256_i32 : i32 to vector<1x128xi32>
    %1116 = arith.cmpi slt, %1114, %1115 : vector<1x128xi32>
    %1117 = arith.extui %1116 : vector<1x128xi1> to vector<1x128xi32>
    %1118 = arith.sitofp %1117 : vector<1x128xi32> to vector<1x128xf32>
    %cst_272 = arith.constant dense<0.000000e+00> : vector<128xf32>
    %1119 = vector.multi_reduction <add>, %1110, %cst_272 [0] : vector<16x128xf32> to vector<128xf32>
    %1120 = vector.shape_cast %1119 : vector<128xf32> to vector<1x128xf32>
    %1121 = arith.mulf %1120, %1118 : vector<1x128xf32>
    %c0_273 = arith.constant 0 : index
    %c0_274 = arith.constant 0 : index
    %1122 = vector.load %arg12[%c0_273, %c0_274] : memref<1x128xf32, #tpu.memory_space<vmem>>, vector<1x128xf32>
    tpu.vector_store %arg12[%c0_273, %c0_274], %1121 {strides = array<i32>} : memref<1x128xf32, #tpu.memory_space<vmem>>, vector<1x128xf32>,
    %1123 = arith.mulf %1086, %1118 : vector<1x128xf32>
    %c0_275 = arith.constant 0 : index
    %c0_276 = arith.constant 0 : index
    %1124 = vector.load %arg13[%c0_275, %c0_276] : memref<1x128xf32, #tpu.memory_space<vmem>>, vector<1x128xf32>
    tpu.vector_store %arg13[%c0_275, %c0_276], %1123 {strides = array<i32>} : memref<1x128xf32, #tpu.memory_space<vmem>>, vector<1x128xf32>,
    return
  }
  func.func @transform_0(%arg0: i32, %arg1: memref<3xf32, #tpu.memory_space<smem>>) -> (i32, i32) {
    %c0_i32 = arith.constant 0 : i32
    %c0_i32_0 = arith.constant 0 : i32
    return %c0_i32, %arg0 : i32, i32
  }
  func.func @transform_1(%arg0: i32, %arg1: memref<3xf32, #tpu.memory_space<smem>>) -> (i32, i32) {
    %c0_i32 = arith.constant 0 : i32
    %c0_i32_0 = arith.constant 0 : i32
    return %c0_i32, %arg0 : i32, i32
  }
  func.func @transform_2(%arg0: i32, %arg1: memref<3xf32, #tpu.memory_space<smem>>) -> (i32, i32) {
    %c0_i32 = arith.constant 0 : i32
    %c0_i32_0 = arith.constant 0 : i32
    return %c0_i32, %arg0 : i32, i32
  }
  func.func @transform_3(%arg0: i32, %arg1: memref<3xf32, #tpu.memory_space<smem>>) -> (i32, i32) {
    %c0_i32 = arith.constant 0 : i32
    %c0_i32_0 = arith.constant 0 : i32
    %c0_i32_1 = arith.constant 0 : i32
    return %c0_i32, %c0_i32_0 : i32, i32
  }
  func.func @transform_4(%arg0: i32, %arg1: memref<3xf32, #tpu.memory_space<smem>>) -> (i32, i32) {
    %c0_i32 = arith.constant 0 : i32
    %c0_i32_0 = arith.constant 0 : i32
    %c0_i32_1 = arith.constant 0 : i32
    return %c0_i32, %c0_i32_0 : i32, i32
  }
  func.func @transform_5(%arg0: i32, %arg1: memref<3xf32, #tpu.memory_space<smem>>) -> (i32, i32) {
    %c0_i32 = arith.constant 0 : i32
    %c0_i32_0 = arith.constant 0 : i32
    %c0_i32_1 = arith.constant 0 : i32
    return %c0_i32, %c0_i32_0 : i32, i32
  }
  func.func @transform_6(%arg0: i32, %arg1: memref<3xf32, #tpu.memory_space<smem>>) -> (i32, i32) {
    %c0_i32 = arith.constant 0 : i32
    %c0_i32_0 = arith.constant 0 : i32
    %c0_i32_1 = arith.constant 0 : i32
    return %c0_i32, %c0_i32_0 : i32, i32
  }
  func.func @transform_7(%arg0: i32, %arg1: memref<3xf32, #tpu.memory_space<smem>>) -> (i32, i32) {
    %c0_i32 = arith.constant 0 : i32
    %c0_i32_0 = arith.constant 0 : i32
    %c0_i32_1 = arith.constant 0 : i32
    return %c0_i32, %c0_i32_0 : i32, i32
  }
  func.func @transform_8(%arg0: i32, %arg1: memref<3xf32, #tpu.memory_space<smem>>) -> (i32, i32) {
    %c0_i32 = arith.constant 0 : i32
    %c0_i32_0 = arith.constant 0 : i32
    %c0_i32_1 = arith.constant 0 : i32
    return %c0_i32, %c0_i32_0 : i32, i32
  }
  func.func @transform_9(%arg0: i32, %arg1: memref<3xf32, #tpu.memory_space<smem>>) -> (i32, i32) {
    %c0_i32 = arith.constant 0 : i32
    %c0_i32_0 = arith.constant 0 : i32
    %c0_i32_1 = arith.constant 0 : i32
    return %c0_i32, %c0_i32_0 : i32, i32
  }
  func.func @transform_10(%arg0: i32, %arg1: memref<3xf32, #tpu.memory_space<smem>>) -> (i32, i32) {
    %c0_i32 = arith.constant 0 : i32
    %c0_i32_0 = arith.constant 0 : i32
    return %c0_i32, %arg0 : i32, i32
  }
  func.func @transform_11(%arg0: i32, %arg1: memref<3xf32, #tpu.memory_space<smem>>) -> (i32, i32) {
    %c0_i32 = arith.constant 0 : i32
    %c0_i32_0 = arith.constant 0 : i32
    return %c0_i32, %arg0 : i32, i32
  }
}

</mosaic_0001>

<bundles_post_ra>
// kernel: tpu_custom_call.1
= control target key start
LH: loop header
LB: loop body
LE: loop exit
PB: predicated region body
PF: predicated region fallthrough
CT: control target
= control target key end

     0   :  { %s3269_s24 = smov [#allocation5]   ;;  %s4659_s0 = inlined_call_operand.vmem [shape: f32[3], index: 0, kind: input, shape index: {}]   ;;  %s4660_s1 = inlined_call_operand.vmem [shape: f32[16,256], index: 1, kind: input, shape index: {}]   ;;  %s4661_s2 = inlined_call_operand.vmem [shape: f32[16,256], index: 2, kind: input, shape index: {}]   ;;  %s4662_s3 = inlined_call_operand.vmem [shape: f32[1,256], index: 3, kind: input, shape index: {}]   ;;  %s4663_s4 = inlined_call_operand.vmem [shape: f32[16,16], index: 4, kind: input, shape index: {}]   ;;  %s4664_s5 = inlined_call_operand.vmem [shape: f32[16,16], index: 5, kind: input, shape index: {}]   ;;  %s4665_s6 = inlined_call_operand.vmem [shape: f32[16,5], index: 6, kind: input, shape index: {}]   ;;  %s4666_s7 = inlined_call_operand.vmem [shape: f32[32,16], index: 7, kind: input, shape index: {}]   ;;  %s4667_s8 = inlined_call_operand.vmem [shape: f32[32,3], index: 8, kind: input, shape index: {}]   ;;  %s4668_s9 = inlined_call_operand.hbm [shape: f32[16,32], index: 9, kind: input, shape index: {}]   ;;  %s4669_s10 = inlined_call_operand.vmem [shape: f32[16,1], index: 10, kind: input, shape index: {}]   ;;  %s4670_s11 = inlined_call_operand.hbm [shape: f32[1,256], index: 11, kind: output, shape index: {0}]   ;;  %s4671_s12 = inlined_call_operand.hbm [shape: f32[1,256], index: 12, kind: output, shape index: {1}]  }
   0x1   :  { %4679 = sst [smem:[#allocation37_spill]] %s4668_s9  ;;  %s19_s23 = sshll.u32 %s4659_s0, 4  ;;  %s20_s23 = int_to_ptr.vmem [resolvable:$true] %s19_s23 }
   0x2   :  { %22 = dma.vmem_to_smem %s20_s23, 16, %s3269_s24, [#allocation4] }
   0x3   :  { %3239 = dma.done.wait [#allocation4], 16 }
   0x4   :  { %3240 = vsyncadd [#allocation4], 4294967280 }
   0x5   :  { %25 = sfence }
   0x6   :  { %26 = vsyncpa [#allocation9], 0 }
   0x7   :  { %27 = vsyncpa [#allocation10], 0 }
   0x8   :  { %29 = vsyncpa [#allocation10 + $0x1], 0 }
   0x9   :  { %30 = vsyncpa [#allocation13], 0 }
   0xa   :  { %32 = vsyncpa [#allocation13 + $0x1], 0  ;;  %s3347_s25 = smov 0   ;;  %s3349_s26 = smov 0  }
   0xb   :  { %s3351_s27 = smov 0   ;;  %s3353_s28 = smov 0  }
   0xc LB: > { %s3368_s0 = sadd.s32 4294967295, %s3267_s28   ;;  %s2755_s29 = sadd.s32 4294967294, %s3267_s28   ;;  %s3267_s28 = sphi %s3353_s28, %s4729_s28   ;;  %s3263_s27 = sphi %s3351_s27, %s4733_s27   ;;  %s3259_s26 = sphi %s3349_s26, %s4732_s26   ;;  %s3255_s25 = sphi %s3347_s25, %s4731_s25  }
   0xd   : > { %s3372_s30 = sadd.s32 1, %s3267_s28   ;;  %s45_s13 = sadd.s32 1, %s3263_s27 }
   0xe   : > { %4680 = sst [smem:[#allocation18_spill]] %s3372_s30  ;;  %s42_s14 = ssub.s32 %s3267_s28, %s3372_s30 }
   0xf   : > { %p52_p0 = scmp.ne.s32.totalorder %s3263_s27, %s3259_s26  ;;  %p43_p1 = scmp.eq.s32.totalorder %s42_s14, 0 }
  0x10   : > { %p53_p2 = scmp.eq.s32.totalorder %s3267_s28, 0  ;;  %p281_p3 = scmp.eq.s32.totalorder %s3368_s0, 1 }
  0x11   : > { %p286_p4 = scmp.ne.s32.totalorder %s3259_s26, %s3255_s25  ;;  %p287_p7 = scmp.eq.s32.totalorder %s2755_s29, 1 }
  0x12   : > { %s3384_s15 = scalar_select %p43_p1, %s3263_s27, %s45_s13  }
  0x13   : > { %p3386_p5 = por %p53_p2, %p52_p0  ;;  %p3390_p6 = por %p281_p3, %p52_p0 }
  0x14   : > { %4681 = sst [smem:[#allocation19_spill]] %s3384_s15  ;;  %p2756_p8 = scmp.ge.s32.totalorder %s3267_s28, 1 }
  0x15   : > { %p320_p9 = scmp.lt.s32.totalorder %s3267_s28, 3  ;;  %p3396_p10 = por %p287_p7, %p286_p4 }
  0x16   : > { %p2848_p11 = scmp.eq.s32.totalorder %s3368_s0, 0  ;;  %s4687_s9 = sld [smem:[#allocation37_spill]] }
  0x17   : > { %s4684_s18 = scalar_select %p3396_p10, 1, 0 }
  0x18   : > { %p3401_p12 = pnand %p2756_p8, %p320_p9  ;;  %s3270_s23 = smov [#allocation8]  }
  0x19   : > { %4685 = sst [smem:[#allocation20_spill]] %s4684_s18  ;;  %s348_s24 = sshll.u32 %s3270_s23, 4  ;;  %s349_s24 = int_to_ptr.vmem [resolvable:$true] %s348_s24 }
  0x1a   : > { %p2837_p13 = pneg %p3401_p12  ;;  %s3271_s29 = smov 128  }
  0x1b   : > { %s3272_s13 = smov 8   ;;  %p2758_p1 = scmp.ge.s32.totalorder %s3267_s28, 2 }
  0x1c   : > { %s346_s22 = sshll.u32 %s4687_s9, 4  ;;  %p2838_p0 = pnand %p2848_p11, %p2837_p13  ;;  %s347_s22 = int_to_ptr.hbm [resolvable:$true] %s346_s22 }
  0x1d   : > { %361 = sbr.rel (%p2758_p1) target bundleno = 46 (0x2e), region = 44 }
  0x1e   : > { %2840 = dma.hbm_to_vmem [thread:$0]  (!%p2838_p0), %s347_s22, 256, %s349_s24, [#allocation9], %s3271_s29, %s3271_s29, %s3272_s13  }
  0x22   : > { %364 = sbr.rel (!%p3386_p5) target bundleno = 40 (0x28), region = 48  ;;  %s366_s14 = sand.u32 (%p3386_p5), 1, %s3263_s27  }
  0x23   : > { %s2760_s20 = sshll.u32 (%p3386_p5), %s3267_s28, 3  ;;  %s2759_s21 = sshll.u32 (%p3386_p5), %s366_s14, 4 }
  0x24   : > { %s370_s15 = scalar_lea.vmem (%p3386_p5), %s4660_s1, %s2760_s20  ;;  %s368_s22 = scalar_lea.vmem (%p3386_p5), [#allocation6], %s2759_s21 }
  0x25   : > { %v401_v0 = vld [vmem:[%s370_s15] sm:$0xff] (%p3386_p5)  ;;  %v403_v1 = vld [vmem:[%s370_s15 + $0x10] sm:$0xff] (%p3386_p5) }
  0x26   : > { %402 = vst [vmem:[%s368_s22] sm:$0xff] (%p3386_p5), %v401_v0 }
  0x27   : > { %404 = vst [vmem:[%s368_s22 + $0x8] sm:$0xff] %v403_v1 }
  0x28 PF: > { %410 = sbr.rel (!%p3386_p5) target bundleno = 46 (0x2e), region = 86  ;;  %s412_s24 = sand.u32 (%p3386_p5), 1, %s3263_s27  }
  0x29   : > { %s2762_s29 = sshll.u32 (%p3386_p5), %s3267_s28, 3  ;;  %s2761_s13 = sshll.u32 (%p3386_p5), %s412_s24, 4 }
  0x2a   : > { %s416_s18 = scalar_lea.vmem (%p3386_p5), %s4661_s2, %s2762_s29  ;;  %s414_s9 = scalar_lea.vmem (%p3386_p5), [#allocation7], %s2761_s13 }
  0x2b   : > { %v447_v2 = vld [vmem:[%s416_s18] sm:$0xff] (%p3386_p5)  ;;  %v449_v3 = vld [vmem:[%s416_s18 + $0x10] sm:$0xff] (%p3386_p5) }
  0x2c   : > { %448 = vst [vmem:[%s414_s9] sm:$0xff] (%p3386_p5), %v447_v2 }
  0x2d   : > { %450 = vst [vmem:[%s414_s9 + $0x8] sm:$0xff] %v449_v3 }
  0x2e PF: > { %465 = sbr.rel (%p3401_p12) target bundleno = 1163 (0x48b), region = 128 }
  0x33   : > { %s3432_s15 = sand.u32 1, %s3259_s26  }
  0x34   : > { %s2764_s16 = sshll.u32 %s3432_s15, 4 }
  0x35   : > { %s3435_s20 = scalar_lea.vmem [#allocation6], %s2764_s16  ;;  %s3437_s30 = scalar_lea.vmem [#allocation7], %s2764_s16 }
  0x36   : > { %3242 = dma.done.wait (%p2848_p11), [#allocation9], 256  }
  0x37   : > { %3244 = vsyncadd (%p2848_p11), [#allocation9], 4294967040  ;;  %v3273_v4 = vmov 1   ;;  %v3274_v5 = vmov 0   ;;  %v3448_v6 = vld [vmem:[%s4665_s6] sm:$0xff]  ;;  %v3455_v7 = vld [vmem:[%s4665_s6 + $0x8] sm:$0xff]  ;;  %s2623_s13 = scalar_lea.hbm %s4671_s12, %s3368_s0 }
  0x38   : > { %2894 = vset.pattern.permute.xlu1 %v3273_v4  ;;  %2893 = vset.pattern.permute.xlu0 %v3274_v5  ;;  %v3275_v8 = vmov 2   ;;  %v3463_v9 = vld [vmem:[%s3435_s20] sm:$0xff]  ;;  %v3276_v13 = vmov 3   ;;  %v3477_v17 = vld [vmem:[%s3435_s20 + $0x8] sm:$0xff]  ;;  %vm641_vm0 = vcmask 130048   ;;  %p529_p2 = scmp.lt.s32.totalorder %s3368_s0, 1 }
  0x39   : > { %626 = vperm.xlu1 %2894, %v3448_v6   ;;  %614 = vperm.xlu0 %2893, %v3448_v6   ;;  %v622_v10 = vperm.slane %v3463_v9, 0  ;;  %v757_v11 = vperm.slane %v3463_v9, 1  ;;  %v869_v12 = vperm.slane %v3463_v9, 2  ;;  %v980_v14 = vperm.slane %v3463_v9, 3  ;;  %v2413_v16 = vld [vmem:[%s4667_s8 + $0x18] sm:$0xff]  ;;  %v3528_v56 = vld [vmem:[%s4667_s8 + $0x8] sm:$0xff] }
  0x3a   : > { %2895 = vset.pattern.permute.xlu2 %v3275_v8  ;;  %v1091_v15 = vperm.slane %v3463_v9, 4  ;;  %v1202_v20 = vperm.slane %v3463_v9, 5  ;;  %v2073_v25 = vperm.slane %v3477_v17, 5  ;;  %v1313_v32 = vperm.slane %v3463_v9, 6  ;;  %v3533_v57 = vld [vmem:[%s4667_s8 + $0x10] sm:$0xff]  ;;  %v606_v58 = vld [vmem:[%s4663_s4] sm:$0xff] }
  0x3b   : > { %660 = vperm.xlu2 %2895, %v3448_v6   ;;  %v607_v59 = vld [vmem:[%s4663_s4 + $0x8] sm:$0xff]  ;;  %v609_v62 = vld [vmem:[%s4664_s5] sm:$0xff]  ;;  %v1424_v2 = vperm.slane %v3463_v9, 7  ;;  %v1535_v3 = vperm.slane %v3477_v17, 0  ;;  %s530_s9 = scalar_select %p529_p2, %s3368_s0, 1 }
  0x3c   : > { %v610_v63 = vld [vmem:[%s4664_s5 + $0x8] sm:$0xff]  ;;  %s3746_s21 = sld [smem:[#allocation5 + $0x2]]  ;;  %vm751_vm3 = vcmp.gt.f32.partialorder %v3463_v9, 0.00025984927  ;;  %s2602_s16 = scalar_lea.sflag [#allocation13], %s3432_s15 }
  0x3d   : > { %s3699_s19 = scalar_lea.vmem %s4662_s3, %s530_s9  ;;  %s3760_s23 = sld [smem:[#allocation5]] }
  0x3e   : > { %s3767_s22 = sld [smem:[#allocation5 + $0x1]]  ;;  %s2627_s9 = sshll.u32 %s2623_s13, 4  ;;  %s2628_s9 = int_to_ptr.hbm [resolvable:$true] %s2627_s9 }
  0x3f   : > { %s3181_s18 = sshra.s32 %s2628_s9, 4  ;;  %s3182_s18 = int_to_ptr.hbm [resolvable:$true] %s3181_s18 }
  0x40   : > { %p3188_p7 = scmp.lt.s32.totalorder %s3182_s18, %s4671_s12 }
  0x41   : > { %630 = vperm.xlu1 %2894, %v3455_v7   ;;  %619 = vperm.xlu0 %2893, %v3455_v7  }
  0x43   : > { %664 = vperm.xlu2 %2895, %v3455_v7  }
  0x49   : > { %2896 = vset.pattern.permute.xlu0 %v3276_v13  ;;  %2897 = vset.pattern.permute.xlu1 %v3276_v13 }
  0x4a   : > { %703 = vperm.xlu0 %2896, %v3448_v6   ;;  %707 = vperm.xlu1 %2897, %v3455_v7  }
  0x4b   : > { %2898 = vset.pattern.permute.xlu2 %v3273_v4 }
  0x4c   : > { %2431 = vperm.xlu2 %2898, %v2413_v16  }
  0x52   : > { %2901 = vset.pattern.permute.xlu0 %v3274_v5  ;;  %2899 = vset.pattern.permute.xlu1 %v3273_v4 }
  0x53   : > { %2478 = vperm.xlu0 %2901, %v2413_v16   ;;  %2426 = vperm.xlu1 %2899, %v3533_v57  }
  0x54   : > { %2900 = vset.pattern.permute.xlu2 %v3275_v8 }
  0x55   : > { %2454 = vperm.xlu2 %2900, %v2413_v16   ;;  %v3560_v16 = vpack.c.bf16 %v610_v63, %v609_v62 }
  0x5b   : > { %2904 = vset.pattern.permute.xlu0 %v3275_v8  ;;  %2421 = vperm.xlu1 %2899, %v3528_v56  }
  0x5c   : > { %2446 = vperm.xlu0 %2904, %v3528_v56  }
  0x5d   : > { %2450 = vperm.xlu2 %2900, %v3533_v57  }
  0x63   : > { %2902 = vset.pattern.permute.xlu1 %v3274_v5 }
  0x64   : > { %2474 = vperm.xlu1 %2902, %v3533_v57  }
  0x65   : > { %2903 = vset.pattern.permute.xlu2 %v3273_v4 }
  0x6c   : > { %2470 = vperm.xlu1 %2902, %v3528_v56  }
  0xab   : > { %v3479_v18 = vpop.permute.xlu1 %626  ;;  %v3481_v19 = vpop.permute.xlu0 %614 }
  0xac   : > { %v623_v21 = vmul.f32 %v622_v10, %v3481_v19  ;;  %v758_v22 = vmul.f32 %v757_v11, %v3481_v19  ;;  %v870_v23 = vmul.f32 %v869_v12, %v3481_v19  ;;  %v981_v24 = vmul.f32 %v980_v14, %v3481_v19 }
  0xad   : > { %v1092_v28 = vmul.f32 %v1091_v15, %v3481_v19  ;;  %v1203_v30 = vmul.f32 %v1202_v20, %v3481_v19  ;;  %v2074_v33 = vmul.f32 %v2073_v25, %v3481_v19  ;;  %v1314_v45 = vmul.f32 %v1313_v32, %v3481_v19 }
  0xae   : > { %v633_v26 = vadd.f32 %v3479_v18, %v623_v21  ;;  %v760_v27 = vadd.f32 %v758_v22, %v3479_v18  ;;  %v872_v29 = vadd.f32 %v870_v23, %v3479_v18  ;;  %v983_v31 = vadd.f32 %v981_v24, %v3479_v18 }
  0xaf   : > { %v1094_v34 = vadd.f32 %v1092_v28, %v3479_v18  ;;  %v1205_v36 = vadd.f32 %v1203_v30, %v3479_v18  ;;  %v3507_v37 = vadd.f32 %v2074_v33, %v3479_v18  ;;  %v1316_v60 = vadd.f32 %v1314_v45, %v3479_v18 }
  0xb0   : > { %2911 = vtanh.f32 %v633_v26 }
  0xb1   : > { %2913 = vtanh.f32 %v760_v27 }
  0xb2   : > { %2915 = vtanh.f32 %v872_v29 }
  0xb3   : > { %v3502_v35 = vpop.permute.xlu0 %619  ;;  %v3513_v42 = vpop.permute.xlu1 %630  ;;  %2917 = vtanh.f32 %v983_v31 }
  0xb4   : > { %v624_v38 = vmul.f32 %v622_v10, %v3502_v35  ;;  %v759_v39 = vmul.f32 %v757_v11, %v3502_v35  ;;  %v871_v40 = vmul.f32 %v869_v12, %v3502_v35  ;;  %v982_v41 = vmul.f32 %v980_v14, %v3502_v35 }
  0xb5   : > { %v1093_v43 = vmul.f32 %v1091_v15, %v3502_v35  ;;  %v1204_v44 = vmul.f32 %v1202_v20, %v3502_v35  ;;  %2919 = vtanh.f32 %v1094_v34  ;;  %v1315_v51 = vmul.f32 %v1313_v32, %v3502_v35 }
  0xb6   : > { %v634_v46 = vadd.f32 %v3513_v42, %v624_v38  ;;  %v761_v47 = vadd.f32 %v759_v39, %v3513_v42  ;;  %v873_v48 = vadd.f32 %v871_v40, %v3513_v42  ;;  %v2912_v49 = vpop.eup %2911  ;;  %v984_v50 = vadd.f32 %v982_v41, %v3513_v42 }
  0xb7   : > { %2921 = vtanh.f32 %v1205_v36  ;;  %v2914_v52 = vpop.eup %2913  ;;  %v1095_v53 = vadd.f32 %v1093_v43, %v3513_v42  ;;  %v1206_v55 = vadd.f32 %v1204_v44, %v3513_v42  ;;  %v1317_v0 = vadd.f32 %v1315_v51, %v3513_v42 }
  0xb8   : > { %2923 = vtanh.f32 %v634_v46  ;;  %v2916_v54 = vpop.eup %2915  ;;  %v3557_v11 = vpack.c.bf16 %v607_v59, %v606_v58  ;;  %v2184_v12 = vperm.slane %v3477_v17, 6  ;;  %v637_v14 = vmul.f32 %v2912_v49, %v2912_v49 }
  0xb9   : > { %2925 = vtanh.f32 %v761_v47  ;;  %v2918_v61 = vpop.eup %2917  ;;  %v764_v15 = vmul.f32 %v2914_v52, %v2914_v52  ;;  %v1426_v23 = vmul.f32 %v1424_v2, %v3502_v35  ;;  %v876_v27 = vmul.f32 %v2916_v54, %v2916_v54 }
  0xba   : > { %2927 = vtanh.f32 %v873_v48  ;;  %v1537_v29 = vmul.f32 %v1535_v3, %v3502_v35  ;;  %v2185_v40 = vmul.f32 %v2184_v12, %v3481_v19  ;;  %v1425_v48 = vmul.f32 %v1424_v2, %v3481_v19  ;;  %v2410_v2 = vld [vmem:[%s4667_s8] sm:$0xff] }
  0xbb   : > { %2929 = vtanh.f32 %v984_v50  ;;  %v2920_v1 = vpop.eup %2919  ;;  %v1428_v62 = vadd.f32 %v1426_v23, %v3513_v42  ;;  %2416 = vperm.xlu2 %2903, %v2410_v2   ;;  %2466 = vperm.xlu1 %2902, %v2410_v2  }
  0xbc   : > { %2931 = vtanh.f32 %v1095_v53  ;;  %v1098_v34 = vmul.f32 %v2920_v1, %v2920_v1  ;;  %v987_v53 = vmul.f32 %v2918_v61, %v2918_v61  ;;  %v1539_v59 = vadd.f32 %v1537_v29, %v3513_v42 }
  0xbd   : > { %v3555_v10 = vpop.eup %2921  ;;  %2933 = vtanh.f32 %v1206_v55  ;;  %v3579_v63 = vadd.f32 %v2185_v40, %v3479_v18 }
  0xbe   : > { %v2924_v13 = vpop.eup %2923  ;;  %2935 = vtanh.f32 %v1316_v60 }
  0xbf   : > { %v2926_v20 = vpop.eup %2925  ;;  %v639_v21 = vpack.c.bf16 %v2924_v13, %v2912_v49  ;;  %v638_v22 = vmul.f32 %v2924_v13, %v2924_v13  ;;  %2937 = vtanh.f32 %v1317_v0  ;;  %v1536_v49 = vmul.f32 %v1535_v3, %v3481_v19 }
  0xc0   : > { %v2928_v24 = vpop.eup %2927  ;;  %v766_v26 = vpack.c.bf16 %v2926_v20, %v2914_v52  ;;  %v765_v28 = vmul.f32 %v2926_v20, %v2926_v20  ;;  %v1427_v13 = vadd.f32 %v1425_v48, %v3479_v18  ;;  %2939 = vtanh.f32 %v1539_v59 }
  0xc1   : > { %v2930_v30 = vpop.eup %2929  ;;  %677 = vmatpush.bf16.msra.mxu1 %v639_v21  ;;  %v878_v31 = vpack.c.bf16 %v2928_v24, %v2916_v54  ;;  %v640_v32 = vpack.c.bf16 %v638_v22, %v637_v14  ;;  %v877_v33 = vmul.f32 %v2928_v24, %v2928_v24  ;;  %v2295_v54 = vperm.slane %v3477_v17, 7 }
  0xc2   : > { %v2932_v36 = vpop.eup %2931  ;;  %789 = vmatpush.bf16.msra.mxu3 %v766_v26  ;;  %v989_v38 = vpack.c.bf16 %v2930_v30, %v2918_v61  ;;  %v767_v39 = vpack.c.bf16 %v765_v28, %v764_v15  ;;  %v988_v45 = vmul.f32 %v2930_v30, %v2930_v30  ;;  %v1538_v0 = vadd.f32 %v1536_v49, %v3479_v18 }
  0xc3   : > { %v2934_v41 = vpop.eup %2933  ;;  %652 = vmatpush.bf16.msra.mxu2 %v640_v32  ;;  %v879_v43 = vpack.c.bf16 %v877_v33, %v876_v27  ;;  %v1099_v44 = vmul.f32 %v2932_v36, %v2932_v36  ;;  %v1100_v47 = vpack.c.bf16 %v2932_v36, %v2920_v1  ;;  %v3277_v1 = vmov 4   ;;  %2905 = vset.pattern.permute.xlu2 %v3275_v8 }
  0xc4   : > { %v2936_v46 = vpop.eup %2935  ;;  %2772 = vmatmul.msk.bf16.vlgmr.msra.gmra.mxu1 %vm641_vm0, %v3557_v11  ;;  %v1211_v52 = vpack.c.bf16 %v2934_v41, %v3555_v10  ;;  %v990_v60 = vpack.c.bf16 %v988_v45, %v987_v53  ;;  %2907 = vset.pattern.permute.xlu0 %v3277_v1  ;;  %v2296_v3 = vmul.f32 %v2295_v54, %v3481_v19  ;;  %2941 = vtanh.f32 %v1428_v62 }
  0xc5   : > { %901 = vmatpush.bf16.msrb.mxu1 %v878_v31  ;;  %v2938_v50 = vpop.eup %2937  ;;  %887 = vmatpush.bf16.msra.mxu0 %v879_v43  ;;  %v1101_v51 = vpack.c.bf16 %v1099_v44, %v1098_v34  ;;  %v1320_v55 = vmul.f32 %v2936_v46, %v2936_v46  ;;  %2943 = vtanh.f32 %v1538_v0  ;;  %v1740_v20 = vperm.slane %v3477_v17, 2 }
  0xc6   : > { %1012 = vmatpush.bf16.msrb.mxu3 %v989_v38  ;;  %v1321_v58 = vmul.f32 %v2938_v50, %v2938_v50  ;;  %2771 = vmatmul.msk.bf16.vlgmr.msra.gmra.mxu2 %vm641_vm0, %v3560_v16  ;;  %v3596_v14 = vadd.f32 %v2296_v3, %v3479_v18  ;;  %2945 = vtanh.f32 %v1427_v13  ;;  %v2940_v15 = vpop.eup %2939  ;;  %v1628_v22 = vperm.slane %v3477_v17, 1 }
  0xc7   : > { %775 = vmatpush.bf16.msrb.mxu2 %v767_v39  ;;  %2775 = vmatmul.msk.bf16.vlgmr.msra.gmra.mxu3 %vm641_vm0, %v3557_v11  ;;  %v1742_v23 = vmul.f32 %v1740_v20, %v3502_v35  ;;  %v1322_v4 = vpack.c.bf16 %v2938_v50, %v2936_v46  ;;  %v1210_v24 = vmul.f32 %v2934_v41, %v2934_v41  ;;  %v1962_v39 = vperm.slane %v3477_v17, 4 }
  0xc8   : > { %2777 = vmatmul.msk.bf16.vlgmr.msra.gmra.mxu0 %vm641_vm0, %v3560_v16  ;;  %v1323_v61 = vpack.c.bf16 %v1321_v58, %v1320_v55  ;;  %691 = vperm.xlu0 %2907, %v3455_v7   ;;  %v1543_v26 = vmul.f32 %v2940_v15, %v2940_v15  ;;  %v1630_v27 = vmul.f32 %v1628_v22, %v3502_v35  ;;  %v1851_v41 = vperm.slane %v3477_v17, 3  ;;  %v3674_v17 = vpop.permute.xlu2 %660 }
  0xc9   : > { %1123 = vmatpush.bf16.msra.mxu1 %v1100_v47  ;;  %1109 = vmatpush.bf16.msrb.mxu0 %v1101_v51  ;;  %v1741_v57 = vmul.f32 %v1740_v20, %v3481_v19  ;;  %v1209_v30 = vmul.f32 %v3555_v10, %v3555_v10  ;;  %v1629_v32 = vmul.f32 %v1628_v22, %v3481_v19 }
  0xca   : > { %1234 = vmatpush.bf16.msra.mxu3 %v1211_v52  ;;  %v2942_v21 = vpop.eup %2941  ;;  %2442 = vperm.xlu2 %2905, %v2410_v2   ;;  %v1744_v33 = vadd.f32 %v1742_v23, %v3513_v42  ;;  %v1632_v8 = vadd.f32 %v1630_v27, %v3513_v42  ;;  %v1964_v44 = vmul.f32 %v1962_v39, %v3502_v35 }
  0xcb   : > { %998 = vmatpush.bf16.msra.mxu2 %v990_v60  ;;  %v2944_v7 = vpop.eup %2943  ;;  %v1212_v34 = vpack.c.bf16 %v1210_v24, %v1209_v30  ;;  %v1743_v10 = vadd.f32 %v1741_v57, %v3479_v18  ;;  %v1631_v38 = vadd.f32 %v1629_v32, %v3479_v18  ;;  %v1432_v46 = vmul.f32 %v2942_v21, %v2942_v21 }
  0xcc   : > { %v2946_v28 = vpop.eup %2945  ;;  %v1542_v31 = vmul.f32 %v2944_v7, %v2944_v7  ;;  %2947 = vtanh.f32 %v1744_v33  ;;  %v1544_v45 = vpack.c.bf16 %v2940_v15, %v2944_v7  ;;  %v1853_v48 = vmul.f32 %v1851_v41, %v3502_v35 }
  0xcd   : > { %1331 = vmatpush.bf16.msra.mxu0 %v1323_v61  ;;  %v1433_v29 = vpack.c.bf16 %v2942_v21, %v2946_v28  ;;  %2949 = vtanh.f32 %v1632_v8  ;;  %v1431_v51 = vmul.f32 %v2946_v28, %v2946_v28  ;;  %v1852_v53 = vmul.f32 %v1851_v41, %v3481_v19 }
  0xce   : > { %v1545_v36 = vpack.c.bf16 %v1543_v26, %v1542_v31  ;;  %2951 = vtanh.f32 %v1743_v10  ;;  %v1966_v55 = vadd.f32 %v1964_v44, %v3513_v42  ;;  %v1855_v60 = vadd.f32 %v1853_v48, %v3513_v42  ;;  %v3708_v48 = vpop.permute.xlu0 %703 }
  0xcf   : > { %2953 = vtanh.f32 %v1631_v38  ;;  %v1434_v58 = vpack.c.bf16 %v1432_v46, %v1431_v51  ;;  %v2075_v15 = vmul.f32 %v2073_v25, %v3502_v35  ;;  %v2297_v30 = vmul.f32 %v2295_v54, %v3502_v35 }
  0xd0   : > { %2909 = vset.pattern.permute.xlu0 %v3274_v5  ;;  %2955 = vtanh.f32 %v1966_v55 }
  0xd1   : > { %2957 = vtanh.f32 %v1855_v60 }
  0xd2   : > { %2906 = vset.pattern.permute.xlu2 %v3277_v1  ;;  %v2948_v56 = vpop.eup %2947  ;;  %v2186_v1 = vmul.f32 %v2184_v12, %v3502_v35 }
  0xd3   : > { %687 = vperm.xlu2 %2906, %v3448_v6   ;;  %v2950_v40 = vpop.eup %2949  ;;  %v1748_v47 = vmul.f32 %v2948_v56, %v2948_v56  ;;  %v1963_v6 = vmul.f32 %v1962_v39, %v3481_v19  ;;  %v1854_v19 = vadd.f32 %v1852_v53, %v3479_v18 }
  0xd4   : > { %2778 = vmatmul.msk.bf16.vlgmr.msrb.gmra.mxu1 %vm641_vm0, %v3557_v11  ;;  %v2952_v43 = vpop.eup %2951  ;;  %v1636_v3 = vmul.f32 %v2950_v40, %v2950_v40  ;;  %v2188_v12 = vadd.f32 %v2186_v1, %v3513_v42 }
  0xd5   : > { %1345 = vmatpush.bf16.msrb.mxu1 %v1322_v4  ;;  %v2954_v49 = vpop.eup %2953  ;;  %v1747_v52 = vmul.f32 %v2952_v43, %v2952_v43  ;;  %v1965_v62 = vadd.f32 %v1963_v6, %v3479_v18  ;;  %v1749_v2 = vpack.c.bf16 %v2948_v56, %v2952_v43  ;;  %v2077_v4 = vadd.f32 %v2075_v15, %v3513_v42  ;;  %v2910_v43 = vld [vmem:[%s3699_s19] ss:$0 sm:$0xff] }
  0xd6   : > { %2774 = vmatmul.msk.bf16.vlgmr.msrb.gmra.mxu2 %vm641_vm0, %v3560_v16  ;;  %v1637_v50 = vpack.c.bf16 %v2950_v40, %v2954_v49  ;;  %v1635_v21 = vmul.f32 %v2954_v49, %v2954_v49  ;;  %v540_v49 = vld [vmem:[%s3699_s19] sm:$0x1] }
  0xd7   : > { %2781 = vmatmul.msk.bf16.vlgmr.msrb.gmra.mxu3 %vm641_vm0, %v3557_v11  ;;  %1220 = vmatpush.bf16.msrb.mxu2 %v1212_v34  ;;  %v1750_v59 = vpack.c.bf16 %v1748_v47, %v1747_v52  ;;  %2959 = vtanh.f32 %v1965_v62  ;;  %v2299_v34 = vadd.f32 %v2297_v30, %v3513_v42  ;;  %v2769_v6 = vmul.f32 -1.442695, %v540_v49  ;;  %v3715_v52 = vpop.permute.xlu0 %2478 }
  0xd8   : > { %1456 = vmatpush.bf16.msrb.mxu3 %v1433_v29  ;;  %2783 = vmatmul.msk.bf16.vlgmr.msrb.gmra.mxu0 %vm641_vm0, %v3560_v16  ;;  %2961 = vtanh.f32 %v1854_v19  ;;  %v1638_v7 = vpack.c.bf16 %v1636_v3, %v1635_v21  ;;  %4690 = vst [vmem:[#allocation23_spill] sm:$0xff] %v3715_v52 }
  0xd9   : > { %1553 = vmatpush.bf16.msrb.mxu0 %v1545_v36  ;;  %2963 = vtanh.f32 %v2188_v12 }
  0xda   : > { %2965 = vtanh.f32 %v2077_v4 }
  0xdb   : > { %2908 = vset.pattern.permute.xlu2 %v3274_v5  ;;  %v2956_v5 = vpop.eup %2955  ;;  %2967 = vtanh.f32 %v3579_v63 }
  0xdc   : > { %v2958_v61 = vpop.eup %2957  ;;  %v1970_v13 = vmul.f32 %v2956_v5, %v2956_v5  ;;  %2969 = vtanh.f32 %v3507_v37 }
  0xdd   : > { %v2960_v0 = vpop.eup %2959  ;;  %v1859_v28 = vmul.f32 %v2958_v61, %v2958_v61  ;;  %2971 = vtanh.f32 %v2299_v34 }
  0xde   : > { %v2962_v20 = vpop.eup %2961  ;;  %v1969_v22 = vmul.f32 %v2960_v0, %v2960_v0  ;;  %v1971_v27 = vpack.c.bf16 %v2956_v5, %v2960_v0  ;;  %2973 = vtanh.f32 %v3596_v14  ;;  %v3682_v14 = vpop.permute.xlu2 %664 }
  0xdf   : > { %v1860_v18 = vpack.c.bf16 %v2958_v61, %v2962_v20  ;;  %v2964_v25 = vpop.eup %2963  ;;  %v1858_v32 = vmul.f32 %v2962_v20, %v2962_v20  ;;  %2975 = vpow2.f32 %v2769_v6 }
  0xe0   : > { %v1972_v23 = vpack.c.bf16 %v1970_v13, %v1969_v22  ;;  %v2966_v24 = vpop.eup %2965  ;;  %v2192_v57 = vmul.f32 %v2964_v25, %v2964_v25  ;;  %v572_v13 = vsub.f32 0.0, %v540_v49 }
  0xe1   : > { %v2968_v26 = vpop.eup %2967  ;;  %v1861_v37 = vpack.c.bf16 %v1859_v28, %v1858_v32  ;;  %v2081_v36 = vmul.f32 %v2966_v24, %v2966_v24 }
  0xe2   : > { %v2970_v29 = vpop.eup %2969  ;;  %v2191_v63 = vmul.f32 %v2968_v26, %v2968_v26  ;;  %v2193_v54 = vpack.c.bf16 %v2964_v25, %v2968_v26 }
  0xe3   : > { %v2082_v31 = vpack.c.bf16 %v2966_v24, %v2970_v29  ;;  %v2972_v35 = vpop.eup %2971  ;;  %v2080_v38 = vmul.f32 %v2970_v29, %v2970_v29  ;;  %v2770_v24 = vmul.f32 -1.442695, %v572_v13 }
  0xe4   : > { %2784 = vmatmul.msk.bf16.vlgmr.msra.gmra.mxu1 %vm641_vm0, %v3557_v11  ;;  %v2194_v33 = vpack.c.bf16 %v2192_v57, %v2191_v63  ;;  %v2974_v8 = vpop.eup %2973  ;;  %v2303_v39 = vmul.f32 %v2972_v35, %v2972_v35 }
  0xe5   : > { %1567 = vmatpush.bf16.msra.mxu1 %v1544_v45  ;;  %v2304_v10 = vpack.c.bf16 %v2972_v35, %v2974_v8  ;;  %v2083_v42 = vpack.c.bf16 %v2081_v36, %v2080_v38  ;;  %v2302_v40 = vmul.f32 %v2974_v8, %v2974_v8 }
  0xe6   : > { %2780 = vmatmul.msk.bf16.vlgmr.msra.gmra.mxu2 %vm641_vm0, %v3560_v16  ;;  %v2432_v56 = vpop.permute.xlu2 %2431 }
  0xe7   : > { %2787 = vmatmul.msk.bf16.vlgmr.msra.gmra.mxu3 %vm641_vm0, %v3557_v11  ;;  %1442 = vmatpush.bf16.msra.mxu2 %v1434_v58  ;;  %v2305_v41 = vpack.c.bf16 %v2303_v39, %v2302_v40  ;;  %v2440_v45 = vmul.f32 %v2910_v43, %v2432_v56  ;;  %v2976_v58 = vpop.eup %2975 }
  0xe8   : > { %1660 = vmatpush.bf16.msra.mxu3 %v1637_v50  ;;  %2789 = vmatmul.msk.bf16.vlgmr.msra.gmra.mxu0 %vm641_vm0, %v3560_v16  ;;  %v3720_v62 = vadd.f32 1.0, %v2976_v58 }
  0xe9   : > { %1758 = vmatpush.bf16.msra.mxu0 %v1750_v59 }
  0xea   : > { %vm550_vm1 = vweird.f32 %v3720_v62 }
  0xee   : > { %v2455_v44 = vpop.permute.xlu2 %2454 }
  0xef   : > { %v3702_v46 = vadd.f32 %v2455_v44, %v2440_v45 }
  0xf1   : > { %4688 = vst [vmem:[#allocation21_spill] sm:$0xff] %v3702_v46 }
  0xf4   : > { %2790 = vmatmul.msk.bf16.vlgmr.msrb.gmra.mxu1 %vm641_vm0, %v3557_v11 }
  0xf5   : > { %1772 = vmatpush.bf16.msrb.mxu1 %v1749_v2 }
  0xf6   : > { %2786 = vmatmul.msk.bf16.vlgmr.msrb.gmra.mxu2 %vm641_vm0, %v3560_v16  ;;  %v3706_v47 = vpop.permute.xlu2 %2450 }
  0xf7   : > { %2793 = vmatmul.msk.bf16.vlgmr.msrb.gmra.mxu3 %vm641_vm0, %v3557_v11  ;;  %1646 = vmatpush.bf16.msrb.mxu2 %v1638_v7  ;;  %4689 = vst [vmem:[#allocation22_spill] sm:$0xff] %v3706_v47 }
  0xf8   : > { %1883 = vmatpush.bf16.msrb.mxu3 %v1860_v18  ;;  %2795 = vmatmul.msk.bf16.vlgmr.msrb.gmra.mxu0 %vm641_vm0, %v3560_v16 }
  0xf9   : > { %1980 = vmatpush.bf16.msrb.mxu0 %v1972_v23 }
 0x104   : > { %2796 = vmatmul.msk.bf16.vlgmr.msra.gmra.mxu1 %vm641_vm0, %v3557_v11 }
 0x105   : > { %1994 = vmatpush.bf16.msra.mxu1 %v1971_v27 }
 0x106   : > { %2792 = vmatmul.msk.bf16.vlgmr.msra.gmra.mxu2 %vm641_vm0, %v3560_v16 }
 0x107   : > { %2799 = vmatmul.msk.bf16.vlgmr.msra.gmra.mxu3 %vm641_vm0, %v3557_v11  ;;  %1869 = vmatpush.bf16.msra.mxu2 %v1861_v37 }
 0x108   : > { %2105 = vmatpush.bf16.msra.mxu3 %v2082_v31  ;;  %2801 = vmatmul.msk.bf16.vlgmr.msra.gmra.mxu0 %vm641_vm0, %v3560_v16 }
 0x109   : > { %2202 = vmatpush.bf16.msra.mxu0 %v2194_v33 }
 0x114   : > { %2802 = vmatmul.msk.bf16.vlgmr.msrb.gmra.mxu1 %vm641_vm0, %v3557_v11 }
 0x115   : > { %2216 = vmatpush.bf16.msrb.mxu1 %v2193_v54  ;;  %v2417_v50 = vpop.permute.xlu2 %2416 }
 0x116   : > { %2798 = vmatmul.msk.bf16.vlgmr.msrb.gmra.mxu2 %vm641_vm0, %v3560_v16  ;;  %v2437_v51 = vmul.f32 %v2910_v43, %v2417_v50  ;;  %v556_v43 = vand.u32 2147483648, %v3720_v62 }
 0x117   : > { %2805 = vmatmul.msk.bf16.vlgmr.msrb.gmra.mxu3 %vm641_vm0, %v3557_v11  ;;  %2091 = vmatpush.bf16.msrb.mxu2 %v2083_v42 }
 0x118   : > { %2327 = vmatpush.bf16.msrb.mxu3 %v2304_v10  ;;  %2807 = vmatmul.msk.bf16.vlgmr.msrb.gmra.mxu0 %vm641_vm0, %v3560_v16 }
 0x124   : > { %2808 = vmatmul.msk.bf16.vlgmr.msra.gmra.mxu1 %vm641_vm0, %v3557_v11  ;;  %v2443_v59 = vpop.permute.xlu2 %2442 }
 0x125   : > { %v3718_v60 = vadd.f32 %v2443_v59, %v2437_v51 }
 0x126   : > { %2804 = vmatmul.msk.bf16.vlgmr.msra.gmra.mxu2 %vm641_vm0, %v3560_v16 }
 0x127   : > { %2811 = vmatmul.msk.bf16.vlgmr.msra.gmra.mxu3 %vm641_vm0, %v3557_v11  ;;  %2313 = vmatpush.bf16.msra.mxu2 %v2305_v41  ;;  %4691 = vst [vmem:[#allocation24_spill] sm:$0xff] %v3718_v60 }
 0x128   : > { %2813 = vmatmul.msk.bf16.vlgmr.msra.gmra.mxu0 %vm641_vm0, %v3560_v16 }
 0x12d   : > { %v3731_v20 = vpop.permute.xlu2 %687 }
 0x134   : > { %2814 = vmatmul.msk.bf16.vlgmr.msrb.gmra.mxu1 %vm641_vm0, %v3557_v11 }
 0x136   : > { %2810 = vmatmul.msk.bf16.vlgmr.msrb.gmra.mxu2 %vm641_vm0, %v3560_v16 }
 0x137   : > { %2817 = vmatmul.msk.bf16.vlgmr.msrb.gmra.mxu3 %vm641_vm0, %v3557_v11  ;;  %v3724_v11 = vpop.permute.xlu0 %2446 }
 0x138   : > { %4692 = vst [vmem:[#allocation25_spill] sm:$0xff] %v3724_v11 }
 0x13f   : > { %v3737_v23 = vpop.permute.xlu0 %691 }
 0x141   : > { %v679_v53 = vpop.f32.mrf.mxu1 }
 0x142   : > { %v680_v55 = vadd.f32 %v679_v53, %v3674_v17 }
 0x144   : > { %2977 = vtanh.f32 %v680_v55 }
 0x145   : > { %2979 = vrcp.f32 %v3720_v62  ;;  %v889_v53 = vpop.f32.mrf.mxu0 }
 0x146   : > { %2816 = vmatmul.msk.bf16.vlgmr.msra.gmra.mxu2 %vm641_vm0, %v3560_v16  ;;  %v3733_v16 = vpop.permute.xlu1 %707  ;;  %v910_v58 = vsub.f32 %v3731_v20, %v889_v53 }
 0x149   : > { %v681_v5 = vpop.f32.mrf.mxu1  ;;  %v654_v2 = vpop.f32.mrf.mxu2 }
 0x14a   : > { %v791_v19 = vpop.f32.mrf.mxu3  ;;  %v2978_v61 = vpop.eup %2977  ;;  %v682_v0 = vadd.f32 %v681_v5, %v3682_v14  ;;  %v694_v27 = vsub.f32 %v3731_v20, %v654_v2 }
 0x14b   : > { %v792_v1 = vadd.f32 %v791_v19, %v3674_v17  ;;  %v696_v3 = vmul.f32 %v2978_v61, %v2978_v61  ;;  %v3729_v15 = vpop.eup %2979  ;;  %v710_v28 = vmul.f32 %v2978_v61, %v3708_v48 }
 0x14c   : > { %2981 = vtanh.f32 %v682_v0  ;;  %v546_v25 = vmul.f32 %v3729_v15, %v3720_v62  ;;  %vm551_vm2 = vweird.f32 %v3729_v15 }
 0x14d   : > { %2983 = vtanh.f32 %v792_v1  ;;  %v698_v18 = vsub.f32 1.0, %v696_v3  ;;  %vm3813_vm4 = vmor %vm550_vm1, %vm551_vm2 }
 0x14e   : > { %v547_v33 = vsub.f32 1.0, %v546_v25 }
 0x14f   : > { %v700_v32 = vmul.f32 %v698_v18, %v694_v27  ;;  %v554_v18 = vand.u32 2147483647, %v3720_v62 }
 0x150   : > { %v548_v41 = vmul.f32 %v3729_v15, %v547_v33 }
 0x151   : > { %v903_v22 = vpop.f32.mrf.mxu1  ;;  %v656_v26 = vpop.f32.mrf.mxu2  ;;  %v721_v45 = vmul.f32 %v3708_v48, %v700_v32  ;;  %vm3819_vm5 = vcmp.eq.f32.partialorder %v554_v18, 8.507059e+37 }
 0x152   : > { %v793_v21 = vpop.f32.mrf.mxu3  ;;  %v904_v7 = vadd.f32 %v903_v22, %v3674_v17  ;;  %v2982_v4 = vpop.eup %2981  ;;  %v695_v31 = vsub.f32 %v3737_v23, %v656_v26 }
 0x153   : > { %v794_v12 = vadd.f32 %v793_v21, %v3682_v14  ;;  %v697_v57 = vmul.f32 %v2982_v4, %v2982_v4  ;;  %v711_v29 = vmul.f32 %v2982_v4, %v3733_v16  ;;  %v2984_v30 = vpop.eup %2983  ;;  %v3758_v21 = vor.u32 1.1754944e-38, %v556_v43 }
 0x154   : > { %v800_v34 = vmul.f32 %v2984_v30, %v2984_v30  ;;  %v806_v6 = vmul.f32 %v2984_v30, %v3708_v48 }
 0x155   : > { %2985 = vtanh.f32 %v794_v12  ;;  %v699_v63 = vsub.f32 1.0, %v697_v57  ;;  %v712_v37 = vadd.f32 %v711_v29, %v710_v28  ;;  %v3770_v28 = vstv %s3746_s21  ;;  %s3183_s21 = scalar_lea.hbm %s3182_s18, 1 }
 0x156   : > { %2987 = vtanh.f32 %v904_v7  ;;  %v802_v51 = vsub.f32 1.0, %v800_v34  ;;  %v3763_v7 = vadd.f32 %v3729_v15, %v548_v41  ;;  %p3184_p3 = scmp.ne.s32.totalorder %s3182_s18, %s3183_s21 }
 0x157   : > { %2989 = vpow2.f32 %v2770_v24  ;;  %v701_v35 = vmul.f32 %v699_v63, %v695_v31  ;;  %v713_v54 = vrot.slane %v712_v37, 4 }
 0x158   : > { %p3185_p4 = pnand %p3184_p3, %p3390_p6 }
 0x159   : > { %v905_v8 = vpop.f32.mrf.mxu1  ;;  %v714_v56 = vadd.f32 %v713_v54, %v712_v37  ;;  %v722_v39 = vmul.f32 %v3733_v16, %v701_v35  ;;  %v777_v44 = vpop.f32.mrf.mxu2 }
 0x15a   : > { %v1014_v36 = vpop.f32.mrf.mxu3  ;;  %v906_v42 = vadd.f32 %v905_v8, %v3682_v14  ;;  %v798_v50 = vsub.f32 %v3731_v20, %v777_v44  ;;  %p3186_p5 = pneg %p3185_p4 }
 0x15b   : > { %v2986_v10 = vpop.eup %2985  ;;  %v1015_v38 = vadd.f32 %v1014_v36, %v3674_v17  ;;  %v715_v59 = vrot.slane %v714_v56, 2  ;;  %v723_v19 = vadd.f32 %v722_v39, %v721_v45 }
 0x15c   : > { %v2988_v40 = vpop.eup %2987  ;;  %v807_v49 = vmul.f32 %v2986_v10, %v3733_v16  ;;  %2991 = vtanh.f32 %v906_v42  ;;  %v804_v61 = vmul.f32 %v802_v51, %v798_v50  ;;  %v801_v13 = vmul.f32 %v2986_v10, %v2986_v10  ;;  %v891_v10 = vpop.f32.mrf.mxu0 }
 0x15d   : > { %v912_v55 = vmul.f32 %v2988_v40, %v2988_v40  ;;  %v2990_v5 = vpop.eup %2989  ;;  %2993 = vtanh.f32 %v1015_v38  ;;  %v716_v2 = vadd.f32 %v715_v59, %v714_v56  ;;  %v724_v3 = vrot.slane %v723_v19, 4 }
 0x15e   : > { %v808_v1 = vadd.f32 %v807_v49, %v806_v6  ;;  %v3765_v4 = vadd.f32 1.0, %v2990_v5  ;;  %v918_v32 = vmul.f32 %v2988_v40, %v3708_v48  ;;  %v803_v34 = vsub.f32 1.0, %v801_v13 }
 0x15f   : > { %v914_v0 = vsub.f32 1.0, %v912_v55  ;;  %v717_v24 = vrot.slane %v716_v2, 1  ;;  %v725_v26 = vadd.f32 %v724_v3, %v723_v19  ;;  %v911_v56 = vsub.f32 %v3737_v23, %v891_v10 }
 0x160   : > { %v809_v12 = vrot.slane %v808_v1, 4  ;;  %v816_v44 = vmul.f32 %v804_v61, %v3708_v48  ;;  %v3782_v55 = vmul.f32 0.1, %v3463_v9  ;;  %v3788_v59 = vstv %s3767_s22 }
 0x161   : > { %v916_v22 = vmul.f32 %v914_v0, %v910_v58  ;;  %v1125_v27 = vpop.f32.mrf.mxu1  ;;  %v718_v63 = vadd.f32 %v717_v24, %v716_v2  ;;  %v726_v37 = vrot.slane %v725_v26, 2  ;;  %v779_v33 = vpop.f32.mrf.mxu2  ;;  %v3785_v58 = vstv %s3760_s23 }
 0x162   : > { %v1016_v25 = vpop.f32.mrf.mxu3  ;;  %v810_v29 = vadd.f32 %v809_v12, %v808_v1  ;;  %v1126_v30 = vadd.f32 %v1125_v27, %v3674_v17  ;;  %v2992_v31 = vpop.eup %2991  ;;  %v799_v36 = vsub.f32 %v3737_v23, %v779_v33  ;;  %vm582_vm6 = vweird.f32 %v3765_v4 }
 0x163   : > { %v1017_v57 = vadd.f32 %v1016_v25, %v3682_v14  ;;  %v2994_v35 = vpop.eup %2993  ;;  %v919_v54 = vmul.f32 %v2992_v31, %v3733_v16  ;;  %v720_v38 = vadd.f32 %v3770_v28, %v718_v63  ;;  %v727_v42 = vadd.f32 %v726_v37, %v725_v26 }
 0x164   : > { %v811_v8 = vrot.slane %v810_v29, 2  ;;  %v805_v40 = vmul.f32 %v803_v34, %v799_v36  ;;  %v913_v43 = vmul.f32 %v2992_v31, %v2992_v31  ;;  %v1023_v49 = vmul.f32 %v2994_v35, %v2994_v35 }
 0x165   : > { %2995 = vtanh.f32 %v1017_v57  ;;  %v920_v39 = vadd.f32 %v919_v54, %v918_v32  ;;  %v728_v45 = vrot.slane %v727_v42, 1  ;;  %v928_v19 = vmul.f32 %v916_v22, %v3708_v48 }
 0x166   : > { %2997 = vtanh.f32 %v1126_v30  ;;  %v812_v41 = vadd.f32 %v811_v8, %v810_v29  ;;  %v817_v51 = vmul.f32 %v805_v40, %v3733_v16  ;;  %v915_v53 = vsub.f32 1.0, %v913_v43  ;;  %v1111_v40 = vpop.f32.mrf.mxu0 }
 0x167   : > { %2999 = vtanh.f32 %v720_v38  ;;  %v921_v6 = vrot.slane %v920_v39, 4  ;;  %v1029_v25 = vmul.f32 %v2994_v35, %v3708_v48  ;;  %v1025_v27 = vsub.f32 1.0, %v1023_v49 }
 0x168   : > { %v813_v50 = vrot.slane %v812_v41, 1  ;;  %v818_v3 = vadd.f32 %v817_v51, %v816_v44  ;;  %v917_v13 = vmul.f32 %v915_v53, %v911_v56  ;;  %v729_v29 = vadd.f32 %v728_v45, %v727_v42 }
 0x169   : > { %v1127_v0 = vpop.f32.mrf.mxu1  ;;  %v922_v1 = vadd.f32 %v921_v6, %v920_v39  ;;  %v1000_v26 = vpop.f32.mrf.mxu2 }
 0x16a   : > { %v1236_v5 = vpop.f32.mrf.mxu3  ;;  %v814_v2 = vadd.f32 %v813_v50, %v812_v41  ;;  %v1128_v22 = vadd.f32 %v1127_v0, %v3682_v14  ;;  %v819_v31 = vrot.slane %v818_v3, 4  ;;  %v929_v37 = vmul.f32 %v917_v13, %v3733_v16 }
 0x16b   : > { %v2996_v61 = vpop.eup %2995  ;;  %v923_v57 = vrot.slane %v922_v1, 2  ;;  %v1237_v33 = vadd.f32 %v1236_v5, %v3674_v17  ;;  %v1021_v34 = vsub.f32 %v3731_v20, %v1000_v26 }
 0x16c   : > { %v2998_v12 = vpop.eup %2997  ;;  %v1030_v24 = vmul.f32 %v2996_v61, %v3733_v16  ;;  %v815_v30 = vadd.f32 %v814_v2, %v3770_v28  ;;  %v820_v36 = vadd.f32 %v819_v31, %v818_v3  ;;  %v930_v10 = vadd.f32 %v929_v37, %v928_v19 }
 0x16d   : > { %v3797_v32 = vpop.eup %2999  ;;  %v924_v35 = vadd.f32 %v923_v57, %v922_v1  ;;  %v1027_v38 = vmul.f32 %v1025_v27, %v1021_v34  ;;  %v1024_v41 = vmul.f32 %v2996_v61, %v2996_v61  ;;  %v1140_v44 = vmul.f32 %v2998_v12, %v3708_v48 }
 0x16e   : > { %v1031_v63 = vadd.f32 %v1030_v24, %v1029_v25  ;;  %v733_v54 = vmul.f32 %v3797_v32, %v3797_v32  ;;  %3001 = vtanh.f32 %v815_v30  ;;  %v821_v39 = vrot.slane %v820_v36, 2 }
 0x16f   : > { %3003 = vtanh.f32 %v1128_v22  ;;  %v925_v42 = vrot.slane %v924_v35, 1  ;;  %v931_v45 = vrot.slane %v930_v10, 4  ;;  %v1134_v49 = vmul.f32 %v2998_v12, %v2998_v12 }
 0x170   : > { %v1032_v8 = vrot.slane %v1031_v63, 4  ;;  %v734_v56 = vsub.f32 1.0, %v733_v54  ;;  %v822_v53 = vadd.f32 %v821_v39, %v820_v36  ;;  %3005 = vtanh.f32 %v1237_v33 }
 0x171   : > { %v926_v50 = vadd.f32 %v925_v42, %v924_v35  ;;  %v932_v0 = vadd.f32 %v931_v45, %v930_v10  ;;  %v1132_v19 = vsub.f32 %v3731_v20, %v1111_v40  ;;  %v1136_v25 = vsub.f32 1.0, %v1134_v49  ;;  %v1002_v18 = vpop.f32.mrf.mxu2 }
 0x172   : > { %v1033_v43 = vadd.f32 %v1032_v8, %v1031_v63  ;;  %v1238_v6 = vpop.f32.mrf.mxu3  ;;  %v735_v51 = vmul.f32 %v734_v56, %v729_v29  ;;  %v823_v13 = vrot.slane %v822_v53, 1  ;;  %v553_v54 = vsel %vm3813_vm4, %v3729_v15, %v3763_v7 }
 0x173   : > { %v1239_v1 = vadd.f32 %v1238_v6, %v3682_v14  ;;  %v927_v3 = vadd.f32 %v926_v50, %v3770_v28  ;;  %v933_v29 = vrot.slane %v932_v0, 2  ;;  %v1138_v8 = vmul.f32 %v1136_v25, %v1132_v19 }
 0x174   : > { %v1034_v5 = vrot.slane %v1033_v43, 2  ;;  %v3002_v2 = vpop.eup %3001  ;;  %v736_v61 = vadd.f32 0.1, %v735_v51  ;;  %v824_v31 = vadd.f32 %v823_v13, %v822_v53  ;;  %v1022_v45 = vsub.f32 %v3737_v23, %v1002_v18  ;;  %v1347_v13 = vpop.f32.mrf.mxu1 }
 0x175   : > { %v3004_v24 = vpop.eup %3003  ;;  %v826_v22 = vadd.f32 %v3002_v2, %v3782_v55  ;;  %v827_v57 = vmul.f32 %v3002_v2, %v3002_v2  ;;  %3007 = vtanh.f32 %v927_v3  ;;  %v934_v62 = vadd.f32 %v933_v29, %v932_v0 }
 0x176   : > { %v1035_v27 = vadd.f32 %v1034_v5, %v1033_v43  ;;  %v750_v30 = vmul.f32 %v3788_v59, %v736_v61  ;;  %v1141_v63 = vmul.f32 %v3004_v24, %v3733_v16  ;;  %v3827_v35 = vpop.eup %3005  ;;  %3009 = vtanh.f32 %v1239_v1  ;;  %v1113_v5 = vpop.f32.mrf.mxu0 }
 0x177   : > { %v828_v33 = vsub.f32 1.0, %v827_v57  ;;  %v831_v34 = vsub.f32 %v826_v22, %v3785_v58  ;;  %v935_v40 = vrot.slane %v934_v62, 1  ;;  %v1026_v49 = vsub.f32 1.0, %v1024_v41 }
 0x178   : > { %v1036_v37 = vrot.slane %v1035_v27, 1  ;;  %v1142_v36 = vadd.f32 %v1141_v63, %v1140_v44  ;;  %v752_v42 = vsel %vm751_vm3, %v750_v30, 1.0  ;;  %3011 = vrcp.f32 %v3765_v4 }
 0x179   : > { %v829_v56 = vmul.f32 %v828_v33, %v824_v31  ;;  %v832_v39 = vmul.f32 %v831_v34, %v3788_v59  ;;  %3013 = vlog2.f32 %v752_v42  ;;  %v1039_v50 = vmul.f32 %v1027_v38, %v3708_v48 }
 0x17a   : > { %v1037_v10 = vadd.f32 %v1036_v37, %v1035_v27  ;;  %v1143_v43 = vrot.slane %v1142_v36, 4  ;;  %v1028_v53 = vmul.f32 %v1026_v49, %v1022_v45  ;;  %v1251_v19 = vmul.f32 %v3827_v35, %v3708_v48 }
 0x17b   : > { %v830_v15 = vadd.f32 0.1, %v829_v56  ;;  %v3839_v7 = vadd.f32 -1.0, %v832_v39  ;;  %v3008_v44 = vpop.eup %3007  ;;  %v936_v2 = vadd.f32 %v935_v40, %v934_v62  ;;  %v1135_v38 = vmul.f32 %v3004_v24, %v3004_v24  ;;  %v3870_v56 = vld [vmem:[%s3437_s30] sm:$0xff] }
 0x17c   : > { %v1038_v6 = vadd.f32 %v1037_v10, %v3770_v28  ;;  %v1144_v51 = vadd.f32 %v1143_v43, %v1142_v36  ;;  %v939_v41 = vmul.f32 %v3008_v44, %v3008_v44  ;;  %v3846_v1 = vpop.eup %3009  ;;  %v1040_v61 = vmul.f32 %v1028_v53, %v3733_v16  ;;  %v1458_v36 = vpop.f32.mrf.mxu3 }
 0x17d   : > { %835 = vst [vmem:[#allocation1] sm:$0xff] %v3839_v7  ;;  %v860_v0 = vmul.f32 %v830_v15, %v3788_v59  ;;  %v1252_v27 = vmul.f32 %v3846_v1, %v3733_v16  ;;  %v1133_v22 = vsub.f32 %v3737_v23, %v1113_v5  ;;  %v3857_v57 = vsel %vm3819_vm5, %v3758_v21, %v553_v54 }
 0x17e   : > { %3015 = vtanh.f32 %v1038_v6  ;;  %v1145_v3 = vrot.slane %v1144_v51, 2  ;;  %v940_v12 = vsub.f32 1.0, %v939_v41  ;;  %v1041_v30 = vadd.f32 %v1040_v61, %v1039_v50  ;;  %v3859_v31 = vpop.eup %3011  ;;  %v1222_v50 = vpop.f32.mrf.mxu2 }
 0x17f   : > { %v861_v25 = vsel %vm751_vm3, %v860_v0, 1.0  ;;  %v1253_v63 = vadd.f32 %v1252_v27, %v1251_v19  ;;  %v1348_v37 = vadd.f32 %v1347_v13, %v3674_v17  ;;  %v1137_v33 = vsub.f32 1.0, %v1135_v38  ;;  %v3014_v34 = vpop.eup %3013 }
 0x180   : > { %3017 = vlog2.f32 %v861_v25  ;;  %v1146_v29 = vadd.f32 %v1145_v3, %v1144_v51  ;;  %v941_v24 = vmul.f32 %v940_v12, %v936_v2  ;;  %v1042_v18 = vrot.slane %v1041_v30, 4  ;;  %v1349_v25 = vpop.f32.mrf.mxu1 }
 0x181   : > { %3019 = vrsqrt.f32 %v3857_v57  ;;  %v1254_v26 = vrot.slane %v1253_v63, 4  ;;  %v1139_v54 = vmul.f32 %v1137_v33, %v1133_v22  ;;  %v3867_v42 = vmul.f32 %v3859_v31, %v3765_v4  ;;  %v3891_v33 = vpop.f32.mrf.mxu0 }
 0x182   : > { %v1147_v62 = vrot.slane %v1146_v29, 1  ;;  %v942_v21 = vadd.f32 0.1, %v941_v24  ;;  %v1150_v43 = vmul.f32 %v1138_v8, %v3708_v48  ;;  %v1043_v45 = vadd.f32 %v1042_v18, %v1041_v30 }
 0x183   : > { %v1255_v6 = vadd.f32 %v1254_v26, %v1253_v63  ;;  %3021 = vtanh.f32 %v1348_v37  ;;  %v1151_v15 = vmul.f32 %v1139_v54, %v3733_v16  ;;  %v754_v53 = vmul.f32 0.6931472, %v3014_v34 }
 0x184   : > { %v3862_v10 = vpop.eup %3015  ;;  %v3872_v39 = vld [vmem:[#allocation1 + $0x1] ss:$9 sm:$0xff]  ;;  %v1148_v40 = vadd.f32 %v1147_v62, %v1146_v29  ;;  %v971_v49 = vmul.f32 %v942_v21, %v3788_v59  ;;  %v1044_v0 = vrot.slane %v1043_v45, 2  ;;  %v579_v61 = vsub.f32 1.0, %v3867_v42 }
 0x185   : > { %841 = vst [vmem:[#allocation1] sm:$0xff] %v3870_v56  ;;  %v1050_v41 = vmul.f32 %v3862_v10, %v3862_v10  ;;  %v1256_v2 = vrot.slane %v1255_v6, 2  ;;  %v1152_v3 = vadd.f32 %v1151_v15, %v1150_v43  ;;  %v938_v13 = vadd.f32 %v3008_v44, %v3782_v55 }
 0x186   : > { %v3018_v51 = vpop.eup %3017  ;;  %v1149_v5 = vadd.f32 %v1148_v40, %v3770_v28  ;;  %v972_v8 = vsel %vm751_vm3, %v971_v49, 1.0  ;;  %v1045_v38 = vadd.f32 %v1044_v0, %v1043_v45  ;;  %v755_v30 = vsel %vm751_vm3, %v754_v53, 0.0  ;;  %v1460_v45 = vpop.f32.mrf.mxu3 }
 0x187   : > { %v863_v19 = vmul.f32 0.6931472, %v3018_v51  ;;  %3023 = vlog2.f32 %v972_v8  ;;  %v3885_v12 = vpop.eup %3019  ;;  %v1257_v22 = vadd.f32 %v1256_v2, %v1255_v6  ;;  %v1153_v29 = vrot.slane %v1152_v3, 4  ;;  %v1224_v2 = vpop.f32.mrf.mxu2 }
 0x188   : > { %3025 = vtanh.f32 %v1149_v5  ;;  %v1046_v63 = vrot.slane %v1045_v38, 1  ;;  %v1051_v37 = vsub.f32 1.0, %v1050_v41  ;;  %v1243_v62 = vsub.f32 %v3731_v20, %v1222_v50 }
 0x189   : > { %v864_v27 = vsel %vm751_vm3, %v863_v19, 0.0  ;;  %v3022_v44 = vpop.eup %3021  ;;  %v1154_v34 = vadd.f32 %v1153_v29, %v1152_v3  ;;  %v1245_v18 = vmul.f32 %v3827_v35, %v3827_v35  ;;  %v1350_v21 = vadd.f32 %v1349_v25, %v3682_v14 }
 0x18a   : > { %v866_v24 = vrot.slane %v864_v27, 1  ;;  %v943_v26 = vsub.f32 %v938_v13, %v3785_v58  ;;  %v1047_v40 = vadd.f32 %v1046_v63, %v1045_v38  ;;  %v1459_v43 = vadd.f32 %v1458_v36, %v3674_v17 }
 0x18b   : > { %v1258_v49 = vrot.slane %v1257_v22, 1  ;;  %v1155_v6 = vrot.slane %v1154_v34, 2  ;;  %v1247_v15 = vsub.f32 1.0, %v1245_v18  ;;  %3027 = vtanh.f32 %v1350_v21 }
 0x18c   : > { %v3898_v54 = vld [vmem:[#allocation1 + $0x1] ss:$9 sm:$0xff]  ;;  %v868_v42 = vadd.f32 %v866_v24, %v755_v30  ;;  %v586_v35 = vand.u32 2147483647, %v3765_v4  ;;  %v588_v51 = vand.u32 2147483648, %v3765_v4  ;;  %v1052_v53 = vmul.f32 %v1051_v37, %v1047_v40 }
 0x18d   : > { %848 = vst [vmem:[#allocation1] sm:$0xff] %v3870_v56  ;;  %v3024_v50 = vpop.eup %3023  ;;  %v1356_v5 = vmul.f32 %v3022_v44, %v3022_v44  ;;  %v1156_v36 = vadd.f32 %v1155_v6, %v1154_v34  ;;  %v1249_v19 = vmul.f32 %v1247_v15, %v1243_v62  ;;  %v1461_v8 = vadd.f32 %v1460_v45, %v3682_v14 }
 0x18e   : > { %v3905_v0 = vpop.eup %3025  ;;  %v974_v41 = vmul.f32 0.6931472, %v3024_v50  ;;  %v580_v3 = vmul.f32 %v3859_v31, %v579_v61  ;;  %v944_v13 = vmul.f32 %v943_v26, %v3788_v59  ;;  %v1053_v38 = vadd.f32 0.1, %v1052_v53  ;;  %v1569_v26 = vpop.f32.mrf.mxu1 }
 0x18f   : > { %v1161_v25 = vmul.f32 %v3905_v0, %v3905_v0  ;;  %v1259_v29 = vadd.f32 %v1258_v49, %v1257_v22  ;;  %v1157_v30 = vrot.slane %v1156_v36, 1  ;;  %3029 = vtanh.f32 %v1459_v43  ;;  %v1335_v49 = vpop.f32.mrf.mxu0 }
 0x190   : > { %v975_v27 = vsel %vm751_vm3, %v974_v41, 0.0  ;;  %v1082_v63 = vmul.f32 %v1053_v38, %v3788_v59  ;;  %v1362_v37 = vmul.f32 %v3022_v44, %v3708_v48  ;;  %v1354_v18 = vsub.f32 %v3731_v20, %v3891_v33 }
 0x191   : > { %v977_v24 = vrot.slane %v975_v27, 2  ;;  %v1162_v34 = vsub.f32 1.0, %v1161_v25  ;;  %v3028_v62 = vpop.eup %3027  ;;  %v1158_v61 = vadd.f32 %v1157_v30, %v1156_v36  ;;  %v1358_v21 = vsub.f32 1.0, %v1356_v5 }
 0x192   : > { %3031 = vtanh.f32 %v1461_v8  ;;  %v1083_v22 = vsel %vm751_vm3, %v1082_v63, 1.0  ;;  %v1363_v43 = vmul.f32 %v3028_v62, %v3733_v16  ;;  %v1244_v44 = vsub.f32 %v3737_v23, %v1224_v2 }
 0x193   : > { %v3920_v45 = vadd.f32 %v977_v24, %v868_v42  ;;  %v1260_v6 = vadd.f32 %v1259_v29, %v3770_v28  ;;  %3033 = vlog2.f32 %v1083_v22  ;;  %v1163_v33 = vmul.f32 %v1162_v34, %v1158_v61  ;;  %v1444_v24 = vpop.f32.mrf.mxu2 }
 0x194   : > { %v3918_v40 = vld [vmem:[#allocation1 + $0x1] ss:$9 sm:$0xff]  ;;  %v1246_v15 = vmul.f32 %v3846_v1, %v3846_v1  ;;  %vm583_vm7 = vweird.f32 %v3859_v31  ;;  %vm3931_vm8 = vcmp.eq.f32.partialorder %v586_v35, 8.507059e+37  ;;  %v1364_v50 = vadd.f32 %v1363_v43, %v1362_v37 }
 0x195   : > { %853 = vst [vmem:[#allocation1] sm:$0xff] %v3839_v7  ;;  %v1357_v53 = vmul.f32 %v3028_v62, %v3028_v62  ;;  %v3030_v5 = vpop.eup %3029  ;;  %v589_v41 = vor.u32 1.1754944e-38, %v588_v51  ;;  %v1164_v36 = vadd.f32 0.1, %v1163_v33  ;;  %v1355_v7 = vsub.f32 %v3737_v23, %v1335_v49  ;;  %vm3943_vm9 = vmor %vm582_vm6, %vm583_vm7 }
 0x196   : > { %v1248_v8 = vsub.f32 1.0, %v1246_v15  ;;  %v581_v2 = vadd.f32 %v3859_v31, %v580_v3  ;;  %v3937_v38 = vadd.f32 -1.0, %v944_v13  ;;  %v1365_v25 = vrot.slane %v1364_v50, 4  ;;  %v1571_v33 = vpop.f32.mrf.mxu1 }
 0x197   : > { %v1359_v1 = vsub.f32 1.0, %v1357_v53  ;;  %3035 = vtanh.f32 %v1260_v6  ;;  %v1193_v51 = vmul.f32 %v1164_v36, %v3788_v59  ;;  %v1360_v29 = vmul.f32 %v1358_v21, %v1354_v18 }
 0x198   : > { %v3939_v27 = vpop.eup %3031  ;;  %v1250_v30 = vmul.f32 %v1248_v8, %v1244_v44  ;;  %v1473_v3 = vmul.f32 %v3030_v5, %v3708_v48  ;;  %v1366_v13 = vadd.f32 %v1365_v25, %v1364_v50  ;;  %v1570_v37 = vadd.f32 %v1569_v26, %v3674_v17  ;;  %v3968_v25 = vpop.f32.mrf.mxu0 }
 0x199   : > { %v1474_v63 = vmul.f32 %v3939_v27, %v3733_v16  ;;  %v3034_v34 = vpop.eup %3033  ;;  %v1194_v4 = vsel %vm751_vm3, %v1193_v51, 1.0  ;;  %v1261_v62 = vmul.f32 %v1249_v19, %v3708_v48  ;;  %v1361_v22 = vmul.f32 %v1359_v1, %v1355_v7 }
 0x19a   : > { %v1262_v61 = vmul.f32 %v1250_v30, %v3733_v16  ;;  %v585_v18 = vsel %vm3943_vm9, %v3859_v31, %v581_v2  ;;  %v1085_v43 = vmul.f32 0.6931472, %v3034_v34  ;;  %3037 = vlog2.f32 %v1194_v4 }
 0x19b   : > { %v1367_v44 = vrot.slane %v1366_v13, 2  ;;  %v1372_v26 = vmul.f32 %v1360_v29, %v3708_v48  ;;  %v1475_v49 = vadd.f32 %v1474_v63, %v1473_v3  ;;  %v1373_v19 = vmul.f32 %v1361_v22, %v3733_v16  ;;  %v1446_v22 = vpop.f32.mrf.mxu2 }
 0x19c   : > { %v3959_v21 = vld [vmem:[#allocation1 + $0x1] ss:$9 sm:$0xff]  ;;  %v1263_v6 = vadd.f32 %v1262_v61, %v1261_v62  ;;  %v1086_v15 = vsel %vm751_vm3, %v1085_v43, 0.0  ;;  %3039 = vtanh.f32 %v1570_v37  ;;  %v1467_v31 = vmul.f32 %v3030_v5, %v3030_v5 }
 0x19d   : > { %947 = vst [vmem:[#allocation1] sm:$0xff] %v3937_v38  ;;  %v1368_v50 = vadd.f32 %v1367_v44, %v1366_v13  ;;  %v3966_v53 = vpop.eup %3035  ;;  %v1088_v36 = vrot.slane %v1086_v15, 3  ;;  %v1476_v8 = vrot.slane %v1475_v49, 4  ;;  %v1374_v2 = vadd.f32 %v1373_v19, %v1372_v26 }
 0x19e   : > { %v1264_v7 = vrot.slane %v1263_v6, 4  ;;  %v3972_v1 = vsel %vm3931_vm8, %v589_v41, %v585_v18  ;;  %v1465_v51 = vsub.f32 %v3731_v20, %v1444_v24  ;;  %v1572_v29 = vadd.f32 %v1571_v33, %v3682_v14 }
 0x19f   : > { %v1369_v35 = vrot.slane %v1368_v50, 1  ;;  %v1090_v30 = vadd.f32 %v1088_v36, %v3920_v45  ;;  %v1477_v5 = vadd.f32 %v1476_v8, %v1475_v49  ;;  %v1375_v13 = vrot.slane %v1374_v2, 4 }
 0x1a0   : > { %v1265_v3 = vadd.f32 %v1264_v7, %v1263_v6  ;;  %v3038_v63 = vpop.eup %3037  ;;  %v1272_v34 = vmul.f32 %v3966_v53, %v3966_v53  ;;  %v1469_v4 = vsub.f32 1.0, %v1467_v31  ;;  %3041 = vtanh.f32 %v1572_v29 }
 0x1a1   : > { %v1370_v37 = vadd.f32 %v1369_v35, %v1368_v50  ;;  %v1196_v42 = vmul.f32 0.6931472, %v3038_v63  ;;  %v1478_v41 = vrot.slane %v1477_v5, 2  ;;  %v1376_v61 = vadd.f32 %v1375_v13, %v1374_v2  ;;  %v1557_v63 = vpop.f32.mrf.mxu0 }
 0x1a2   : > { %v1266_v62 = vrot.slane %v1265_v3, 2  ;;  %v3040_v24 = vpop.eup %3039  ;;  %3043 = vrsqrt.f32 %v3972_v1  ;;  %v1471_v43 = vmul.f32 %v1469_v4, %v1465_v51  ;;  %v1466_v33 = vsub.f32 %v3737_v23, %v1446_v22 }
 0x1a3   : > { %v1371_v45 = vadd.f32 %v1370_v37, %v3770_v28  ;;  %v1197_v44 = vsel %vm751_vm3, %v1196_v42, 0.0  ;;  %v1479_v26 = vadd.f32 %v1478_v41, %v1477_v5  ;;  %v1377_v6 = vrot.slane %v1376_v61, 2 }
 0x1a4   : > { %v3980_v18 = vld [vmem:[#allocation1 + $0x2] ss:$9 sm:$0xff]  ;;  %v1267_v49 = vadd.f32 %v1266_v62, %v1265_v3  ;;  %v1199_v19 = vrot.slane %v1197_v44, 4  ;;  %v1468_v15 = vmul.f32 %v3939_v27, %v3939_v27  ;;  %v1273_v36 = vsub.f32 1.0, %v1272_v34 }
 0x1a5   : > { %952 = vst [vmem:[#allocation1] sm:$0xff] %v3870_v56  ;;  %3045 = vtanh.f32 %v1371_v45  ;;  %v1480_v50 = vrot.slane %v1479_v26, 1  ;;  %v1378_v8 = vadd.f32 %v1377_v6, %v1376_v61  ;;  %v1578_v35 = vmul.f32 %v3040_v24, %v3040_v24 }
 0x1a6   : > { %v1268_v31 = vrot.slane %v1267_v49, 1  ;;  %v3042_v7 = vpop.eup %3041  ;;  %v3989_v2 = vadd.f32 %v1199_v19, %v1090_v30  ;;  %v1470_v51 = vsub.f32 1.0, %v1468_v15  ;;  %v1584_v3 = vmul.f32 %v3040_v24, %v3708_v48 }
 0x1a7   : > { %v1481_v29 = vadd.f32 %v1480_v50, %v1479_v26  ;;  %v1585_v13 = vmul.f32 %v3042_v7, %v3733_v16  ;;  %v561_v27 = vmul.f32 %v3885_v12, %v3857_v57  ;;  %v1483_v34 = vmul.f32 %v1471_v43, %v3708_v48 }
 0x1a8   : > { %v1269_v5 = vadd.f32 %v1268_v31, %v1267_v49  ;;  %v3993_v37 = vpop.eup %3043  ;;  %v1576_v30 = vsub.f32 %v3731_v20, %v3968_v25  ;;  %v1472_v4 = vmul.f32 %v1470_v51, %v1466_v33  ;;  %v1379_v62 = vrot.slane %v1378_v8, 1 }
 0x1a9   : > { %v1482_v42 = vadd.f32 %v1481_v29, %v3770_v28  ;;  %v1586_v61 = vadd.f32 %v1585_v13, %v1584_v3  ;;  %v1580_v45 = vsub.f32 1.0, %v1578_v35  ;;  %v1577_v26 = vsub.f32 %v3737_v23, %v1557_v63 }
 0x1aa   : > { %v1274_v41 = vmul.f32 %v1273_v36, %v1269_v5  ;;  %v1484_v44 = vmul.f32 %v1472_v4, %v3733_v16  ;;  %v1579_v49 = vmul.f32 %v3042_v7, %v3042_v7  ;;  %v593_v43 = vmul.f32 %v3993_v37, %v3972_v1 }
 0x1ab   : > { %v4001_v22 = vpop.eup %3045  ;;  %3047 = vtanh.f32 %v1482_v42  ;;  %v562_v19 = vmul.f32 %v3885_v12, %v561_v27  ;;  %v1587_v33 = vrot.slane %v1586_v61, 4  ;;  %v1049_v31 = vadd.f32 %v3862_v10, %v3782_v55 }
 0x1ac   : > { %v4003_v24 = vld [vmem:[#allocation1 + $0x2] ss:$9 sm:$0xff]  ;;  %v1275_v25 = vadd.f32 0.1, %v1274_v41  ;;  %v1383_v6 = vmul.f32 %v4001_v22, %v4001_v22  ;;  %v1485_v15 = vadd.f32 %v1484_v44, %v1483_v34  ;;  %v1581_v50 = vsub.f32 1.0, %v1579_v49 }
 0x1ad   : > { %959 = vst [vmem:[#allocation1] sm:$0xff] %v3870_v56  ;;  %v1380_v7 = vadd.f32 %v1379_v62, %v1378_v8  ;;  %v1588_v51 = vadd.f32 %v1587_v33, %v1586_v61  ;;  %v1582_v29 = vmul.f32 %v1580_v45, %v1576_v30  ;;  %v594_v13 = vmul.f32 %v3993_v37, %v593_v43 }
 0x1ae   : > { %v1304_v36 = vmul.f32 %v1275_v25, %v3788_v59  ;;  %v1384_v35 = vsub.f32 1.0, %v1383_v6  ;;  %v1486_v5 = vrot.slane %v1485_v15, 4  ;;  %v1583_v3 = vmul.f32 %v1581_v50, %v1577_v26 }
 0x1af   : > { %v1589_v34 = vrot.slane %v1588_v51, 2  ;;  %v1054_v10 = vsub.f32 %v1049_v31, %v3785_v58  ;;  %v563_v62 = vmul.f32 0.5, %v562_v19  ;;  %v1594_v45 = vmul.f32 %v1582_v29, %v3708_v48 }
 0x1b0   : > { %v1305_v63 = vsel %vm751_vm3, %v1304_v36, 1.0  ;;  %v1385_v27 = vmul.f32 %v1384_v35, %v1380_v7  ;;  %v1487_v4 = vadd.f32 %v1486_v5, %v1485_v15  ;;  %v1595_v8 = vmul.f32 %v1583_v3, %v3733_v16 }
 0x1b1   : > { %3049 = vlog2.f32 %v1305_v63  ;;  %v4019_v42 = vpop.eup %3047  ;;  %v1590_v61 = vadd.f32 %v1589_v34, %v1588_v51  ;;  %v595_v44 = vmul.f32 0.5, %v594_v13  ;;  %v1055_v33 = vmul.f32 %v1054_v10, %v3788_v59 }
 0x1b2   : > { %v1386_v41 = vadd.f32 0.1, %v1385_v27  ;;  %v1488_v49 = vrot.slane %v1487_v4, 2  ;;  %v1494_v43 = vmul.f32 %v4019_v42, %v4019_v42  ;;  %v1596_v6 = vadd.f32 %v1595_v8, %v1594_v45 }
 0x1b3   : > { %v1591_v25 = vrot.slane %v1590_v61, 1  ;;  %v564_v31 = vsub.f32 1.5, %v563_v62  ;;  %v4034_v13 = vadd.f32 -1.0, %v1055_v33  ;;  %vm567_vm10 = vcmp.eq.f32.partialorder %v3857_v57, inf }
 0x1b4   : > { %v4023_v30 = vld [vmem:[#allocation1 + $0x2] ss:$9 sm:$0xff]  ;;  %v1415_v26 = vmul.f32 %v1386_v41, %v3788_v59  ;;  %v1489_v15 = vadd.f32 %v1488_v49, %v1487_v4  ;;  %v1597_v7 = vrot.slane %v1596_v6, 4  ;;  %v1495_v29 = vsub.f32 1.0, %v1494_v43 }
 0x1b5   : > { %964 = vst [vmem:[#allocation1] sm:$0xff] %v3937_v38  ;;  %v1592_v36 = vadd.f32 %v1591_v25, %v1590_v61  ;;  %v596_v38 = vsub.f32 1.5, %v595_v44  ;;  %v565_v34 = vmul.f32 %v3885_v12, %v564_v31  ;;  %v4045_v49 = vld [vmem:[%s3435_s20 + $0x8] sm:$0xff]  ;;  %vm569_vm11 = vcmp.eq.f32.partialorder %v3857_v57, 0.0  ;;  %s2825_s20 = sshll.u32 %s3368_s0, 7 }
 0x1b6   : > { %v1416_v19 = vsel %vm751_vm3, %v1415_v26, 1.0  ;;  %v1490_v51 = vrot.slane %v1489_v15, 1  ;;  %v1598_v3 = vadd.f32 %v1597_v7, %v1596_v6  ;;  %v4048_v43 = vmul.f32 0.1, %v4045_v49 }
 0x1b7   : > { %v3050_v50 = vpop.eup %3049  ;;  %3051 = vlog2.f32 %v1416_v19  ;;  %v1593_v5 = vadd.f32 %v1592_v36, %v3770_v28  ;;  %v597_v8 = vmul.f32 %v3993_v37, %v596_v38  ;;  %v566_v25 = vmul.f32 %v565_v34, %v3857_v57  ;;  %v4071_v34 = vld [vmem:[%s3437_s30 + $0x8] sm:$0xff]  ;;  %s528_s30 = scalar_lea.vmem [#allocation12], %s3432_s15 }
 0x1b8   : > { %v1307_v35 = vmul.f32 0.6931472, %v3050_v50  ;;  %v1491_v27 = vadd.f32 %v1490_v51, %v1489_v15  ;;  %v1599_v41 = vrot.slane %v1598_v3, 2  ;;  %4701 = vst [vmem:[#allocation26_spill] sm:$0xff] %v4048_v43  ;;  %v570_v15 = vand.u32 2147483648, %v3857_v57  ;;  %s2625_s14 = sshll.u32 %s528_s30, 4  ;;  %s2626_s14 = int_to_ptr.vmem [resolvable:$true] %s2625_s14 }
 0x1b9   : > { %3053 = vtanh.f32 %v1593_v5  ;;  %v598_v37 = vmul.f32 %v597_v8, %v3972_v1  ;;  %vm599_vm12 = vcmp.eq.f32.partialorder %v3972_v1, inf  ;;  %vm601_vm13 = vcmp.eq.f32.partialorder %v3972_v1, 0.0  ;;  %4702 = vst [vmem:[#allocation27_spill] sm:$0xff] %v4071_v34 }
 0x1ba   : > { %v1308_v63 = vsel %vm751_vm3, %v1307_v35, 0.0  ;;  %v1496_v62 = vmul.f32 %v1495_v29, %v1491_v27  ;;  %v1600_v44 = vadd.f32 %v1599_v41, %v1598_v3  ;;  %v568_v38 = vsel %vm567_vm10, %v3857_v57, %v566_v25 }
 0x1bb   : > { %v1310_v10 = vrot.slane %v1308_v63, 5  ;;  %v602_v35 = vand.u32 2147483648, %v3972_v1  ;;  %v600_v5 = vsel %vm599_vm12, %v3972_v1, %v598_v37  ;;  %vm1622_vm14 = vcmp.gt.f32.partialorder %v4045_v49, 0.00025984927 }
 0x1bc   : > { %v4039_v4 = vld [vmem:[#allocation1 + $0x2] ss:$9 sm:$0xff]  ;;  %v1497_v12 = vadd.f32 0.1, %v1496_v62  ;;  %v4076_v62 = vsel %vm569_vm11, %v570_v15, %v568_v38 }
 0x1bd   : > { %1058 = vst [vmem:[#allocation1] sm:$0xff] %v4034_v13  ;;  %v3052_v61 = vpop.eup %3051  ;;  %v1312_v45 = vadd.f32 %v1310_v10, %v3989_v2  ;;  %v1601_v2 = vrot.slane %v1600_v44, 1  ;;  %v1662_v10 = vpop.f32.mrf.mxu3 }
 0x1be   : > { %v1418_v26 = vmul.f32 0.6931472, %v3052_v61  ;;  %v1526_v33 = vmul.f32 %v1497_v12, %v3788_v59  ;;  %v4080_v61 = vsel %vm601_vm13, %v602_v35, %v600_v5 }
 0x1bf   : > { %v3054_v19 = vpop.eup %3053  ;;  %v1602_v63 = vadd.f32 %v1601_v2, %v1600_v44  ;;  %v1617_v44 = vmul.f32 %v4076_v62, %v4071_v34 }
 0x1c0   : > { %v1419_v6 = vsel %vm751_vm3, %v1418_v26, 0.0  ;;  %v1605_v31 = vadd.f32 %v3054_v19, %v4048_v43  ;;  %v1527_v36 = vsel %vm751_vm3, %v1526_v33, 1.0  ;;  %v1606_v7 = vmul.f32 %v3054_v19, %v3054_v19 }
 0x1c1   : > { %v1421_v50 = vrot.slane %v1419_v6, 6  ;;  %3055 = vlog2.f32 %v1527_v36  ;;  %v1614_v26 = vmul.f32 %v4080_v61, %v4071_v34 }
 0x1c2   : > { %v1610_v3 = vsub.f32 %v1605_v31, %v3785_v58  ;;  %v1607_v27 = vsub.f32 1.0, %v1606_v7  ;;  %v1774_v7 = vpop.f32.mrf.mxu1 }
 0x1c3   : > { %v1423_v29 = vadd.f32 %v1421_v50, %v1312_v45  ;;  %v1160_v50 = vadd.f32 %v3905_v0, %v3782_v55 }
 0x1c4   : > { %v4065_v51 = vld [vmem:[#allocation1 + $0x3] ss:$9 sm:$0xff]  ;;  %v1611_v41 = vmul.f32 %v1610_v3, %v3788_v59  ;;  %v1608_v8 = vmul.f32 %v1607_v27, %v1602_v63 }
 0x1c5   : > { %1063 = vst [vmem:[#allocation1] sm:$0xff] %v3870_v56  ;;  %v1664_v36 = vpop.f32.mrf.mxu3  ;;  %v1165_v35 = vsub.f32 %v1160_v50, %v3785_v58  ;;  %v1271_v50 = vadd.f32 %v3966_v53, %v3782_v55 }
 0x1c6   : > { %v2797_v45 = vadd.f32 -1.0, %v1611_v41  ;;  %v1609_v12 = vadd.f32 0.1, %v1608_v8 }
 0x1c7   : > { %v3056_v25 = vpop.eup %3055  ;;  %v1166_v41 = vmul.f32 %v1165_v35, %v3788_v59 }
 0x1c8   : > { %v1613_v37 = vmul.f32 %v2797_v45, %v4076_v62  ;;  %v1618_v57 = vmul.f32 %v2797_v45, %v4080_v61  ;;  %v1529_v6 = vmul.f32 0.6931472, %v3056_v25  ;;  %v1621_v1 = vmul.f32 %v1609_v12, %v3788_v59  ;;  %v4111_v25 = vpop.f32.mrf.mxu2 }
 0x1c9   : > { %v2785_v8 = vadd.f32 -1.0, %v1166_v41  ;;  %v1665_v12 = vadd.f32 %v1664_v36, %v3682_v14  ;;  %v1669_v11 = vsub.f32 %v3731_v20, %v4111_v25 }
 0x1ca   : > { %v1615_v2 = vadd.f32 %v1614_v26, %v1613_v37  ;;  %v1619_v19 = vsub.f32 %v1617_v44, %v1618_v57  ;;  %v1623_v15 = vsel %vm1622_vm14, %v1621_v1, 1.0  ;;  %v1530_v31 = vsel %vm751_vm3, %v1529_v6, 0.0  ;;  %v1776_v26 = vpop.f32.mrf.mxu1 }
 0x1cb   : > { %3057 = vlog2.f32 %v1623_v15  ;;  %v1532_v38 = vrot.slane %v1530_v31, 7  ;;  %v4122_v15 = vpop.f32.mrf.mxu0 }
 0x1cc   : > { %v4090_v33 = vld [vmem:[#allocation1 + $0x3] ss:$9 sm:$0xff]  ;;  %1616 = vst [vmem:[#allocation2 + $0x8] sm:$0x1] %v1615_v2  ;;  %3059 = vtanh.f32 %v1665_v12 }
 0x1cd   : > { %1070 = vst [vmem:[#allocation1] sm:$0xff] %v3870_v56  ;;  %v1534_v27 = vadd.f32 %v1532_v38, %v1423_v29  ;;  %v1885_v45 = vpop.f32.mrf.mxu3 }
 0x1ce   : > { %1620 = vst [vmem:[#allocation3 + $0x8] sm:$0x1] %v1619_v19  ;;  %v1886_v60 = vadd.f32 %v1885_v45, %v3674_v17 }
 0x1d0   : > { %v4117_v1 = vpop.f32.mrf.mxu2 }
 0x1d1   : > { %v3058_v5 = vpop.eup %3057 }
 0x1d2   : > { %v1625_v63 = vmul.f32 0.6931472, %v3058_v5  ;;  %v1996_v57 = vpop.f32.mrf.mxu1  ;;  %v3060_v6 = vpop.eup %3059  ;;  %v1775_v5 = vadd.f32 %v1774_v7, %v3674_v17 }
 0x1d4   : > { %v4100_v3 = vld [vmem:[#allocation1 + $0x3] ss:$9 sm:$0xff]  ;;  %v1626_v0 = vsel %vm1622_vm14, %v1625_v63, 0.0  ;;  %v1276_v63 = vsub.f32 %v1271_v50, %v3785_v58  ;;  %v732_v50 = vadd.f32 %v3797_v32, %v3782_v55 }
 0x1d5   : > { %1075 = vst [vmem:[#allocation1] sm:$0xff] %v4034_v13  ;;  %v4106_v9 = vadd.f32 %v1626_v0, %v1534_v27  ;;  %v1663_v13 = vadd.f32 %v1662_v10, %v3674_v17  ;;  %v1887_v37 = vpop.f32.mrf.mxu3  ;;  %v1678_v10 = vmul.f32 %v3060_v6, %v3733_v16  ;;  %v1777_v27 = vadd.f32 %v1776_v26, %v3682_v14 }
 0x1d6   : > { %v1277_v53 = vmul.f32 %v1276_v63, %v3788_v59  ;;  %v4150_v63 = vadd.f32 %v4001_v22, %v3782_v55 }
 0x1d7   : > { %4703 = vst [vmem:[#allocation28_spill] sm:$0xff] %v4106_v9  ;;  %3061 = vtanh.f32 %v1663_v13  ;;  %v4136_v13 = vpop.f32.mrf.mxu0 }
 0x1d8   : > { %v4133_v0 = vpop.f32.mrf.mxu2  ;;  %3063 = vtanh.f32 %v1775_v5  ;;  %v1387_v45 = vsub.f32 %v4150_v63, %v3785_v58  ;;  %v1670_v63 = vsub.f32 %v3737_v23, %v4117_v1 }
 0x1d9   : > { %3065 = vtanh.f32 %v1777_v27 }
 0x1da   : > { %v1998_v36 = vpop.f32.mrf.mxu1 }
 0x1db   : > { %v1999_v22 = vadd.f32 %v1998_v36, %v3682_v14 }
 0x1dc   : > { %v4108_v44 = vld [vmem:[#allocation1 + $0x3] ss:$9 sm:$0xff] }
 0x1dd   : > { %4704 = vst [vmem:[#allocation29_spill] sm:$0xff] %v4108_v44  ;;  %v3062_v19 = vpop.eup %3061  ;;  %v2107_v31 = vpop.f32.mrf.mxu3 }
 0x1de   : > { %1169 = vst [vmem:[#allocation1] sm:$0xff] %v2785_v8  ;;  %v1677_v38 = vmul.f32 %v3062_v19, %v3708_v48  ;;  %v4144_v46 = vpop.eup %3063 }
 0x1df   : > { %v3066_v27 = vpop.eup %3065  ;;  %v4165_v52 = vpop.f32.mrf.mxu0 }
 0x1e0   : > { %v1679_v35 = vadd.f32 %v1678_v10, %v1677_v38  ;;  %v1888_v10 = vadd.f32 %v1887_v37, %v3682_v14  ;;  %v738_v37 = vsub.f32 %v732_v50, %v3785_v58  ;;  %v1997_v50 = vadd.f32 %v1996_v57, %v3674_v17 }
 0x1e1   : > { %v743_v57 = vmul.f32 %v4080_v61, %v3870_v56 }
 0x1e2   : > { %v1680_v12 = vrot.slane %v1679_v35, 4  ;;  %v2218_v7 = vpop.f32.mrf.mxu1  ;;  %3067 = vtanh.f32 %v1888_v10  ;;  %v1672_v10 = vmul.f32 %v3060_v6, %v3060_v6  ;;  %v839_v6 = vmul.f32 %v3872_v39, %v4076_v62 }
 0x1e3   : > { %3069 = vtanh.f32 %v1886_v60  ;;  %v740_v60 = vmul.f32 %v3788_v59, %v738_v37  ;;  %v2108_v37 = vadd.f32 %v2107_v31, %v3674_v17 }
 0x1e4   : > { %v1681_v26 = vadd.f32 %v1680_v12, %v1679_v35  ;;  %v4154_v35 = vpop.f32.mrf.mxu2  ;;  %v1789_v12 = vmul.f32 %v4144_v46, %v3708_v48  ;;  %3071 = vtanh.f32 %v1999_v22 }
 0x1e5   : > { %v4114_v29 = vld [vmem:[#allocation1 + $0x4] ss:$9 sm:$0xff]  ;;  %v2109_v38 = vpop.f32.mrf.mxu3  ;;  %v2773_v25 = vadd.f32 -1.0, %v740_v60  ;;  %v1674_v60 = vsub.f32 1.0, %v1672_v10  ;;  %3073 = vtanh.f32 %v1997_v50  ;;  %v2219_v50 = vadd.f32 %v2218_v7, %v3674_v17 }
 0x1e6   : > { %4705 = vst [vmem:[#allocation30_spill] sm:$0xff] %v4114_v29  ;;  %v1682_v32 = vrot.slane %v1681_v26, 2 }
 0x1e7   : > { %1174 = vst [vmem:[#allocation1] sm:$0xff] %v3870_v56  ;;  %v742_v39 = vmul.f32 %v2773_v25, %v4076_v62  ;;  %v1676_v22 = vmul.f32 %v1674_v60, %v1670_v63  ;;  %v1783_v63 = vmul.f32 %v4144_v46, %v4144_v46  ;;  %v1782_v46 = vsub.f32 %v3737_v23, %v4136_v13 }
 0x1e8   : > { %v1683_v47 = vadd.f32 %v1682_v32, %v1681_v26  ;;  %v4171_v34 = vpop.eup %3067  ;;  %v746_v32 = vmul.f32 %v4076_v62, %v3870_v56 }
 0x1e9   : > { %v4181_v26 = vpop.eup %3069  ;;  %v744_v29 = vadd.f32 %v743_v57, %v742_v39  ;;  %v1688_v7 = vmul.f32 %v1676_v22, %v3733_v16 }
 0x1ea   : > { %v2220_v9 = vpop.f32.mrf.mxu1  ;;  %v1900_v31 = vmul.f32 %v4181_v26, %v3708_v48 }
 0x1eb   : > { %745 = vst [vmem:[#allocation2] sm:$0x1] %v744_v29 }
 0x1ec   : > { %v4197_v43 = vpop.f32.mrf.mxu2 }
 0x1ed   : > { %v4173_v36 = vpop.f32.mrf.mxu3 }
 0x1ee   : > { %v4119_v2 = vld [vmem:[#allocation1 + $0x4] ss:$9 sm:$0xff] }
 0x1ef   : > { %4706 = vst [vmem:[#allocation31_spill] sm:$0xff] %v4119_v2 }
 0x1f0   : > { %1181 = vst [vmem:[#allocation1] sm:$0xff] %v3870_v56 }
 0x1f5   : > { %v2331_v60 = vpop.f32.mrf.mxu3 }
 0x1f7   : > { %v4131_v41 = vld [vmem:[#allocation1 + $0x4] ss:$9 sm:$0xff] }
 0x1f8   : > { %4707 = vst [vmem:[#allocation32_spill] sm:$0xff] %v4131_v41  ;;  %v2110_v41 = vadd.f32 %v2109_v38, %v3682_v14 }
 0x1f9   : > { %1186 = vst [vmem:[#allocation1] sm:$0xff] %v2785_v8  ;;  %v4142_v8 = vadd.f32 -1.0, %v1277_v53  ;;  %v1790_v53 = vmul.f32 %v3066_v27, %v3733_v16 }
 0x1fa   : > { %3075 = vtanh.f32 %v2110_v41  ;;  %v4199_v41 = vpop.eup %3071 }
 0x1fb   : > { %v1791_v38 = vadd.f32 %v1790_v53, %v1789_v12  ;;  %v747_v12 = vmul.f32 %v2773_v25, %v4080_v61  ;;  %3077 = vtanh.f32 %v2108_v37 }
 0x1fd   : > { %v1792_v10 = vrot.slane %v1791_v38, 4 }
 0x1ff   : > { %v1793_v37 = vadd.f32 %v1792_v10, %v1791_v38 }
 0x200   : > { %v4146_v5 = vld [vmem:[#allocation1 + $0x4] ss:$9 sm:$0xff] }
 0x201   : > { %4708 = vst [vmem:[#allocation33_spill] sm:$0xff] %v4146_v5  ;;  %v1671_v5 = vmul.f32 %v3062_v19, %v3062_v19  ;;  %v845_v19 = vmul.f32 %v3898_v54, %v4080_v61  ;;  %v1901_v54 = vmul.f32 %v4171_v34, %v3733_v16 }
 0x202   : > { %1280 = vst [vmem:[#allocation1] sm:$0xff] %v4142_v8 }
 0x203   : > { %v846_v2 = vadd.f32 %v845_v19, %v839_v6  ;;  %v1673_v53 = vsub.f32 1.0, %v1671_v5  ;;  %v748_v6 = vsub.f32 %v746_v32, %v747_v12  ;;  %v1784_v19 = vmul.f32 %v3066_v27, %v3066_v27  ;;  %v4201_v5 = vpop.eup %3073  ;;  %v4207_v27 = vpop.f32.mrf.mxu0 }
 0x204   : > { %v1902_v44 = vadd.f32 %v1901_v54, %v1900_v31  ;;  %v4209_v57 = vpop.eup %3075  ;;  %v2012_v32 = vmul.f32 %v4199_v41, %v3733_v16  ;;  %v1785_v31 = vsub.f32 1.0, %v1783_v63 }
 0x205   : > { %847 = vst [vmem:[#allocation2 + $0x1] sm:$0x1] %v846_v2  ;;  %v1675_v25 = vmul.f32 %v1673_v53, %v1669_v11  ;;  %v1388_v2 = vmul.f32 %v1387_v45, %v3788_v59  ;;  %v852_v11 = vmul.f32 %v3918_v40, %v4076_v62  ;;  %v1786_v45 = vsub.f32 1.0, %v1784_v19  ;;  %v4222_v39 = vpop.eup %3077 }
 0x206   : > { %749 = vst [vmem:[#allocation3] sm:$0x1] %v748_v6  ;;  %v1903_v12 = vrot.slane %v1902_v44, 4  ;;  %v2011_v53 = vmul.f32 %v4201_v5, %v3708_v48  ;;  %v2123_v13 = vmul.f32 %v4209_v57, %v3733_v16  ;;  %v2332_v6 = vadd.f32 %v2331_v60, %v3682_v14 }
 0x207   : > { %v1687_v54 = vmul.f32 %v1675_v25, %v3708_v48  ;;  %v4233_v10 = vadd.f32 -1.0, %v1388_v2  ;;  %v4238_v19 = vadd.f32 %v4019_v42, %v3782_v55  ;;  %v1895_v42 = vmul.f32 %v4171_v34, %v4171_v34 }
 0x208   : > { %v2013_v25 = vadd.f32 %v2012_v32, %v2011_v53  ;;  %v1904_v2 = vadd.f32 %v1903_v12, %v1902_v44  ;;  %v1893_v34 = vsub.f32 %v3737_v23, %v4154_v35 }
 0x209   : > { %v4183_v1 = vld [vmem:[#allocation1 + $0x5] ss:$9 sm:$0xff] }
 0x20a   : > { %4709 = vst [vmem:[#allocation34_spill] sm:$0xff] %v4183_v1  ;;  %v2221_v1 = vadd.f32 %v2220_v9, %v3682_v14  ;;  %v1684_v9 = vrot.slane %v1683_v47, 1  ;;  %v2330_v14 = vadd.f32 %v4173_v36, %v3674_v17  ;;  %v2014_v36 = vrot.slane %v2013_v25, 4 }
 0x20b   : > { %1285 = vst [vmem:[#allocation1] sm:$0xff] %v3870_v56  ;;  %v1905_v12 = vrot.slane %v1904_v2, 2 }
 0x20c   : > { %3079 = vtanh.f32 %v2221_v1  ;;  %v857_v1 = vmul.f32 %v3959_v21, %v4080_v61  ;;  %v1685_v38 = vadd.f32 %v1684_v9, %v1683_v47  ;;  %v1781_v21 = vsub.f32 %v3731_v20, %v4122_v15 }
 0x20d   : > { %3081 = vtanh.f32 %v2219_v50  ;;  %v1794_v50 = vrot.slane %v1793_v37, 2  ;;  %v1689_v47 = vadd.f32 %v1688_v7, %v1687_v54  ;;  %v1788_v15 = vmul.f32 %v1786_v45, %v1782_v46  ;;  %v4255_v45 = vpop.f32.mrf.mxu2  ;;  %v4267_v54 = vpop.f32.mrf.mxu0 }
 0x20e   : > { %v858_v40 = vsub.f32 %v852_v11, %v857_v1  ;;  %v2122_v9 = vmul.f32 %v4222_v39, %v3708_v48  ;;  %v4245_v11 = vadd.f32 %v1685_v38, %v3770_v28  ;;  %v1894_v7 = vmul.f32 %v4181_v26, %v4181_v26 }
 0x20f   : > { %v1787_v1 = vmul.f32 %v1785_v31, %v1781_v21  ;;  %v1795_v60 = vadd.f32 %v1794_v50, %v1793_v37  ;;  %v1690_v44 = vrot.slane %v1689_v47, 4  ;;  %v1892_v26 = vsub.f32 %v3731_v20, %v4133_v0 }
 0x210   : > { %859 = vst [vmem:[#allocation3 + $0x1] sm:$0x1] %v858_v40  ;;  %v2124_v55 = vadd.f32 %v2123_v13, %v2122_v9  ;;  %3083 = vtanh.f32 %v2332_v6  ;;  %v1800_v17 = vmul.f32 %v1788_v15, %v3733_v16  ;;  %v1896_v37 = vsub.f32 1.0, %v1894_v7 }
 0x211   : > { %v2006_v40 = vmul.f32 %v4199_v41, %v4199_v41  ;;  %3085 = vtanh.f32 %v2330_v14  ;;  %v1799_v0 = vmul.f32 %v1787_v1, %v3708_v48  ;;  %v1897_v21 = vsub.f32 1.0, %v1895_v42 }
 0x212   : > { %v4211_v29 = vld [vmem:[#allocation1 + $0x5] ss:$9 sm:$0xff]  ;;  %v4231_v22 = vpop.eup %3079  ;;  %v1796_v53 = vrot.slane %v1795_v60, 1  ;;  %v4272_v13 = vadd.f32 %v1690_v44, %v1689_v47  ;;  %v1898_v35 = vmul.f32 %v1896_v37, %v1892_v26  ;;  %v2005_v50 = vmul.f32 %v4201_v5, %v4201_v5 }
 0x213   : > { %1292 = vst [vmem:[#allocation1] sm:$0xff] %v3870_v56  ;;  %v4242_v63 = vpop.eup %3081  ;;  %v2234_v46 = vmul.f32 %v4231_v22, %v3733_v16  ;;  %v4276_v6 = vadd.f32 %v1800_v17, %v1799_v0  ;;  %v2015_v15 = vadd.f32 %v2014_v36, %v2013_v25  ;;  %v2003_v9 = vsub.f32 %v3731_v20, %v4165_v52 }
 0x214   : > { %v2233_v38 = vmul.f32 %v4242_v63, %v3708_v48  ;;  %v1899_v41 = vmul.f32 %v1897_v21, %v1893_v34  ;;  %v1906_v14 = vadd.f32 %v1905_v12, %v1904_v2  ;;  %v2004_v1 = vsub.f32 %v3737_v23, %v4207_v27 }
 0x215   : > { %v2008_v42 = vsub.f32 1.0, %v2006_v40  ;;  %v2117_v47 = vmul.f32 %v4209_v57, %v4209_v57  ;;  %v951_v5 = vmul.f32 %v3980_v18, %v4076_v62  ;;  %v956_v25 = vmul.f32 %v4003_v24, %v4080_v61  ;;  %v4303_v36 = vpop.f32.mrf.mxu2  ;;  %v2206_v21 = vpop.f32.mrf.mxu0 }
 0x216   : > { %v2235_v31 = vadd.f32 %v2234_v46, %v2233_v38  ;;  %v4280_v7 = vpop.eup %3083  ;;  %v1910_v2 = vmul.f32 %v1898_v35, %v3708_v48  ;;  %v2007_v17 = vsub.f32 1.0, %v2005_v50  ;;  %v2116_v27 = vmul.f32 %v4222_v39, %v4222_v39 }
 0x217   : > { %v4290_v52 = vpop.eup %3085  ;;  %v2115_v57 = vsub.f32 %v3737_v23, %v4255_v45  ;;  %v1911_v18 = vmul.f32 %v1899_v41, %v3733_v16  ;;  %v2345_v24 = vmul.f32 %v4280_v7, %v3733_v16  ;;  %v957_v34 = vadd.f32 %v956_v25, %v951_v5 }
 0x218   : > { %v2236_v44 = vrot.slane %v2235_v31, 4  ;;  %v2010_v38 = vmul.f32 %v2008_v42, %v2004_v1  ;;  %v2114_v12 = vsub.f32 %v3731_v20, %v4197_v43  ;;  %v2119_v37 = vsub.f32 1.0, %v2117_v47 }
 0x219   : > { %v2228_v39 = vmul.f32 %v4231_v22, %v4231_v22  ;;  %v2344_v40 = vmul.f32 %v4290_v52, %v3708_v48  ;;  %958 = vst [vmem:[#allocation2 + $0x2] sm:$0x1] %v957_v34  ;;  %v1797_v35 = vadd.f32 %v1796_v53, %v1795_v60  ;;  %v2009_v50 = vmul.f32 %v2007_v17, %v2003_v9 }
 0x21a   : > { %v4257_v32 = vld [vmem:[#allocation1 + $0x5] ss:$9 sm:$0xff]  ;;  %v2237_v0 = vadd.f32 %v2236_v44, %v2235_v31  ;;  %v2118_v41 = vsub.f32 1.0, %v2116_v27  ;;  %v2121_v1 = vmul.f32 %v2119_v37, %v2115_v57  ;;  %v1907_v42 = vrot.slane %v1906_v14, 1 }
 0x21b   : > { %4710 = vst [vmem:[#allocation35_spill] sm:$0xff] %v4257_v32  ;;  %v1912_v47 = vadd.f32 %v1911_v18, %v1910_v2  ;;  %v2346_v5 = vadd.f32 %v2345_v24, %v2344_v40  ;;  %v2022_v22 = vmul.f32 %v2010_v38, %v3733_v16  ;;  %v2230_v32 = vsub.f32 1.0, %v2228_v39 }
 0x21c   : > { %1297 = vst [vmem:[#allocation1] sm:$0xff] %v4142_v8  ;;  %v2125_v8 = vrot.slane %v2124_v55, 4  ;;  %v2120_v25 = vmul.f32 %v2118_v41, %v2114_v12  ;;  %v2238_v44 = vrot.slane %v2237_v0, 2  ;;  %v1798_v53 = vadd.f32 %v1797_v35, %v3770_v28 }
 0x21d   : > { %v2021_v9 = vmul.f32 %v2009_v50, %v3708_v48  ;;  %v2133_v2 = vmul.f32 %v2121_v1, %v3733_v16  ;;  %v1908_v17 = vadd.f32 %v1907_v42, %v1906_v14  ;;  %v2347_v57 = vrot.slane %v2346_v5, 4  ;;  %v2317_v39 = vpop.f32.mrf.mxu2 }
 0x21e   : > { %v2126_v46 = vadd.f32 %v2125_v8, %v2124_v55  ;;  %v2016_v55 = vrot.slane %v2015_v15, 2  ;;  %v2227_v8 = vmul.f32 %v4242_v63, %v4242_v63  ;;  %v2225_v63 = vsub.f32 %v3731_v20, %v4267_v54 }
 0x21f   : > { %3087 = vtanh.f32 %v4245_v11  ;;  %v2023_v54 = vadd.f32 %v2022_v22, %v2021_v9  ;;  %v1692_v24 = vrot.slane %v4272_v13, 2  ;;  %v2239_v12 = vadd.f32 %v2238_v44, %v2237_v0 }
 0x220   : > { %v2127_v45 = vrot.slane %v2126_v46, 2  ;;  %v2017_v43 = vadd.f32 %v2016_v55, %v2015_v15  ;;  %v2229_v34 = vsub.f32 1.0, %v2227_v8  ;;  %v1802_v15 = vrot.slane %v4276_v6, 4 }
 0x221   : > { %v2132_v55 = vmul.f32 %v2120_v25, %v3708_v48  ;;  %3089 = vtanh.f32 %v1798_v53  ;;  %v2339_v14 = vmul.f32 %v4280_v7, %v4280_v7  ;;  %v1909_v8 = vadd.f32 %v1908_v17, %v3770_v28 }
 0x222   : > { %v2128_v31 = vadd.f32 %v2127_v45, %v2126_v46  ;;  %v2018_v27 = vrot.slane %v2017_v43, 1  ;;  %v1913_v46 = vrot.slane %v1912_v47, 4  ;;  %v2231_v37 = vmul.f32 %v2229_v34, %v2225_v63 }
 0x223   : > { %v4292_v26 = vld [vmem:[#allocation1 + $0x5] ss:$9 sm:$0xff]  ;;  %v1803_v45 = vadd.f32 %v1802_v15, %v4276_v6  ;;  %v2134_v40 = vadd.f32 %v2133_v2, %v2132_v55  ;;  %v2348_v35 = vadd.f32 %v2347_v57, %v2346_v5  ;;  %v2024_v50 = vrot.slane %v2023_v54, 4 }
 0x224   : > { %4711 = vst [vmem:[#allocation36_spill] sm:$0xff] %v4292_v26  ;;  %v2226_v26 = vsub.f32 %v3737_v23, %v2206_v21  ;;  %v2129_v38 = vrot.slane %v2128_v31, 1  ;;  %v2019_v11 = vadd.f32 %v2018_v27, %v2017_v43  ;;  %v1914_v21 = vadd.f32 %v1913_v46, %v1912_v47 }
 0x225   : > { %1391 = vst [vmem:[#allocation1] sm:$0xff] %v4233_v10  ;;  %v2337_v0 = vsub.f32 %v3737_v23, %v2317_v39  ;;  %v2240_v1 = vrot.slane %v2239_v12, 1  ;;  %v2243_v6 = vmul.f32 %v2231_v37, %v3708_v48  ;;  %v2336_v7 = vsub.f32 %v3731_v20, %v4303_v36  ;;  %v4338_v42 = vpop.eup %3087 }
 0x226   : > { %v2232_v18 = vmul.f32 %v2230_v32, %v2226_v26  ;;  %v2338_v26 = vmul.f32 %v4290_v52, %v4290_v52  ;;  %v2130_v41 = vadd.f32 %v2129_v38, %v2128_v31  ;;  %v2135_v47 = vrot.slane %v2134_v40, 4 }
 0x227   : > { %v2341_v5 = vsub.f32 1.0, %v2339_v14  ;;  %v963_v22 = vmul.f32 %v4023_v30, %v4076_v62  ;;  %v968_v52 = vmul.f32 %v4039_v4, %v4080_v61  ;;  %3091 = vtanh.f32 %v1909_v8  ;;  %v4349_v36 = vpop.eup %3089 }
 0x228   : > { %v2244_v32 = vmul.f32 %v2232_v18, %v3733_v16  ;;  %v1693_v23 = vadd.f32 %v1692_v24, %v4272_v13  ;;  %v2020_v25 = vadd.f32 %v2019_v11, %v3770_v28  ;;  %v2349_v20 = vrot.slane %v2348_v35, 2 }
 0x229   : > { %v2340_v44 = vsub.f32 1.0, %v2338_v26  ;;  %v2343_v63 = vmul.f32 %v2341_v5, %v2337_v0  ;;  %v969_v34 = vsub.f32 %v963_v22, %v968_v52  ;;  %v1498_v30 = vsub.f32 %v4238_v19, %v3785_v58 }
 0x22a   : > { %v2245_v31 = vadd.f32 %v2244_v32, %v2243_v6  ;;  %v2131_v53 = vadd.f32 %v2130_v41, %v3770_v28  ;;  %v1915_v4 = vrot.slane %v1914_v21, 2  ;;  %v2241_v15 = vadd.f32 %v2240_v1, %v2239_v12 }
 0x22b   : > { %v1804_v9 = vrot.slane %v1803_v45, 2  ;;  %v2025_v2 = vadd.f32 %v2024_v50, %v2023_v54  ;;  %v2136_v17 = vadd.f32 %v2135_v47, %v2134_v40  ;;  %v2342_v13 = vmul.f32 %v2340_v44, %v2336_v7  ;;  %970 = vst [vmem:[#allocation3 + $0x2] sm:$0x1] %v969_v34 }
 0x22c   : > { %v4317_v60 = vld [vmem:[#allocation1 + $0x6] ss:$9 sm:$0xff]  ;;  %v1694_v27 = vrot.slane %v1693_v23, 1  ;;  %v1698_v46 = vmul.f32 %v4338_v42, %v4338_v42  ;;  %3093 = vtanh.f32 %v2020_v25  ;;  %v2350_v57 = vadd.f32 %v2349_v20, %v2348_v35 }
 0x22d   : > { %1396 = vst [vmem:[#allocation1] sm:$0xff] %v3870_v56  ;;  %v2246_v55 = vrot.slane %v2245_v31, 4  ;;  %v2355_v18 = vmul.f32 %v2343_v63, %v3733_v16  ;;  %v4357_v24 = vpop.eup %3091  ;;  %3095 = vtanh.f32 %v2131_v53  ;;  %v1916_v19 = vadd.f32 %v1915_v4, %v1914_v21 }
 0x22e   : > { %v2242_v38 = vadd.f32 %v2241_v15, %v3770_v28  ;;  %v1805_v54 = vadd.f32 %v1804_v9, %v1803_v45  ;;  %v2026_v37 = vrot.slane %v2025_v2, 2  ;;  %v2137_v39 = vrot.slane %v2136_v17, 2 }
 0x22f   : > { %v2354_v40 = vmul.f32 %v2342_v13, %v3708_v48  ;;  %v1499_v14 = vmul.f32 %v1498_v30, %v3788_v59  ;;  %v1695_v8 = vadd.f32 %v1694_v27, %v1693_v23  ;;  %v1699_v11 = vsub.f32 1.0, %v1698_v46 }
 0x230   : > { %v2351_v16 = vrot.slane %v2350_v57, 1  ;;  %v1810_v35 = vmul.f32 %v4349_v36, %v4349_v36  ;;  %v2247_v21 = vadd.f32 %v2246_v55, %v2245_v31  ;;  %v1917_v26 = vrot.slane %v1916_v19, 1 }
 0x231   : > { %v2356_v50 = vadd.f32 %v2355_v18, %v2354_v40  ;;  %v1921_v45 = vmul.f32 %v4357_v24, %v4357_v24  ;;  %3097 = vtanh.f32 %v2242_v38  ;;  %v1806_v48 = vrot.slane %v1805_v54, 1 }
 0x232   : > { %v4367_v32 = vpop.eup %3093  ;;  %v2027_v0 = vadd.f32 %v2026_v37, %v2025_v2  ;;  %v4373_v1 = vadd.f32 -1.0, %v1499_v14  ;;  %v1700_v6 = vmul.f32 %v1699_v11, %v1695_v8  ;;  %v2352_v7 = vadd.f32 %v2351_v16, %v2350_v57 }
 0x233   : > { %v4371_v41 = vpop.eup %3095  ;;  %v1811_v47 = vsub.f32 1.0, %v1810_v35  ;;  %v2032_v5 = vmul.f32 %v4367_v32, %v4367_v32  ;;  %v2248_v22 = vrot.slane %v2247_v21, 2  ;;  %v2357_v52 = vrot.slane %v2356_v50, 4 }
 0x234   : > { %v4340_v43 = vld [vmem:[#allocation1 + $0x6] ss:$9 sm:$0xff]  ;;  %v1918_v23 = vadd.f32 %v1917_v26, %v1916_v19  ;;  %v1922_v25 = vsub.f32 1.0, %v1921_v45  ;;  %v1062_v20 = vmul.f32 %v4065_v51, %v4076_v62  ;;  %v1067_v31 = vmul.f32 %v4090_v33, %v4080_v61 }
 0x235   : > { %1403 = vst [vmem:[#allocation1] sm:$0xff] %v3870_v56  ;;  %v1807_v63 = vadd.f32 %v1806_v48, %v1805_v54  ;;  %v2028_v34 = vrot.slane %v2027_v0, 1  ;;  %v2143_v53 = vmul.f32 %v4371_v41, %v4371_v41  ;;  %v2353_v15 = vadd.f32 %v2352_v7, %v3770_v28 }
 0x236   : > { %v1068_v9 = vadd.f32 %v1067_v31, %v1062_v20  ;;  %v2033_v51 = vsub.f32 1.0, %v2032_v5  ;;  %v2358_v13 = vadd.f32 %v2357_v52, %v2356_v50  ;;  %v1701_v33 = vadd.f32 0.1, %v1700_v6  ;;  %v4712_v20 = vld [vmem:[#allocation29_spill] sm:$0xff] }
 0x237   : > { %v4385_v4 = vpop.eup %3097  ;;  %v1812_v2 = vmul.f32 %v1811_v47, %v1807_v63  ;;  %v1923_v27 = vmul.f32 %v1922_v25, %v1918_v23  ;;  %v2029_v46 = vadd.f32 %v2028_v34, %v2027_v0  ;;  %v2144_v55 = vsub.f32 1.0, %v2143_v53 }
 0x238   : > { %1069 = vst [vmem:[#allocation2 + $0x3] sm:$0x1] %v1068_v9  ;;  %v2254_v18 = vmul.f32 %v4385_v4, %v4385_v4  ;;  %3099 = vtanh.f32 %v2353_v15  ;;  %v2359_v37 = vrot.slane %v2358_v13, 2  ;;  %v1731_v40 = vmul.f32 %v1701_v33, %v3788_v59  ;;  %v4713_v15 = vld [vmem:[#allocation26_spill] sm:$0xff] }
 0x239   : > { %v1813_v19 = vadd.f32 0.1, %v1812_v2  ;;  %v2034_v38 = vmul.f32 %v2033_v51, %v2029_v46  ;;  %v1924_v28 = vadd.f32 0.1, %v1923_v27  ;;  %v1074_v25 = vmul.f32 %v4100_v3, %v4076_v62 }
 0x23a   : > { %v2255_v8 = vsub.f32 1.0, %v2254_v18  ;;  %v1732_v45 = vsel %vm1622_vm14, %v1731_v40, 1.0  ;;  %v1079_v31 = vmul.f32 %v4712_v20, %v4080_v61  ;;  %v1697_v9 = vadd.f32 %v4338_v42, %v4713_v15 }
 0x23b   : > { %v1842_v11 = vmul.f32 %v1813_v19, %v3788_v59  ;;  %v2035_v16 = vadd.f32 0.1, %v2034_v38  ;;  %v1953_v26 = vmul.f32 %v1924_v28, %v3788_v59  ;;  %3101 = vlog2.f32 %v1732_v45 }
 0x23c   : > { %v4360_v12 = vld [vmem:[#allocation1 + $0x6] ss:$9 sm:$0xff]  ;;  %v1080_v53 = vsub.f32 %v1074_v25, %v1079_v31 }
 0x23d   : > { %1408 = vst [vmem:[#allocation1] sm:$0xff] %v4233_v10  ;;  %v2138_v10 = vadd.f32 %v2137_v39, %v2136_v17  ;;  %v2249_v17 = vadd.f32 %v2248_v22, %v2247_v21  ;;  %v2360_v21 = vadd.f32 %v2359_v37, %v2358_v13  ;;  %v2064_v6 = vmul.f32 %v2035_v16, %v3788_v59 }
 0x23e   : > { %v4396_v50 = vpop.eup %3099  ;;  %v1954_v5 = vsel %vm1622_vm14, %v1953_v26, 1.0  ;;  %1081 = vst [vmem:[#allocation3 + $0x3] sm:$0x1] %v1080_v53  ;;  %v1702_v13 = vsub.f32 %v1697_v9, %v3785_v58 }
 0x23f   : > { %v2139_v30 = vrot.slane %v2138_v10, 1  ;;  %v2250_v54 = vrot.slane %v2249_v17, 1  ;;  %v2361_v7 = vrot.slane %v2360_v21, 1  ;;  %v2365_v47 = vmul.f32 %v4396_v50, %v4396_v50 }
 0x240   : > { %v2065_v63 = vsel %vm1622_vm14, %v2064_v6, 1.0  ;;  %v1703_v19 = vmul.f32 %v1702_v13, %v3788_v59 }
 0x241   : > { %v2140_v57 = vadd.f32 %v2139_v30, %v2138_v10  ;;  %v2251_v35 = vadd.f32 %v2250_v54, %v2249_v17  ;;  %v1843_v10 = vsel %vm1622_vm14, %v1842_v11, 1.0  ;;  %v2362_v34 = vadd.f32 %v2361_v7, %v2360_v21  ;;  %v3102_v51 = vpop.eup %3101 }
 0x242   : > { %3103 = vlog2.f32 %v1843_v10  ;;  %v2366_v30 = vsub.f32 1.0, %v2365_v47  ;;  %v1734_v27 = vmul.f32 0.6931472, %v3102_v51  ;;  %v2579_v51 = vlaneseq }
 0x243   : > { %v2145_v14 = vmul.f32 %v2144_v55, %v2140_v57  ;;  %v2256_v0 = vmul.f32 %v2255_v8, %v2251_v35  ;;  %3105 = vlog2.f32 %v1954_v5  ;;  %v2800_v8 = vadd.f32 -1.0, %v1703_v19  ;;  %v4715_v35 = vld [vmem:[#allocation31_spill] sm:$0xff]  ;;  %v4716_v5 = vld [vmem:[#allocation28_spill] sm:$0xff] }
 0x244   : > { %v4381_v44 = vld [vmem:[#allocation1 + $0x6] ss:$9 sm:$0xff]  ;;  %3107 = vlog2.f32 %v2065_v63  ;;  %v1735_v38 = vsel %vm1622_vm14, %v1734_v27, 0.0  ;;  %v1178_v21 = vmul.f32 %v4715_v35, %v4080_v61  ;;  %v2580_v27 = vand.u32 127, %v2579_v51 }
 0x245   : > { %1502 = vst [vmem:[#allocation1] sm:$0xff] %v4373_v1  ;;  %v2146_v48 = vadd.f32 0.1, %v2145_v14  ;;  %v2257_v23 = vadd.f32 0.1, %v2256_v0  ;;  %v1737_v11 = vrot.slane %v1735_v38, 1 }
 0x247   : > { %v2175_v52 = vmul.f32 %v2146_v48, %v3788_v59  ;;  %v2286_v3 = vmul.f32 %v2257_v23, %v3788_v59 }
 0x248   : > { %v3104_v17 = vpop.eup %3103 }
 0x249   : > { %v2176_v2 = vsel %vm1622_vm14, %v2175_v52, 1.0  ;;  %v2287_v42 = vsel %vm1622_vm14, %v2286_v3, 1.0  ;;  %v3106_v46 = vpop.eup %3105  ;;  %v1845_v57 = vmul.f32 0.6931472, %v3104_v17  ;;  %v1739_v52 = vadd.f32 %v1737_v11, %v4716_v5  ;;  %v4717_v3 = vld [vmem:[#allocation27_spill] sm:$0xff] }
 0x24a   : > { %3109 = vlog2.f32 %v2176_v2  ;;  %v3108_v18 = vpop.eup %3107  ;;  %v1956_v54 = vmul.f32 0.6931472, %v3106_v46  ;;  %v2581_v46 = vstv %s2825_s20  ;;  %v3278_v11 = vmov 0.0   ;;  %s3187_s20 = scalar_lea.hbm %s4671_s12, 2 }
 0x24b   : > { %3111 = vlog2.f32 %v2287_v42  ;;  %v1846_v28 = vsel %vm1622_vm14, %v1845_v57, 0.0  ;;  %v2067_v40 = vmul.f32 0.6931472, %v3108_v18  ;;  %p3189_p8 = scmp.lt.s32.totalorder %s3187_s20, %s3183_s21 }
 0x24c   : > { %v4391_v39 = vld [vmem:[#allocation1 + $0x7] ss:$9 sm:$0xff]  ;;  %v1957_v45 = vsel %vm1622_vm14, %v1956_v54, 0.0  ;;  %v1848_v10 = vrot.slane %v1846_v28, 2 }
 0x24d   : > { %1507 = vst [vmem:[#allocation1] sm:$0xff] %v3870_v56  ;;  %v2068_v7 = vsel %vm1622_vm14, %v2067_v40, 0.0  ;;  %v1959_v23 = vrot.slane %v1957_v45, 3  ;;  %v4719_v40 = vld [vmem:[#allocation33_spill] sm:$0xff]  ;;  %v1809_v45 = vadd.f32 %v4349_v36, %v4713_v15  ;;  %v1289_v36 = vmul.f32 %v4211_v29, %v4080_v61  ;;  %p3190_p9 = por %p3189_p8, %p3188_p7 }
 0x24e   : > { %v1850_v31 = vadd.f32 %v1848_v10, %v1739_v52  ;;  %v2070_v63 = vrot.slane %v2068_v7, 4 }
 0x24f   : > { %p3191_p11 = pnand %p3190_p9, %p3186_p5 }
 0x250   : > { %v3110_v37 = vpop.eup %3109 }
 0x251   : > { %v2178_v48 = vmul.f32 0.6931472, %v3110_v37  ;;  %v3112_v0 = vpop.eup %3111  ;;  %v4718_v37 = vld [vmem:[#allocation32_spill] sm:$0xff] }
 0x252   : > { %v2289_v20 = vmul.f32 0.6931472, %v3112_v0  ;;  %v1185_v28 = vmul.f32 %v4718_v37, %v4076_v62  ;;  %v1814_v0 = vsub.f32 %v1809_v45, %v3785_v58 }
 0x253   : > { %v2179_v25 = vsel %vm1622_vm14, %v2178_v48, 0.0 }
 0x254   : > { %v4408_v22 = vld [vmem:[#allocation1 + $0x7] ss:$9 sm:$0xff]  ;;  %v2181_v53 = vrot.slane %v2179_v25, 5 }
 0x255   : > { %1514 = vst [vmem:[#allocation1] sm:$0xff] %v3870_v56  ;;  %v2367_v56 = vmul.f32 %v2366_v30, %v2362_v34  ;;  %v2290_v34 = vsel %vm1622_vm14, %v2289_v20, 0.0  ;;  %v1961_v30 = vadd.f32 %v1959_v23, %v1850_v31 }
 0x256   : > { %v2292_v17 = vrot.slane %v2290_v34, 6 }
 0x257   : > { %v2368_v55 = vadd.f32 0.1, %v2367_v56  ;;  %v2072_v56 = vadd.f32 %v2070_v63, %v1961_v30  ;;  %v4722_v63 = vld [vmem:[#allocation36_spill] sm:$0xff] }
 0x258   : > { %v1301_v34 = vmul.f32 %v4722_v63, %v4080_v61  ;;  %v2253_v63 = vadd.f32 %v4385_v4, %v4713_v15 }
 0x259   : > { %v2397_v14 = vmul.f32 %v2368_v55, %v3788_v59  ;;  %v2183_v42 = vadd.f32 %v2181_v53, %v2072_v56  ;;  %v2582_v55 = vadd.s32 %v2581_v46, %v2580_v27  ;;  %v1395_v27 = vmul.f32 %v4317_v60, %v4076_v62 }
 0x25b   : > { %v2398_v47 = vsel %vm1622_vm14, %v2397_v14, 1.0  ;;  %v2294_v18 = vadd.f32 %v2292_v17, %v2183_v42  ;;  %vm2583_vm15 = vcmp.lt.s32.totalorder %v2582_v55, 256  ;;  %v1190_v14 = vmul.f32 %v4719_v40, %v4080_v61 }
 0x25c   : > { %v4424_v33 = vld [vmem:[#allocation1 + $0x7] ss:$9 sm:$0xff]  ;;  %3113 = vlog2.f32 %v2398_v47  ;;  %v1400_v42 = vmul.f32 %v4340_v43, %v4080_v61 }
 0x25d   : > { %1519 = vst [vmem:[#allocation1] sm:$0xff] %v4373_v1  ;;  %v4714_v1 = vld [vmem:[#allocation30_spill] sm:$0xff] }
 0x25e   : > { %v1173_v16 = vmul.f32 %v4714_v1, %v4076_v62  ;;  %v4460_v1 = vsel %vm2583_vm15, 1.0, %v3278_v11  ;;  %v4720_v47 = vld [vmem:[#allocation34_spill] sm:$0xff]  ;;  %v1511_v11 = vmul.f32 %v4408_v22, %v4080_v61 }
 0x25f   : > { %v1284_v5 = vmul.f32 %v4720_v47, %v4076_v62 }
 0x260   : > { %v1179_v6 = vadd.f32 %v1178_v21, %v1173_v16  ;;  %v1191_v21 = vsub.f32 %v1185_v28, %v1190_v14  ;;  %v1506_v14 = vmul.f32 %v4391_v39, %v4076_v62 }
 0x261   : > { %v1290_v23 = vadd.f32 %v1289_v36, %v1284_v5 }
 0x262   : > { %1180 = vst [vmem:[#allocation2 + $0x4] sm:$0x1] %v1179_v6  ;;  %v3114_v2 = vpop.eup %3113  ;;  %v1815_v6 = vmul.f32 %v1814_v0, %v3788_v59  ;;  %v2142_v0 = vadd.f32 %v4371_v41, %v4713_v15 }
 0x263   : > { %v2400_v13 = vmul.f32 0.6931472, %v3114_v2  ;;  %1192 = vst [vmem:[#allocation3 + $0x4] sm:$0x1] %v1191_v21  ;;  %v1518_v21 = vmul.f32 %v4424_v33, %v4076_v62 }
 0x264   : > { %v4439_v26 = vld [vmem:[#allocation1 + $0x7] ss:$9 sm:$0xff]  ;;  %v2803_v7 = vadd.f32 -1.0, %v1815_v6  ;;  %1291 = vst [vmem:[#allocation2 + $0x5] sm:$0x1] %v1290_v23 }
 0x265   : > { %1706 = vst [vmem:[#allocation1] sm:$0xff] %v2800_v8  ;;  %v2401_v57 = vsel %vm1622_vm14, %v2400_v13, 0.0  ;;  %v1523_v45 = vmul.f32 %v4439_v26, %v4080_v61 }
 0x266   : > { %v2403_v19 = vrot.slane %v2401_v57, 7 }
 0x267   : > { %v1524_v22 = vsub.f32 %v1518_v21, %v1523_v45 }
 0x268   : > { %v2405_v38 = vadd.f32 %v2403_v19, %v2294_v18  ;;  %v1407_v18 = vmul.f32 %v4360_v12, %v4076_v62  ;;  %v1412_v19 = vmul.f32 %v4381_v44, %v4080_v61 }
 0x269   : > { %1525 = vst [vmem:[#allocation3 + $0x7] sm:$0x1] %v1524_v22  ;;  %v2427_v22 = vpop.permute.xlu1 %2426 }
 0x26a   : > { %v2595_v35 = vmul.f32 %v4460_v1, %v2405_v38  ;;  %v1413_v43 = vsub.f32 %v1407_v18, %v1412_v19 }
 0x26c   : > { %v1708_v9 = vld [vmem:[#allocation1 + $0x1] ss:$9 sm:$0xff]  ;;  %2596 = vst [vmem:[%s528_s30] sm:$0x1] %v2595_v35 }
 0x26d   : > { %1712 = vst [vmem:[#allocation1] sm:$0xff] %v4717_v3  ;;  %v1710_v49 = vmul.f32 %v1708_v9, %v4076_v62  ;;  %v1920_v9 = vadd.f32 %v4357_v24, %v4713_v15  ;;  %v1401_v24 = vadd.f32 %v1400_v42, %v1395_v27  ;;  %v2364_v42 = vadd.f32 %v4396_v50, %v4713_v15 }
 0x26e   : > { %1414 = vst [vmem:[#allocation3 + $0x6] sm:$0x1] %v1413_v43 }
 0x26f   : > { %v1925_v51 = vsub.f32 %v1920_v9, %v3785_v58  ;;  %1402 = vst [vmem:[#allocation2 + $0x6] sm:$0x1] %v1401_v24 }
 0x271   : > { %v1926_v17 = vmul.f32 %v1925_v51, %v3788_v59 }
 0x273   : > { %v2806_v13 = vadd.f32 -1.0, %v1926_v17 }
 0x274   : > { %v1714_v54 = vld [vmem:[#allocation1 + $0x1] ss:$9 sm:$0xff] }
 0x275   : > { %v1716_v16 = vmul.f32 %v1714_v54, %v4080_v61  ;;  %1719 = vst [vmem:[#allocation1] sm:$0xff] %v4717_v3  ;;  %v2031_v54 = vadd.f32 %v4367_v32, %v4713_v15  ;;  %v1512_v32 = vadd.f32 %v1511_v11, %v1506_v14 }
 0x277   : > { %v1717_v48 = vadd.f32 %v1716_v16, %v1710_v49  ;;  %v2036_v28 = vsub.f32 %v2031_v54, %v3785_v58  ;;  %1513 = vst [vmem:[#allocation2 + $0x7] sm:$0x1] %v1512_v32  ;;  %v2532_v54 = vld [vmem:[%s4669_s10] sm:$0xff] }
 0x278   : > { %2536 = vperm.xlu1 %2902, %v2532_v54  }
 0x279   : > { %1718 = vst [vmem:[#allocation2 + $0x9] sm:$0x1] %v1717_v48  ;;  %v2037_v12 = vmul.f32 %v2036_v28, %v3788_v59  ;;  %v2461_v28 = vld [vmem:[%s4666_s7] sm:$0xff] }
 0x27b   : > { %v2809_v44 = vadd.f32 -1.0, %v2037_v12  ;;  %v2463_v12 = vld [vmem:[%s4666_s7 + $0x10] sm:$0xff] }
 0x27c   : > { %v4472_v10 = vld [vmem:[#allocation1 + $0x1] ss:$9 sm:$0xff] }
 0x27d   : > { %1724 = vst [vmem:[#allocation1] sm:$0xff] %v2800_v8  ;;  %v4721_v8 = vld [vmem:[#allocation35_spill] sm:$0xff]  ;;  %v1723_v41 = vmul.f32 %v4472_v10, %v4076_v62 }
 0x27e   : > { %v1296_v31 = vmul.f32 %v4721_v8, %v4076_v62 }
 0x280   : > { %v1302_v29 = vsub.f32 %v1296_v31, %v1301_v34 }
 0x282   : > { %1303 = vst [vmem:[#allocation3 + $0x5] sm:$0x1] %v1302_v29 }
 0x284   : > { %v4479_v52 = vld [vmem:[#allocation1 + $0x1] ss:$9 sm:$0xff] }
 0x285   : > { %1818 = vst [vmem:[#allocation1] sm:$0xff] %v2803_v7 }
 0x28c   : > { %v1820_v25 = vld [vmem:[#allocation1 + $0x2] ss:$9 sm:$0xff] }
 0x28d   : > { %1823 = vst [vmem:[#allocation1] sm:$0xff] %v4717_v3  ;;  %v1822_v30 = vmul.f32 %v1820_v25, %v4076_v62  ;;  %v1728_v25 = vmul.f32 %v4479_v52, %v4080_v61 }
 0x28f   : > { %v1729_v31 = vsub.f32 %v1723_v41, %v1728_v25  ;;  %v2533_v25 = vld [vmem:[%s4669_s10 + $0x8] sm:$0xff] }
 0x290   : > { %2541 = vperm.xlu2 %2908, %v2533_v25  }
 0x291   : > { %1730 = vst [vmem:[#allocation3 + $0x9] sm:$0x1] %v1729_v31 }
 0x294   : > { %v1825_v20 = vld [vmem:[#allocation1 + $0x2] ss:$9 sm:$0xff] }
 0x295   : > { %v1827_v53 = vmul.f32 %v1825_v20, %v4080_v61  ;;  %1830 = vst [vmem:[#allocation1] sm:$0xff] %v4717_v3 }
 0x297   : > { %v1828_v2 = vadd.f32 %v1827_v53, %v1822_v30  ;;  %v2258_v30 = vsub.f32 %v2253_v63, %v3785_v58 }
 0x299   : > { %1829 = vst [vmem:[#allocation2 + $0xa] sm:$0x1] %v1828_v2  ;;  %v2259_v10 = vmul.f32 %v2258_v30, %v3788_v59 }
 0x29b   : > { %v2815_v52 = vadd.f32 -1.0, %v2259_v10  ;;  %v4724_v10 = vld [vmem:[#allocation23_spill] sm:$0xff] }
 0x29c   : > { %v4492_v56 = vld [vmem:[#allocation1 + $0x2] ss:$9 sm:$0xff] }
 0x29d   : > { %1835 = vst [vmem:[#allocation1] sm:$0xff] %v2803_v7  ;;  %v2147_v7 = vsub.f32 %v2142_v0, %v3785_v58  ;;  %v1834_v51 = vmul.f32 %v4492_v56, %v4076_v62 }
 0x29f   : > { %v2148_v33 = vmul.f32 %v2147_v7, %v3788_v59 }
 0x2a1   : > { %v2812_v26 = vadd.f32 -1.0, %v2148_v33  ;;  %v2422_v33 = vpop.permute.xlu1 %2421 }
 0x2a4   : > { %v4499_v46 = vld [vmem:[#allocation1 + $0x2] ss:$9 sm:$0xff] }
 0x2a5   : > { %1929 = vst [vmem:[#allocation1] sm:$0xff] %v2806_v13  ;;  %v1839_v4 = vmul.f32 %v4499_v46, %v4080_v61 }
 0x2a7   : > { %v1840_v27 = vsub.f32 %v1834_v51, %v1839_v4  ;;  %v4726_v4 = vld [vmem:[#allocation21_spill] sm:$0xff] }
 0x2a9   : > { %1841 = vst [vmem:[#allocation3 + $0xa] sm:$0x1] %v1840_v27  ;;  %v4727_v27 = vld [vmem:[#allocation24_spill] sm:$0xff] }
 0x2ac   : > { %v1931_v57 = vld [vmem:[#allocation1 + $0x3] ss:$9 sm:$0xff] }
 0x2ad   : > { %1934 = vst [vmem:[#allocation1] sm:$0xff] %v4717_v3  ;;  %v1933_v60 = vmul.f32 %v1931_v57, %v4076_v62  ;;  %v2369_v57 = vsub.f32 %v2364_v42, %v3785_v58 }
 0x2af   : > { %v2370_v56 = vmul.f32 %v2369_v57, %v3788_v59 }
 0x2b1   : > { %v2818_v46 = vadd.f32 -1.0, %v2370_v56  ;;  %v2530_v56 = vld [vmem:[#allocation8] sm:$0xff] }
 0x2b4   : > { %v1936_v55 = vld [vmem:[#allocation1 + $0x3] ss:$9 sm:$0xff] }
 0x2b5   : > { %v1938_v38 = vmul.f32 %v1936_v55, %v4080_v61  ;;  %1941 = vst [vmem:[#allocation1] sm:$0xff] %v4717_v3 }
 0x2b7   : > { %v1939_v37 = vadd.f32 %v1938_v38, %v1933_v60 }
 0x2b9   : > { %1940 = vst [vmem:[#allocation2 + $0xb] sm:$0x1] %v1939_v37 }
 0x2bc   : > { %v4512_v40 = vld [vmem:[#allocation1 + $0x3] ss:$9 sm:$0xff] }
 0x2bd   : > { %1946 = vst [vmem:[#allocation1] sm:$0xff] %v2806_v13  ;;  %v1945_v38 = vmul.f32 %v4512_v40, %v4076_v62  ;;  %v2406_v40 = vld [vmem:[#allocation2] sm:$0xff] }
 0x2c4   : > { %v4519_v49 = vld [vmem:[#allocation1 + $0x3] ss:$9 sm:$0xff] }
 0x2c5   : > { %2040 = vst [vmem:[#allocation1] sm:$0xff] %v2809_v44  ;;  %v1950_v50 = vmul.f32 %v4519_v49, %v4080_v61  ;;  %v2464_v49 = vld [vmem:[%s4666_s7 + $0x18] sm:$0xff] }
 0x2c7   : > { %v1951_v59 = vsub.f32 %v1945_v38, %v1950_v50 }
 0x2c9   : > { %1952 = vst [vmem:[#allocation3 + $0xb] sm:$0x1] %v1951_v59 }
 0x2cc   : > { %v2042_v16 = vld [vmem:[#allocation1 + $0x4] ss:$9 sm:$0xff] }
 0x2cd   : > { %2045 = vst [vmem:[#allocation1] sm:$0xff] %v4717_v3  ;;  %v2044_v39 = vmul.f32 %v2042_v16, %v4076_v62 }
 0x2d4   : > { %v2047_v35 = vld [vmem:[#allocation1 + $0x4] ss:$9 sm:$0xff] }
 0x2d5   : > { %v2049_v48 = vmul.f32 %v2047_v35, %v4080_v61  ;;  %2052 = vst [vmem:[#allocation1] sm:$0xff] %v4717_v3 }
 0x2d7   : > { %v2050_v6 = vadd.f32 %v2049_v48, %v2044_v39 }
 0x2d9   : > { %2051 = vst [vmem:[#allocation2 + $0xc] sm:$0x1] %v2050_v6 }
 0x2dc   : > { %v4532_v47 = vld [vmem:[#allocation1 + $0x4] ss:$9 sm:$0xff] }
 0x2dd   : > { %2057 = vst [vmem:[#allocation1] sm:$0xff] %v2809_v44  ;;  %v2056_v44 = vmul.f32 %v4532_v47, %v4076_v62 }
 0x2e4   : > { %v4535_v5 = vld [vmem:[#allocation1 + $0x4] ss:$9 sm:$0xff] }
 0x2e5   : > { %2151 = vst [vmem:[#allocation1] sm:$0xff] %v2812_v26  ;;  %v2061_v14 = vmul.f32 %v4535_v5, %v4080_v61  ;;  %v2475_v5 = vpop.permute.xlu1 %2474 }
 0x2e7   : > { %v2062_v11 = vsub.f32 %v2056_v44, %v2061_v14 }
 0x2e9   : > { %2063 = vst [vmem:[#allocation3 + $0xc] sm:$0x1] %v2062_v11 }
 0x2ec   : > { %v2153_v36 = vld [vmem:[#allocation1 + $0x5] ss:$9 sm:$0xff] }
 0x2ed   : > { %2156 = vst [vmem:[#allocation1] sm:$0xff] %v4717_v3  ;;  %v2155_v20 = vmul.f32 %v2153_v36, %v4076_v62 }
 0x2f4   : > { %v2158_v23 = vld [vmem:[#allocation1 + $0x5] ss:$9 sm:$0xff] }
 0x2f5   : > { %v2160_v8 = vmul.f32 %v2158_v23, %v4080_v61  ;;  %2163 = vst [vmem:[#allocation1] sm:$0xff] %v4717_v3  ;;  %v2471_v23 = vpop.permute.xlu1 %2470 }
 0x2f7   : > { %v2161_v34 = vadd.f32 %v2160_v8, %v2155_v20  ;;  %v3124_v20 = vld [vmem:[%s3699_s19] ss:$0 sm:$0xff] }
 0x2f8   : > { %v2439_v8 = vmul.f32 %v3124_v20, %v2427_v22  ;;  %v2438_v31 = vmul.f32 %v3124_v20, %v2422_v33 }
 0x2f9   : > { %2162 = vst [vmem:[#allocation2 + $0xd] sm:$0x1] %v2161_v34 }
 0x2fc   : > { %v2165_v53 = vld [vmem:[#allocation1 + $0x5] ss:$9 sm:$0xff] }
 0x2fd   : > { %2168 = vst [vmem:[#allocation1] sm:$0xff] %v2812_v26  ;;  %v2167_v32 = vmul.f32 %v2165_v53, %v4076_v62 }
 0x304   : > { %v2170_v29 = vld [vmem:[#allocation1 + $0x5] ss:$9 sm:$0xff] }
 0x305   : > { %2262 = vst [vmem:[#allocation1] sm:$0xff] %v2815_v52  ;;  %v2172_v16 = vmul.f32 %v2170_v29, %v4080_v61  ;;  %v4725_v29 = vld [vmem:[#allocation25_spill] sm:$0xff] }
 0x307   : > { %v2173_v35 = vsub.f32 %v2167_v32, %v2172_v16 }
 0x309   : > { %2174 = vst [vmem:[#allocation3 + $0xd] sm:$0x1] %v2173_v35 }
 0x30c   : > { %v2264_v9 = vld [vmem:[#allocation1 + $0x6] ss:$9 sm:$0xff] }
 0x30d   : > { %2267 = vst [vmem:[#allocation1] sm:$0xff] %v4717_v3  ;;  %v2266_v17 = vmul.f32 %v2264_v9, %v4076_v62  ;;  %v2458_v9 = vadd.f32 %v4725_v29, %v2438_v31 }
 0x314   : > { %v2269_v2 = vld [vmem:[#allocation1 + $0x6] ss:$9 sm:$0xff] }
 0x315   : > { %v2271_v13 = vmul.f32 %v2269_v2, %v4080_v61  ;;  %2274 = vst [vmem:[#allocation1] sm:$0xff] %v4717_v3 }
 0x317   : > { %v2272_v24 = vadd.f32 %v2271_v13, %v2266_v17 }
 0x319   : > { %2273 = vst [vmem:[#allocation2 + $0xe] sm:$0x1] %v2272_v24 }
 0x31c   : > { %v2276_v55 = vld [vmem:[#allocation1 + $0x6] ss:$9 sm:$0xff] }
 0x31d   : > { %2279 = vst [vmem:[#allocation1] sm:$0xff] %v2815_v52  ;;  %v2278_v21 = vmul.f32 %v2276_v55, %v4076_v62 }
 0x324   : > { %v2281_v18 = vld [vmem:[#allocation1 + $0x6] ss:$9 sm:$0xff] }
 0x325   : > { %2373 = vst [vmem:[#allocation1] sm:$0xff] %v2818_v46  ;;  %v2283_v45 = vmul.f32 %v2281_v18, %v4080_v61  ;;  %v2531_v18 = vld [vmem:[#allocation8 + $0x8] sm:$0xff] }
 0x327   : > { %v2284_v39 = vsub.f32 %v2278_v21, %v2283_v45 }
 0x329   : > { %2285 = vst [vmem:[#allocation3 + $0xe] sm:$0x1] %v2284_v39 }
 0x32c   : > { %v2375_v19 = vld [vmem:[#allocation1 + $0x7] ss:$9 sm:$0xff] }
 0x32d   : > { %2378 = vst [vmem:[#allocation1] sm:$0xff] %v4717_v3  ;;  %v2377_v15 = vmul.f32 %v2375_v19, %v4076_v62 }
 0x334   : > { %v2380_v60 = vld [vmem:[#allocation1 + $0x7] ss:$9 sm:$0xff] }
 0x335   : > { %v2382_v58 = vmul.f32 %v2380_v60, %v4080_v61  ;;  %2385 = vst [vmem:[#allocation1] sm:$0xff] %v4717_v3  ;;  %v2462_v3 = vld [vmem:[%s4666_s7 + $0x8] sm:$0xff] }
 0x337   : > { %v2383_v43 = vadd.f32 %v2382_v58, %v2377_v15 }
 0x339   : > { %2384 = vst [vmem:[#allocation2 + $0xf] sm:$0x1] %v2383_v43 }
 0x33c   : > { %v2387_v48 = vld [vmem:[#allocation1 + $0x7] ss:$9 sm:$0xff] }
 0x33d   : > { %2390 = vst [vmem:[#allocation1] sm:$0xff] %v2818_v46  ;;  %v2389_v6 = vmul.f32 %v2387_v48, %v4076_v62  ;;  %v2467_v62 = vpop.permute.xlu1 %2466 }
 0x340   : > { %v2407_v37 = vld [vmem:[#allocation2 + $0x8] sm:$0xff] }
 0x341   : > { %2507 = vmatpush.msrb.mxu0 %v2407_v37 }
 0x343   : > { %2508 = vmatpush.msrb.mxu0 %v2406_v40 }
 0x344   : > { %2819 = vmatmul.msk.f32.vlgmr.msrb.gmra.mxu0 %vm641_vm0, %v2461_v28  ;;  %v2392_v0 = vld [vmem:[#allocation1 + $0x7] ss:$9 sm:$0xff] }
 0x345   : > { %v2394_v7 = vmul.f32 %v2392_v0, %v4080_v61  ;;  %v4723_v61 = vld [vmem:[#allocation22_spill] sm:$0xff] }
 0x346   : > { %v2459_v30 = vadd.f32 %v4723_v61, %v2439_v8 }
 0x347   : > { %v2395_v47 = vsub.f32 %v2389_v6, %v2394_v7 }
 0x349   : > { %2396 = vst [vmem:[#allocation3 + $0xf] sm:$0x1] %v2395_v47 }
 0x34c   : > { %2820 = vmatmul.msk.f32.gmra.mxu0 %vm641_vm0, %v2462_v3 }
 0x354   : > { %2821 = vmatmul.msk.f32.gmra.mxu0 %vm641_vm0, %v2463_v12 }
 0x35c   : > { %2822 = vmatmul.msk.f32.gmra.mxu0 %vm641_vm0, %v2464_v49  ;;  %vm2544_vm0 = vcmask 261120  }
 0x3c1   : > { %v2510_v26 = vpop.f32.mrf.mxu0 }
 0x3c2   : > { %v2511_v2 = vadd.f32 %v2510_v26, %v2467_v62 }
 0x3c4   : > { %v2522_v42 = vadd.f32 %v2511_v2, %v4727_v27 }
 0x3c9   : > { %v2513_v36 = vpop.f32.mrf.mxu0 }
 0x3ca   : > { %v2514_v53 = vadd.f32 %v2513_v36, %v2471_v23 }
 0x3cc   : > { %v2523_v13 = vadd.f32 %v2514_v53, %v2458_v9 }
 0x3d1   : > { %v2516_v41 = vpop.f32.mrf.mxu0 }
 0x3d2   : > { %v2517_v63 = vadd.f32 %v2516_v41, %v2475_v5 }
 0x3d4   : > { %v2524_v51 = vadd.f32 %v2517_v63, %v2459_v30 }
 0x3d9   : > { %v2519_v34 = vpop.f32.mrf.mxu0 }
 0x3da   : > { %v2520_v52 = vadd.f32 %v2519_v34, %v4724_v10 }
 0x3dc   : > { %v2525_v17 = vadd.f32 %v2520_v52, %v4726_v4 }
 0x3de   : > { %3115 = vtanh.f32 %v2525_v17 }
 0x3df   : > { %3117 = vtanh.f32 %v2524_v51 }
 0x3e0   : > { %3119 = vtanh.f32 %v2523_v13 }
 0x3e1   : > { %3121 = vtanh.f32 %v2522_v42 }
 0x3e4   : > { %v3116_v24 = vpop.eup %3115 }
 0x3e5   : > { %2563 = vmatpush.msra.mxu1 %v3116_v24  ;;  %v3118_v57 = vpop.eup %3117 }
 0x3e6   : > { %v3120_v55 = vpop.eup %3119 }
 0x3e7   : > { %2564 = vmatpush.msra.mxu1 %v3118_v57  ;;  %v3122_v46 = vpop.eup %3121 }
 0x3e9   : > { %2565 = vmatpush.msra.mxu1 %v3120_v55 }
 0x3eb   : > { %2566 = vmatpush.msra.mxu1 %v3122_v46 }
 0x3ec   : > { %2823 = vmatmul.msk.f32.vlgmr.msra.gmra.mxu1 %vm2544_vm0, %v2530_v56 }
 0x3f4   : > { %2824 = vmatmul.msk.f32.gmra.mxu1 %vm2544_vm0, %v2531_v18 }
 0x3f5   : > { %3194 = shalt.err (!%p3191_p11)
}
 0x3f6   : > { %2834 = dma.vmem_to_hbm [thread:$0]  (%p3390_p6), %s2626_s14, 16, %s2628_s9, %s2602_s16   ;;  %v2537_v60 = vpop.permute.xlu1 %2536  ;;  %v2542_v50 = vpop.permute.xlu2 %2541  ;;  %v2408_v15 = vld [vmem:[#allocation3] sm:$0xff]  ;;  %v2409_v54 = vld [vmem:[#allocation3 + $0x8] sm:$0xff] }
 0x3f7   : > { %s2610_s13 = scalar_lea.hbm %s4670_s11, %s3368_s0  ;;  %s522_s14 = scalar_lea.vmem [#allocation11], %s3432_s15 }
 0x3f8   : > { %s2612_s9 = sshll.u32 %s522_s14, 4  ;;  %s2614_s16 = sshll.u32 %s2610_s13, 4  ;;  %s2613_s9 = int_to_ptr.vmem [resolvable:$true] %s2612_s9  ;;  %s2615_s16 = int_to_ptr.hbm [resolvable:$true] %s2614_s16 }
 0x3f9   : > { %s2598_s18 = scalar_lea.sflag [#allocation10], %s3432_s15  ;;  %s3209_s21 = sshra.s32 %s2615_s16, 4  ;;  %s3210_s21 = int_to_ptr.hbm [resolvable:$true] %s3209_s21 }
 0x3fa   : > { %s3211_s23 = scalar_lea.hbm %s3210_s21, 1  ;;  %s3215_s20 = scalar_lea.hbm %s4670_s11, 2 }
 0x3fb   : > { %p3212_p12 = scmp.ne.s32.totalorder %s3210_s21, %s3211_s23  ;;  %p3216_p2 = scmp.lt.s32.totalorder %s3210_s21, %s4670_s11 }
 0x3fc   : > { %p3217_p3 = scmp.lt.s32.totalorder %s3215_s20, %s3211_s23 }
 0x3fd   : > { %p3213_p13 = pnand %p3212_p12, %p3390_p6 }
 0x3fe   : > { %p3218_p4 = por %p3217_p3, %p3216_p2 }
 0x3ff   : > { %p3214_p0 = pneg %p3213_p13 }
 0x401   : > { %p3219_p5 = pnand %p3218_p4, %p3214_p0 }
 0x469   : > { %v2568_v19 = vpop.f32.mrf.mxu1 }
 0x46a   : > { %v2569_v38 = vadd.f32 %v2568_v19, %v2537_v60 }
 0x46c   : > { %v2574_v59 = vsub.f32 %v2569_v38, %v2408_v15 }
 0x46e   : > { %v2576_v28 = vmul.f32 %v2574_v59, %v2574_v59 }
 0x471   : > { %v2571_v58 = vpop.f32.mrf.mxu1 }
 0x472   : > { %v2572_v43 = vadd.f32 %v2571_v58, %v2542_v50 }
 0x474   : > { %v2575_v37 = vsub.f32 %v2572_v43, %v2409_v54 }
 0x476   : > { %v2577_v40 = vmul.f32 %v2575_v37, %v2575_v37 }
 0x478   : > { %v2586_v3 = vadd.f32 %v2577_v40, %v2576_v28 }
 0x47a   : > { %v2587_v12 = vrot.slane %v2586_v3, 4 }
 0x47c   : > { %v2588_v44 = vadd.f32 %v2587_v12, %v2586_v3 }
 0x47e   : > { %v2589_v14 = vrot.slane %v2588_v44, 2 }
 0x480   : > { %v2590_v11 = vadd.f32 %v2589_v14, %v2588_v44 }
 0x482   : > { %v2591_v49 = vrot.slane %v2590_v11, 1 }
 0x484   : > { %v2592_v32 = vadd.f32 %v2591_v49, %v2590_v11 }
 0x486   : > { %v2593_v16 = vmul.f32 %v4460_v1, %v2592_v32 }
 0x488   : > { %2594 = vst [vmem:[%s522_s14] sm:$0x1] %v2593_v16 }
 0x489   : > { %3222 = shalt.err (!%p3219_p5)
}
 0x48a   : > { %2833 = dma.vmem_to_hbm [thread:$0]  (%p3390_p6), %s2613_s9, 16, %s2615_s16, %s2598_s18  }
 0x48b PF: > { %s2639_s30 = sand.u32 1, %s3255_s25   ;;  %p2842_p7 = pnand %p2758_p1, %p3396_p10 }
 0x48c   : > { %s2640_s29 = scalar_lea.sflag [#allocation10], %s2639_s30 }
 0x48d   : > { %p2843_p8 = pneg %p2842_p7 }
 0x48f   : > { %3246 = dma.done.wait (%p2843_p8), %s2640_s29, 16  }
 0x490   : > { %3248 = vsyncadd (%p2843_p8), %s2640_s29, 4294967280  ;;  %s2649_s13 = scalar_lea.sflag [#allocation13], %s2639_s30 }
 0x491   : > { %3250 = dma.done.wait (%p2843_p8), %s2649_s13, 16  }
 0x492   : > { %3252 = vsyncadd (%p2843_p8), %s2649_s13, 4294967280  ;;  %s4729_s28 = sld [smem:[#allocation18_spill]]  ;;  %s4731_s25 = smov %s3259_s26 }
 0x493   : > { %s4730_s17 = sld [smem:[#allocation19_spill]]  ;;  %s4732_s26 = smov %s3263_s27 }
 0x498   : > { %p35_p6 = scmp.ge.s32.totalorder %s4729_s28, 4  }
 0x499   : > { %s4733_s27 = smov %s4730_s17 }
 0x49a   :  { %37 = sbr.rel (!%p35_p6) target bundleno = 12 (0xc), region = 265 }
 0x49f   :  { %2654 = vsyncpa [#allocation9], 1 }
 0x4a0   :  { %2656 = vsyncpa [#allocation9 + $0x1], 1 }
 0x4a1   :  { %2657 = vsyncpa [#allocation10], 1 }
 0x4a2   :  { %2659 = vsyncpa [#allocation10 + $0x1], 1 }
 0x4a3   :  { %2660 = vsyncpa [#allocation13], 1 }
 0x4a4   :  { %2662 = vsyncpa [#allocation13 + $0x1], 1 }

</bundles_post_ra>
